<compile_context>
chip_gen: v6e
topology: v6e:2x2x1
jax: 0.10.0
libtpu: 0.0.40
codegen_flags: <defaults>
</compile_context>

<pallas_src>
import math

import jax
import jax.numpy as jnp
from jax.experimental import pallas as pl
from jax.experimental.pallas import tpu as pltpu


def _erf_f32(x):
    # Abramowitz & Stegun 7.1.26 polynomial approximation, max abs err ~1.5e-7.
    # Uses only mul/add/div/exp/where so it lowers cleanly on TPU (no erf primitive).
    a1 = 0.254829592
    a2 = -0.284496736
    a3 = 1.421413741
    a4 = -1.453152027
    a5 = 1.061405429
    p = 0.3275911
    ax = jnp.abs(x)
    t = 1.0 / (1.0 + p * ax)
    poly = ((((a5 * t + a4) * t + a3) * t + a2) * t + a1) * t
    y = 1.0 - poly * jnp.exp(-ax * ax)
    return jnp.where(x < 0, -y, y)


def _gelu_exact_f32(x):
    # Matches torch.nn.functional.gelu default (erf-based, NOT the tanh approximation).
    return 0.5 * x * (1.0 + _erf_f32(x * 0.7071067811865476))


def _mlp_kernel(x_ref, w1_ref, b1_ref, w2_ref, b2_ref, o_ref):
    # One (TM, H) row tile of x per grid step; w1/b1/w2/b2 fully resident in VMEM.
    x = x_ref[...]                                                   # native dtype
    h = jnp.dot(x, w1_ref[...], preferred_element_type=jnp.float32)  # (TM, 4H) f32 acc
    h = h + b1_ref[...].astype(jnp.float32)
    g = _gelu_exact_f32(h)
    g = g.astype(w2_ref.dtype)                                       # cheap 2nd matmul for bf16 weights
    y = jnp.dot(g, w2_ref[...], preferred_element_type=jnp.float32)  # (TM, H) f32 acc
    y = y + b2_ref[...].astype(jnp.float32)
    o_ref[...] = y.astype(o_ref.dtype)


def _round_up(a, b):
    return (a + b - 1) // b * b


def mlp_forward(x, w1, b1, w2, b2, *, row_tile=128):
    """Equivalent of Mlp.forward: fc2(gelu(fc1(x))).

    x : (..., H)
    w1: (H, 4H)   == torch fc1.weight.T   (stored (in, out) so the kernel needs no transpose)
    b1: (4H,)
    w2: (4H, H)   == torch fc2.weight.T
    b2: (H,)
    """
    H = x.shape[-1]
    F = w1.shape[1]
    assert w1.shape == (H, F) and w2.shape == (F, H)
    assert b1.shape == (F,) and b2.shape == (H,)

    lead_shape = x.shape[:-1]
    x2 = x.reshape(-1, H)
    M = x2.shape[0]

    TM = min(row_tile, _round_up(M, 8))
    Mp = _round_up(M, TM)
    if Mp != M:
        x2 = jnp.pad(x2, ((0, Mp - M), (0, 0)))

    b1_2d = b1.reshape(1, F)
    b2_2d = b2.reshape(1, H)

    itemsize = jnp.dtype(x.dtype).itemsize
    cost = pl.CostEstimate(
        flops=4 * Mp * H * F,                 # two GEMMs
        transcendentals=Mp * F,               # exp inside erf
        bytes_accessed=(2 * Mp * H + 2 * H * F + F + H) * itemsize,
    )

    out = pl.pallas_call(
        _mlp_kernel,
        out_shape=jax.ShapeDtypeStruct((Mp, H), x.dtype),
        grid_spec=pltpu.PrefetchScalarGridSpec(
            num_scalar_prefetch=0,
            grid=(Mp // TM,),
            in_specs=[
                pl.BlockSpec((TM, H), lambda i: (i, 0)),   # x row tile
                pl.BlockSpec((H, F), lambda i: (0, 0)),    # w1 (resident across steps)
                pl.BlockSpec((1, F), lambda i: (0, 0)),    # b1
                pl.BlockSpec((F, H), lambda i: (0, 0)),    # w2 (resident across steps)
                pl.BlockSpec((1, H), lambda i: (0, 0)),    # b2
            ],
            out_specs=pl.BlockSpec((TM, H), lambda i: (i, 0)),
        ),
        compiler_params=pltpu.CompilerParams(
            dimension_semantics=("parallel",),
        ),
        cost_estimate=cost,
    )(x2, w1, b1_2d, w2, b2_2d)

    if Mp != M:
        out = out[:M]
    return out.reshape(*lead_shape, H)
    # TODO(synk): for very large hidden_size the full (H,4H)/(4H,H) weights will not
    # fit in VMEM; add a reduction-axis grid with an f32 VMEM accumulator then.


def _reference_mlp(x, w1, b1, w2, b2):
    xf = x.astype(jnp.float32)
    h = jnp.dot(xf, w1.astype(jnp.float32),
                precision=jax.lax.Precision.HIGHEST) + b1.astype(jnp.float32)
    g = jax.nn.gelu(h, approximate=False)          # exact erf GELU, same as torch default
    y = jnp.dot(g, w2.astype(jnp.float32),
                precision=jax.lax.Precision.HIGHEST) + b2.astype(jnp.float32)
    return y.astype(x.dtype)


if __name__ == "__main__":
    # Small, lane-dense shapes consistent with the module: x (B, N, hidden).
    B, N, H = 2, 128, 128
    F = 4 * H

    key = jax.random.PRNGKey(0)
    kx, k1, k2, k3, k4 = jax.random.split(key, 5)

    x = jax.random.normal(kx, (B, N, H), dtype=jnp.float32)

    lim1 = math.sqrt(6.0 / (H + F))   # xavier_uniform for fc1
    lim2 = math.sqrt(6.0 / (F + H))   # xavier_uniform for fc2
    w1 = jax.random.uniform(k1, (H, F), dtype=jnp.float32, minval=-lim1, maxval=lim1)
    w2 = jax.random.uniform(k2, (F, H), dtype=jnp.float32, minval=-lim2, maxval=lim2)
    b1 = 1e-6 * jax.random.normal(k3, (F,), dtype=jnp.float32)
    b2 = 1e-6 * jax.random.normal(k4, (H,), dtype=jnp.float32)

    out = mlp_forward(x, w1, b1, w2, b2)
    out = jax.block_until_ready(out)

    ref = _reference_mlp(x, w1, b1, w2, b2)
    assert out.shape == (B, N, H)
    assert jnp.allclose(out, ref, atol=1e-4, rtol=1e-4), (
        f"mismatch vs reference: max abs err = {jnp.max(jnp.abs(out - ref))}"
    )

    print("KERNEL_OK")
</pallas_src>

<mosaic_0001>
module attributes {stable_mosaic.version = 11 : i64} {
  func.func @_mlp_kernel(%arg0: i32, %arg1: memref<128x128xf32, #tpu.memory_space<vmem>>, %arg2: memref<128x512xf32, #tpu.memory_space<vmem>>, %arg3: memref<1x512xf32, #tpu.memory_space<vmem>>, %arg4: memref<512x128xf32, #tpu.memory_space<vmem>>, %arg5: memref<1x128xf32, #tpu.memory_space<vmem>>, %arg6: memref<128x128xf32, #tpu.memory_space<vmem>>) attributes {dimension_semantics = [#tpu.dimension_semantics<parallel>], iteration_bounds = array<i64: 2>, scalar_prefetch = 0 : i64, scratch_operands = 0 : i64, tpu.core_type = #tpu.core_type<tc>, window_params = [{transform_indices = @transform_0, window_bounds = array<i64: 128, 128>}, {pipeline_mode = #tpu.pipeline_mode<synchronous>, transform_indices = @transform_1, window_bounds = array<i64: 128, 512>}, {pipeline_mode = #tpu.pipeline_mode<synchronous>, transform_indices = @transform_2, window_bounds = array<i64: 1, 512>}, {pipeline_mode = #tpu.pipeline_mode<synchronous>, transform_indices = @transform_3, window_bounds = array<i64: 512, 128>}, {pipeline_mode = #tpu.pipeline_mode<synchronous>, transform_indices = @transform_4, window_bounds = array<i64: 1, 128>}, {transform_indices = @transform_5, window_bounds = array<i64: 128, 128>}]} {
    %c0 = arith.constant 0 : index
    %c0_0 = arith.constant 0 : index
    %0 = vector.load %arg1[%c0, %c0_0] : memref<128x128xf32, #tpu.memory_space<vmem>>, vector<128x128xf32>
    %c0_1 = arith.constant 0 : index
    %c0_2 = arith.constant 0 : index
    %1 = vector.load %arg2[%c0_1, %c0_2] : memref<128x512xf32, #tpu.memory_space<vmem>>, vector<128x512xf32>
    %cst = arith.constant dense<0.000000e+00> : vector<128x512xf32>
    %2 = tpu.matmul %0, %1, %cst {dimension_numbers = #tpu.dot_dimension_numbers<[1], [0], [0], [1], [0, 0, 1, 1], [], []>} : vector<128x128xf32>, vector<128x512xf32>, vector<128x512xf32> -> vector<128x512xf32>
    %c0_3 = arith.constant 0 : index
    %c0_4 = arith.constant 0 : index
    %3 = vector.load %arg3[%c0_3, %c0_4] : memref<1x512xf32, #tpu.memory_space<vmem>>, vector<1x512xf32>
    %4 = vector.broadcast %3 : vector<1x512xf32> to vector<128x512xf32>
    %5 = arith.addf %2, %4 : vector<128x512xf32>
    %cst_5 = arith.constant 5.000000e-01 : f32
    %6 = vector.broadcast %cst_5 : f32 to vector<128x512xf32>
    %7 = arith.mulf %6, %5 : vector<128x512xf32>
    %cst_6 = arith.constant 0.707106769 : f32
    %8 = vector.broadcast %cst_6 : f32 to vector<128x512xf32>
    %9 = arith.mulf %5, %8 : vector<128x512xf32>
    %10 = math.absf %9 : vector<128x512xf32>
    %cst_7 = arith.constant 0.327591091 : f32
    %11 = vector.broadcast %cst_7 : f32 to vector<128x512xf32>
    %12 = arith.mulf %11, %10 : vector<128x512xf32>
    %cst_8 = arith.constant 1.000000e+00 : f32
    %13 = vector.broadcast %cst_8 : f32 to vector<128x512xf32>
    %14 = arith.addf %13, %12 : vector<128x512xf32>
    %cst_9 = arith.constant 1.000000e+00 : f32
    %15 = vector.broadcast %cst_9 : f32 to vector<128x512xf32>
    %16 = arith.divf %15, %14 : vector<128x512xf32>
    %cst_10 = arith.constant 1.06140542 : f32
    %17 = vector.broadcast %cst_10 : f32 to vector<128x512xf32>
    %18 = arith.mulf %17, %16 : vector<128x512xf32>
    %cst_11 = arith.constant -1.45315206 : f32
    %19 = vector.broadcast %cst_11 : f32 to vector<128x512xf32>
    %20 = arith.addf %18, %19 : vector<128x512xf32>
    %21 = arith.mulf %20, %16 : vector<128x512xf32>
    %cst_12 = arith.constant 1.42141378 : f32
    %22 = vector.broadcast %cst_12 : f32 to vector<128x512xf32>
    %23 = arith.addf %21, %22 : vector<128x512xf32>
    %24 = arith.mulf %23, %16 : vector<128x512xf32>
    %cst_13 = arith.constant -0.284496725 : f32
    %25 = vector.broadcast %cst_13 : f32 to vector<128x512xf32>
    %26 = arith.addf %24, %25 : vector<128x512xf32>
    %27 = arith.mulf %26, %16 : vector<128x512xf32>
    %cst_14 = arith.constant 0.254829586 : f32
    %28 = vector.broadcast %cst_14 : f32 to vector<128x512xf32>
    %29 = arith.addf %27, %28 : vector<128x512xf32>
    %30 = arith.mulf %29, %16 : vector<128x512xf32>
    %cst_15 = arith.constant 0.000000e+00 : f32
    %31 = vector.broadcast %cst_15 : f32 to vector<128x512xf32>
    %32 = arith.subf %31, %10 : vector<128x512xf32>
    %33 = arith.mulf %32, %10 : vector<128x512xf32>
    %34 = math.exp %33 : vector<128x512xf32>
    %35 = arith.mulf %30, %34 : vector<128x512xf32>
    %cst_16 = arith.constant 1.000000e+00 : f32
    %36 = vector.broadcast %cst_16 : f32 to vector<128x512xf32>
    %37 = arith.subf %36, %35 : vector<128x512xf32>
    %cst_17 = arith.constant 0.000000e+00 : f32
    %38 = vector.broadcast %cst_17 : f32 to vector<128x512xf32>
    %39 = arith.cmpf olt, %9, %38 : vector<128x512xf32>
    %cst_18 = arith.constant 0.000000e+00 : f32
    %40 = vector.broadcast %cst_18 : f32 to vector<128x512xf32>
    %41 = arith.subf %40, %37 : vector<128x512xf32>
    %42 = arith.select %39, %41, %37 : vector<128x512xi1>, vector<128x512xf32>
    %cst_19 = arith.constant 1.000000e+00 : f32
    %43 = vector.broadcast %cst_19 : f32 to vector<128x512xf32>
    %44 = arith.addf %43, %42 : vector<128x512xf32>
    %45 = arith.mulf %7, %44 : vector<128x512xf32>
    %c0_20 = arith.constant 0 : index
    %c0_21 = arith.constant 0 : index
    %46 = vector.load %arg4[%c0_20, %c0_21] : memref<512x128xf32, #tpu.memory_space<vmem>>, vector<512x128xf32>
    %cst_22 = arith.constant dense<0.000000e+00> : vector<128x128xf32>
    %47 = tpu.matmul %45, %46, %cst_22 {dimension_numbers = #tpu.dot_dimension_numbers<[1], [0], [0], [1], [0, 0, 1, 1], [], []>} : vector<128x512xf32>, vector<512x128xf32>, vector<128x128xf32> -> vector<128x128xf32>
    %c0_23 = arith.constant 0 : index
    %c0_24 = arith.constant 0 : index
    %48 = vector.load %arg5[%c0_23, %c0_24] : memref<1x128xf32, #tpu.memory_space<vmem>>, vector<1x128xf32>
    %49 = vector.broadcast %48 : vector<1x128xf32> to vector<128x128xf32>
    %50 = arith.addf %47, %49 : vector<128x128xf32>
    %c0_25 = arith.constant 0 : index
    %c0_26 = arith.constant 0 : index
    %51 = vector.load %arg6[%c0_25, %c0_26] : memref<128x128xf32, #tpu.memory_space<vmem>>, vector<128x128xf32>
    tpu.vector_store %arg6[%c0_25, %c0_26], %50 {strides = array<i32>} : memref<128x128xf32, #tpu.memory_space<vmem>>, vector<128x128xf32>,
    return
  }
  func.func @transform_0(%arg0: i32) -> (i32, i32) {
    %c0_i32 = arith.constant 0 : i32
    %c0_i32_0 = arith.constant 0 : i32
    return %arg0, %c0_i32 : i32, i32
  }
  func.func @transform_1(%arg0: i32) -> (i32, i32) {
    %c0_i32 = arith.constant 0 : i32
    %c0_i32_0 = arith.constant 0 : i32
    %c0_i32_1 = arith.constant 0 : i32
    return %c0_i32, %c0_i32_0 : i32, i32
  }
  func.func @transform_2(%arg0: i32) -> (i32, i32) {
    %c0_i32 = arith.constant 0 : i32
    %c0_i32_0 = arith.constant 0 : i32
    %c0_i32_1 = arith.constant 0 : i32
    return %c0_i32, %c0_i32_0 : i32, i32
  }
  func.func @transform_3(%arg0: i32) -> (i32, i32) {
    %c0_i32 = arith.constant 0 : i32
    %c0_i32_0 = arith.constant 0 : i32
    %c0_i32_1 = arith.constant 0 : i32
    return %c0_i32, %c0_i32_0 : i32, i32
  }
  func.func @transform_4(%arg0: i32) -> (i32, i32) {
    %c0_i32 = arith.constant 0 : i32
    %c0_i32_0 = arith.constant 0 : i32
    %c0_i32_1 = arith.constant 0 : i32
    return %c0_i32, %c0_i32_0 : i32, i32
  }
  func.func @transform_5(%arg0: i32) -> (i32, i32) {
    %c0_i32 = arith.constant 0 : i32
    %c0_i32_0 = arith.constant 0 : i32
    return %arg0, %c0_i32 : i32, i32
  }
}

</mosaic_0001>

<bundles_post_ra>
// kernel: tpu_custom_call.1
= control target key start
LH: loop header
LB: loop body
LE: loop exit
PB: predicated region body
PF: predicated region fallthrough
CT: control target
= control target key end

     0   :  { %10 = vsyncpa [#allocation3], 0  ;;  %s5499_s0 = inlined_call_operand.hbm [shape: f32[256,128], index: 0, kind: input, shape index: {}]   ;;  %s5500_s1 = inlined_call_operand.hbm [shape: f32[128,512], index: 1, kind: input, shape index: {}]   ;;  %s5501_s2 = inlined_call_operand.hbm [shape: f32[1,512], index: 2, kind: input, shape index: {}]   ;;  %s5502_s3 = inlined_call_operand.hbm [shape: f32[512,128], index: 3, kind: input, shape index: {}]   ;;  %s5503_s4 = inlined_call_operand.vmem [shape: f32[1,128], index: 4, kind: input, shape index: {}]   ;;  %s5504_s5 = inlined_call_operand.hbm [shape: f32[256,128], index: 5, kind: output, shape index: {}]  }
   0x1   :  { %12 = vsyncpa [#allocation3 + $0x1], 0 }
   0x2   :  { %13 = vsyncpa [#allocation6], 0 }
   0x3   :  { %14 = vsyncpa [#allocation9], 0 }
   0x4   :  { %15 = vsyncpa [#allocation4], 0 }
   0x5   :  { %17 = vsyncpa [#allocation4 + $0x1], 0  ;;  %s3677_s18 = smov 0   ;;  %s3679_s19 = smov 0  }
   0x6   :  { %s3681_s20 = smov 0   ;;  %s3683_s21 = smov 0  }
   0x7 LB: > { %s3698_s22 = sadd.s32 4294967295, %s3633_s21   ;;  %s2932_s23 = sadd.s32 4294967294, %s3633_s21   ;;  %s3633_s21 = sphi %s3683_s21, %s6058_s21   ;;  %s3629_s20 = sphi %s3681_s20, %s6057_s20   ;;  %s3625_s19 = sphi %s3679_s19, %s6056_s19   ;;  %s3621_s18 = sphi %s3677_s18, %s6055_s18  }
   0x8   : > { %p43_p0 = scmp.ne.s32.totalorder %s3625_s19, %s3621_s18  ;;  %p5505_p1 = scmp.eq.s32.totalorder %s3698_s22, 0 }
   0x9   : > { %p157_p3 = scmp.eq.s32.totalorder %s2932_s23, 1  ;;  %p2933_p5 = scmp.ge.s32.totalorder %s3633_s21, 1 }
   0xa   : > { %p3707_p4 = por %p5505_p1, %p43_p0  ;;  %p164_p7 = scmp.lt.s32.totalorder %s3633_s21, 3 }
   0xb   : > { %p3712_p6 = por %p157_p3, %p43_p0  ;;  %s3635_s27 = smov [#allocation5]  }
   0xc   : > { %s5652_s24 = scalar_select %p3707_p4, 1, 0 }
   0xd   : > { %s5653_s25 = scalar_select %p3712_p6, 1, 0 }
   0xe   : > { %p3717_p8 = pnand %p2933_p5, %p164_p7  ;;  %s176_s28 = sshll.u32 %s3635_s27, 4  ;;  %s177_s28 = int_to_ptr.vmem [resolvable:$true] %s176_s28 }
   0xf   : > { %s3636_s30 = smov [#allocation7]   ;;  %s3637_s7 = smov [#allocation8]  }
  0x10   : > { %s5654_s26 = scalar_select %p3717_p8, 1, 0 }
  0x11   : > { %p3131_p9 = pneg %p3717_p8  ;;  %s190_s6 = sshll.u32 %s3636_s30, 4  ;;  %s191_s6 = int_to_ptr.vmem [resolvable:$true] %s190_s6 }
  0x12   : > { %s200_s8 = sshll.u32 %s3637_s7, 4  ;;  %s3466_s9 = scalar_lea.vmem %s177_s28, 8192  ;;  %s201_s8 = int_to_ptr.vmem [resolvable:$true] %s200_s8 }
  0x13   : > { %p3726_p11 = pnand %p3131_p9, %p5505_p1  ;;  %p3467_p13 = scmp.ne.s32.totalorder %s177_s28, %s3466_s9 }
  0x14   : > { %p3474_p5 = scmp.lt.s32.totalorder %s177_s28, %s177_s28  ;;  %p3475_p7 = scmp.lt.s32.totalorder %s3466_s9, %s3466_s9 }
  0x15   : > { %p3457_p12 = pneg %p3726_p11 }
  0x16   : > { %p3476_p9 = por %p3475_p7, %p3474_p5 }
  0x17   : > { %p3469_p0 = pnand %p3467_p13, %p3457_p12 }
  0x19   : > { %p3470_p3 = pneg %p3469_p0 }
  0x1b   : > { %p3477_p10 = pnand %p3476_p9, %p3470_p3 }
  0x1d   : > { %3480 = shalt.err (!%p3477_p10)
}
  0x1e   : > { %s3638_s10 = smov 512   ;;  %s3639_s11 = smov 32  }
  0x1f   : > { %3134 = dma.hbm_to_vmem [thread:$0]  (!%p3726_p11), %s5500_s1, 8192, %s177_s28, [#allocation6], %s3638_s10, %s3638_s10, %s3639_s11  }
  0x20   : > { %s3492_s14 = scalar_lea.vmem %s191_s6, 64  ;;  %p3500_p2 = scmp.lt.s32.totalorder %s191_s6, %s191_s6 }
  0x21   : > { %p3493_p1 = scmp.ne.s32.totalorder %s191_s6, %s3492_s14  ;;  %p3501_p6 = scmp.lt.s32.totalorder %s3492_s14, %s3492_s14 }
  0x23   : > { %p3495_p13 = pnand %p3493_p1, %p3457_p12  ;;  %p3502_p5 = por %p3501_p6, %p3500_p2 }
  0x25   : > { %p3496_p0 = pneg %p3495_p13 }
  0x27   : > { %p3503_p3 = pnand %p3502_p5, %p3496_p0 }
  0x29   : > { %3506 = shalt.err (!%p3503_p3)
}
  0x2a   : > { %3137 = dma.hbm_to_vmem [thread:$0]  (!%p3726_p11), %s5501_s2, 64, %s191_s6, [#allocation6]  }
  0x2b   : > { %s3518_s17 = scalar_lea.vmem %s201_s8, 8192  ;;  %p3526_p9 = scmp.lt.s32.totalorder %s201_s8, %s201_s8 }
  0x2c   : > { %p3519_p10 = scmp.ne.s32.totalorder %s201_s8, %s3518_s17  ;;  %p3527_p13 = scmp.lt.s32.totalorder %s3518_s17, %s3518_s17 }
  0x2e   : > { %p3521_p7 = pnand %p3519_p10, %p3457_p12  ;;  %p3528_p4 = por %p3527_p13, %p3526_p9 }
  0x30   : > { %p3522_p1 = pneg %p3521_p7 }
  0x32   : > { %p3529_p2 = pnand %p3528_p4, %p3522_p1 }
  0x34   : > { %3532 = shalt.err (!%p3529_p2)
}
  0x35   : > { %s5507_s23 = smov 128   ;;  %s3641_s27 = smov 8  }
  0x36   : > { %3140 = dma.hbm_to_vmem [thread:$0]  (!%p3726_p11), %s5502_s3, 8192, %s201_s8, [#allocation9], %s5507_s23, %s5507_s23, %s3641_s27  }
  0x37   : > { %s3760_s6 = sadd.s32 1, %s3633_s21   ;;  %s30_s9 = sadd.s32 1, %s3629_s20 }
  0x38   : > { %s27_s7 = ssub.s32 %s3633_s21, %s3760_s6  ;;  %p37_p6 = scmp.ne.s32.totalorder %s3629_s20, %s3625_s19 }
  0x39   : > { %p28_p4 = scmp.eq.s32.totalorder %s27_s7, 0  ;;  %p38_p12 = scmp.eq.s32.totalorder %s3633_s21, 0 }
  0x3a   : > { %p3152_p0 = scmp.lt.s32.totalorder %s3633_s21, 2  ;;  %p5656_p3 = scmp.eq.s32.totalorder %s3698_s22, 1 }
  0x3b   : > { %s3770_s10 = scalar_select %p28_p4, %s3629_s20, %s30_s9  }
  0x3c   : > { %p39_p5 = por %p38_p12, %p37_p6  ;;  %p3774_p10 = por %p5656_p3, %p37_p6 }
  0x3d   : > { %s217_s11 = sand.u32 1, %s3629_s20   ;;  %s2953_s12 = sshll.u32 %s3633_s21, 11 }
  0x3e   : > { %s5657_s29 = scalar_select %p3774_p10, 1, 0 }
  0x3f   : > { %s2938_s8 = sshll.u32 %s217_s11, 7  ;;  %s3783_s15 = scalar_lea.hbm %s5499_s0, %s2953_s12 }
  0x40   : > { %s221_s16 = scalar_lea.vmem [#allocation2], %s2938_s8  ;;  %p3785_p11 = pnand %p3152_p0, %p39_p5 }
  0x41   : > { %s228_s17 = sshll.u32 %s221_s16, 4  ;;  %s3791_s30 = scalar_lea.sflag [#allocation3], %s217_s11  ;;  %s3789_s17 = int_to_ptr.vmem [resolvable:$true] %s228_s17 }
  0x42   : > { %s3533_s7 = scalar_lea.hbm %s3783_s15, 2048  ;;  %p3535_p1 = pneg %p3785_p11 }
  0x43   : > { %p3534_p7 = scmp.ne.s32.totalorder %s3783_s15, %s3533_s7  ;;  %s3538_s8 = scalar_lea.hbm %s5499_s0, 4096 }
  0x44   : > { %p3539_p2 = scmp.lt.s32.totalorder %s3783_s15, %s5499_s0  ;;  %p3540_p4 = scmp.lt.s32.totalorder %s3538_s8, %s3533_s7 }
  0x45   : > { %p3536_p9 = pnand %p3535_p1, %p3534_p7 }
  0x46   : > { %p3541_p6 = por %p3540_p4, %p3539_p2 }
  0x47   : > { %p3537_p13 = pneg %p3536_p9 }
  0x49   : > { %p3542_p12 = pnand %p3541_p6, %p3537_p13 }
  0x4b   : > { %3545 = shalt.err (!%p3542_p12)
}
  0x4c   : > { %s3546_s11 = scalar_lea.vmem %s3789_s17, 2048  ;;  %s3642_s16 = smov [#allocation2]  }
  0x4d   : > { %p3547_p0 = scmp.ne.s32.totalorder %s3789_s17, %s3546_s11  ;;  %s3551_s23 = sshll.u32 %s3642_s16, 4  ;;  %s3552_s23 = int_to_ptr.vmem [resolvable:$false] %s3551_s23 }
  0x4e   : > { %s3553_s9 = scalar_lea.vmem %s3552_s23, 4096  ;;  %p3554_p7 = scmp.lt.s32.totalorder %s3789_s17, %s3552_s23 }
  0x4f   : > { %p3549_p5 = pnand %p3547_p0, %p3535_p1  ;;  %p3555_p9 = scmp.lt.s32.totalorder %s3553_s9, %s3546_s11 }
  0x51   : > { %p3550_p3 = pneg %p3549_p5  ;;  %p3556_p10 = por %p3555_p9, %p3554_p7 }
  0x53   : > { %p3557_p8 = pnand %p3556_p10, %p3550_p3 }
  0x55   : > { %3560 = shalt.err (!%p3557_p8)
}
  0x56   : > { %s5659_s7 = smov 128   ;;  %p5660_p1 = scmp.ne.s32.totalorder %s5654_s26, 0 }
  0x57   : > { %3144 = dma.hbm_to_vmem [thread:$0]  (!%p3785_p11), %s3783_s15, 2048, %s3789_s17, %s3791_s30, %s5659_s7, %s5659_s7, %s3641_s27  }
  0x58   : > { %240 = sbr.rel (%p5660_p1) target bundleno = 993 (0x3e1), region = 40 }
  0x5d   : > { %s3818_s12 = sand.u32 1, %s3625_s19   ;;  %p5661_p8 = scmp.ne.s32.totalorder %s5652_s24, 0 }
  0x5e   : > { %s2942_s23 = sshll.u32 %s3818_s12, 7  ;;  %s243_s8 = scalar_lea.sflag [#allocation3], %s3818_s12 }
  0x5f   : > { %s3824_s28 = scalar_lea.vmem [#allocation2], %s2942_s23 }
  0x60   : > { %3604 = dma.done.wait (%p5661_p8), %s243_s8, 2048  }
  0x61   : > { %3606 = vsyncadd (%p5661_p8), %s243_s8, 4294965248  ;;  %p5662_p10 = scmp.eq.s32.totalorder %s3698_s22, 0 }
  0x63   : > { %3608 = dma.done.wait (%p5662_p10), [#allocation6], 8256   ;;  %p5663_p11 = pmov %p5662_p10 }
  0x64   : > { %p5664_p13 = pmov %p5662_p10 }
  0x65   : > { %3610 = vsyncadd (%p5663_p11), [#allocation6], 4294959040 }
  0x66   : > { %3612 = dma.done.wait (%p5664_p13), [#allocation9], 8192   ;;  %p5665_p2 = pmov %p5662_p10 }
  0x67   : > { %v3643_v0 = vmov 0.0   ;;  %v364_v1 = vld [vmem:[#allocation5 + $0x1e8] sm:$0xff]  ;;  %v366_v2 = vld [vmem:[#allocation5 + $0x1f8] sm:$0xff]  ;;  %v363_v3 = vld [vmem:[#allocation5 + $0x1e0] sm:$0xff]  ;;  %s5408_s27 = scalar_lea.vmem [#allocation10], %s2942_s23  ;;  %s2954_s15 = sshll.u32 %s3698_s22, 11 }
  0x68   : > { %3614 = vsyncadd (%p5665_p2), [#allocation9], 4294959104  ;;  %453 = vmatprep.mubr.f32.mxu0 %v3643_v0  ;;  %614 = vmatprep.mubr.f32.mxu1 %v3643_v0  ;;  %v365_v4 = vld [vmem:[#allocation5 + $0x1f0] sm:$0xff]  ;;  %v360_v5 = vld [vmem:[#allocation5 + $0x1c8] sm:$0xff]  ;;  %s2830_s17 = sshll.u32 %s5408_s27, 4  ;;  %s5453_s14 = scalar_lea.hbm %s5504_s5, %s2954_s15  ;;  %s5455_s17 = int_to_ptr.vmem [resolvable:$true] %s2830_s17 }
  0x69   : > { %389 = vmatprep.subr.mxu0 %v364_v1  ;;  %550 = vmatprep.subr.mxu1 %v366_v2  ;;  %v362_v6 = vld [vmem:[#allocation5 + $0x1d8] sm:$0xff]  ;;  %v359_v7 = vld [vmem:[#allocation5 + $0x1c0] sm:$0xff]  ;;  %v361_v8 = vld [vmem:[#allocation5 + $0x1d0] sm:$0xff]  ;;  %s2817_s11 = scalar_lea.sflag [#allocation4], %s3818_s12  ;;  %s3561_s16 = scalar_lea.vmem %s5455_s17, 2048 }
  0x6a   : > { %390 = vmatpush1.msra.mxu0 %v363_v3  ;;  %551 = vmatpush1.msra.mxu1 %v365_v4  ;;  %v356_v9 = vld [vmem:[#allocation5 + $0x1a8] sm:$0xff]  ;;  %v358_v10 = vld [vmem:[#allocation5 + $0x1b8] sm:$0xff]  ;;  %v355_v11 = vld [vmem:[#allocation5 + $0x1a0] sm:$0xff]  ;;  %p3562_p4 = scmp.ne.s32.totalorder %s5455_s17, %s3561_s16  ;;  %p6052_p6 = scmp.ne.s32.totalorder %s5657_s29, 0 }
  0x6b   : > { %391 = vmatprep.subr.mxu0 %v360_v5  ;;  %552 = vmatprep.subr.mxu1 %v362_v6  ;;  %v357_v12 = vld [vmem:[#allocation5 + $0x1b0] sm:$0xff]  ;;  %v352_v13 = vld [vmem:[#allocation5 + $0x188] sm:$0xff]  ;;  %v354_v14 = vld [vmem:[#allocation5 + $0x198] sm:$0xff]  ;;  %s3644_s22 = smov [#allocation10]  }
  0x6c   : > { %392 = vmatpush1.msra.mxu0 %v359_v7  ;;  %553 = vmatpush1.msra.mxu1 %v361_v8  ;;  %v351_v15 = vld [vmem:[#allocation5 + $0x180] sm:$0xff]  ;;  %v353_v16 = vld [vmem:[#allocation5 + $0x190] sm:$0xff]  ;;  %v348_v17 = vld [vmem:[#allocation5 + $0x168] sm:$0xff]  ;;  %p3563_p12 = pnand %p3562_p4, %p6052_p6  ;;  %s3565_s9 = sshll.u32 %s3644_s22, 4  ;;  %s3566_s9 = int_to_ptr.vmem [resolvable:$false] %s3565_s9 }
  0x6d   : > { %393 = vmatprep.subr.mxu0 %v356_v9  ;;  %554 = vmatprep.subr.mxu1 %v358_v10  ;;  %v350_v18 = vld [vmem:[#allocation5 + $0x178] sm:$0xff]  ;;  %v347_v19 = vld [vmem:[#allocation5 + $0x160] sm:$0xff]  ;;  %v349_v20 = vld [vmem:[#allocation5 + $0x170] sm:$0xff]  ;;  %s3567_s7 = scalar_lea.vmem %s3566_s9, 4096  ;;  %p3568_p5 = scmp.lt.s32.totalorder %s5455_s17, %s3566_s9 }
  0x6e   : > { %394 = vmatpush1.msra.mxu0 %v355_v11  ;;  %555 = vmatpush1.msra.mxu1 %v357_v12  ;;  %v344_v21 = vld [vmem:[#allocation5 + $0x148] sm:$0xff]  ;;  %v346_v22 = vld [vmem:[#allocation5 + $0x158] sm:$0xff]  ;;  %v343_v23 = vld [vmem:[#allocation5 + $0x140] sm:$0xff]  ;;  %p3564_p0 = pneg %p3563_p12  ;;  %p3569_p3 = scmp.lt.s32.totalorder %s3567_s7, %s3561_s16 }
  0x6f   : > { %395 = vmatprep.subr.mxu0 %v352_v13  ;;  %556 = vmatprep.subr.mxu1 %v354_v14  ;;  %v345_v24 = vld [vmem:[#allocation5 + $0x150] sm:$0xff]  ;;  %v340_v25 = vld [vmem:[#allocation5 + $0x128] sm:$0xff]  ;;  %v342_v26 = vld [vmem:[#allocation5 + $0x138] sm:$0xff] }
  0x70   : > { %396 = vmatpush1.msra.mxu0 %v351_v15  ;;  %557 = vmatpush1.msra.mxu1 %v353_v16  ;;  %v339_v27 = vld [vmem:[#allocation5 + $0x120] sm:$0xff]  ;;  %v341_v28 = vld [vmem:[#allocation5 + $0x130] sm:$0xff]  ;;  %v336_v29 = vld [vmem:[#allocation5 + $0x108] sm:$0xff]  ;;  %p3570_p7 = por %p3569_p3, %p3568_p5 }
  0x71   : > { %397 = vmatprep.subr.mxu0 %v348_v17  ;;  %558 = vmatprep.subr.mxu1 %v350_v18  ;;  %v338_v30 = vld [vmem:[#allocation5 + $0x118] sm:$0xff]  ;;  %v335_v31 = vld [vmem:[#allocation5 + $0x100] sm:$0xff]  ;;  %v337_v32 = vld [vmem:[#allocation5 + $0x110] sm:$0xff] }
  0x72   : > { %398 = vmatpush1.msra.mxu0 %v347_v19  ;;  %559 = vmatpush1.msra.mxu1 %v349_v20  ;;  %v332_v33 = vld [vmem:[#allocation5 + $0xe8] sm:$0xff]  ;;  %v334_v34 = vld [vmem:[#allocation5 + $0xf8] sm:$0xff]  ;;  %v331_v35 = vld [vmem:[#allocation5 + $0xe0] sm:$0xff]  ;;  %p3571_p9 = pnand %p3570_p7, %p3564_p0 }
  0x73   : > { %399 = vmatprep.subr.mxu0 %v344_v21  ;;  %560 = vmatprep.subr.mxu1 %v346_v22  ;;  %v333_v36 = vld [vmem:[#allocation5 + $0xf0] sm:$0xff]  ;;  %v328_v37 = vld [vmem:[#allocation5 + $0xc8] sm:$0xff]  ;;  %v330_v38 = vld [vmem:[#allocation5 + $0xd8] sm:$0xff] }
  0x74   : > { %400 = vmatpush1.msra.mxu0 %v343_v23  ;;  %561 = vmatpush1.msra.mxu1 %v345_v24  ;;  %v327_v39 = vld [vmem:[#allocation5 + $0xc0] sm:$0xff]  ;;  %v329_v40 = vld [vmem:[#allocation5 + $0xd0] sm:$0xff]  ;;  %v324_v41 = vld [vmem:[#allocation5 + $0xa8] sm:$0xff] }
  0x75   : > { %401 = vmatprep.subr.mxu0 %v340_v25  ;;  %562 = vmatprep.subr.mxu1 %v342_v26  ;;  %v326_v42 = vld [vmem:[#allocation5 + $0xb8] sm:$0xff]  ;;  %v323_v43 = vld [vmem:[#allocation5 + $0xa0] sm:$0xff]  ;;  %v325_v44 = vld [vmem:[#allocation5 + $0xb0] sm:$0xff] }
  0x76   : > { %402 = vmatpush1.msra.mxu0 %v339_v27  ;;  %563 = vmatpush1.msra.mxu1 %v341_v28  ;;  %v320_v45 = vld [vmem:[#allocation5 + $0x88] sm:$0xff]  ;;  %v322_v46 = vld [vmem:[#allocation5 + $0x98] sm:$0xff]  ;;  %v319_v47 = vld [vmem:[#allocation5 + $0x80] sm:$0xff] }
  0x77   : > { %403 = vmatprep.subr.mxu0 %v336_v29  ;;  %564 = vmatprep.subr.mxu1 %v338_v30  ;;  %v321_v48 = vld [vmem:[#allocation5 + $0x90] sm:$0xff]  ;;  %v316_v49 = vld [vmem:[#allocation5 + $0x68] sm:$0xff]  ;;  %v318_v50 = vld [vmem:[#allocation5 + $0x78] sm:$0xff] }
  0x78   : > { %404 = vmatpush1.msra.mxu0 %v335_v31  ;;  %565 = vmatpush1.msra.mxu1 %v337_v32  ;;  %v315_v51 = vld [vmem:[#allocation5 + $0x60] sm:$0xff]  ;;  %v317_v52 = vld [vmem:[#allocation5 + $0x70] sm:$0xff]  ;;  %v312_v53 = vld [vmem:[#allocation5 + $0x48] sm:$0xff] }
  0x79   : > { %405 = vmatprep.subr.mxu0 %v332_v33  ;;  %566 = vmatprep.subr.mxu1 %v334_v34  ;;  %v314_v54 = vld [vmem:[#allocation5 + $0x58] sm:$0xff]  ;;  %v311_v55 = vld [vmem:[#allocation5 + $0x40] sm:$0xff]  ;;  %v313_v56 = vld [vmem:[#allocation5 + $0x50] sm:$0xff] }
  0x7a   : > { %406 = vmatpush1.msra.mxu0 %v331_v35  ;;  %567 = vmatpush1.msra.mxu1 %v333_v36  ;;  %v308_v57 = vld [vmem:[#allocation5 + $0x28] sm:$0xff]  ;;  %v310_v58 = vld [vmem:[#allocation5 + $0x38] sm:$0xff]  ;;  %v307_v59 = vld [vmem:[#allocation5 + $0x20] sm:$0xff] }
  0x7b   : > { %407 = vmatprep.subr.mxu0 %v328_v37  ;;  %568 = vmatprep.subr.mxu1 %v330_v38  ;;  %v309_v60 = vld [vmem:[#allocation5 + $0x30] sm:$0xff]  ;;  %v304_v61 = vld [vmem:[#allocation5 + $0x8] sm:$0xff]  ;;  %v306_v62 = vld [vmem:[#allocation5 + $0x18] sm:$0xff] }
  0x7c   : > { %408 = vmatpush1.msra.mxu0 %v327_v39  ;;  %569 = vmatpush1.msra.mxu1 %v329_v40  ;;  %v303_v63 = vld [vmem:[#allocation5] sm:$0xff]  ;;  %v305_v1 = vld [vmem:[#allocation5 + $0x10] sm:$0xff]  ;;  %v288_v7 = vld [vmem:[%s3824_s28 + $0x8] sm:$0xff] }
  0x7d   : > { %409 = vmatprep.subr.mxu0 %v324_v41  ;;  %570 = vmatprep.subr.mxu1 %v326_v42  ;;  %v287_v2 = vld [vmem:[%s3824_s28] sm:$0xff]  ;;  %v2469_v8 = vld [vmem:[#allocation8 + $0xf0] sm:$0xff]  ;;  %v292_v15 = vld [vmem:[%s3824_s28 + $0x28] sm:$0xff] }
  0x7e   : > { %410 = vmatpush1.msra.mxu0 %v323_v43  ;;  %571 = vmatpush1.msra.mxu1 %v325_v44  ;;  %v2470_v3 = vld [vmem:[#allocation8 + $0xf8] sm:$0xff]  ;;  %v2501_v9 = vld [vmem:[#allocation8 + $0x1f0] sm:$0xff]  ;;  %v296_v19 = vld [vmem:[%s3824_s28 + $0x48] sm:$0xff] }
  0x7f   : > { %411 = vmatprep.subr.mxu0 %v320_v45  ;;  %572 = vmatprep.subr.mxu1 %v322_v46  ;;  %v2502_v4 = vld [vmem:[#allocation8 + $0x1f8] sm:$0xff]  ;;  %v2453_v10 = vld [vmem:[#allocation8 + $0x70] sm:$0xff]  ;;  %v300_v23 = vld [vmem:[%s3824_s28 + $0x68] sm:$0xff] }
  0x80   : > { %412 = vmatpush1.msra.mxu0 %v319_v47  ;;  %573 = vmatpush1.msra.mxu1 %v321_v48  ;;  %v2454_v5 = vld [vmem:[#allocation8 + $0x78] sm:$0xff]  ;;  %v2485_v11 = vld [vmem:[#allocation8 + $0x170] sm:$0xff]  ;;  %v2468_v26 = vld [vmem:[#allocation8 + $0xe8] sm:$0xff] }
  0x81   : > { %413 = vmatprep.subr.mxu0 %v316_v49  ;;  %574 = vmatprep.subr.mxu1 %v318_v50  ;;  %v2486_v6 = vld [vmem:[#allocation8 + $0x178] sm:$0xff]  ;;  %v289_v12 = vld [vmem:[%s3824_s28 + $0x10] sm:$0xff]  ;;  %v2467_v30 = vld [vmem:[#allocation8 + $0xe0] sm:$0xff] }
  0x82   : > { %414 = vmatpush1.msra.mxu0 %v315_v51  ;;  %575 = vmatpush1.msra.mxu1 %v317_v52  ;;  %v290_v13 = vld [vmem:[%s3824_s28 + $0x18] sm:$0xff]  ;;  %v291_v14 = vld [vmem:[%s3824_s28 + $0x20] sm:$0xff]  ;;  %v293_v16 = vld [vmem:[%s3824_s28 + $0x30] sm:$0xff] }
  0x83   : > { %415 = vmatprep.subr.mxu0 %v312_v53  ;;  %576 = vmatprep.subr.mxu1 %v314_v54  ;;  %v294_v17 = vld [vmem:[%s3824_s28 + $0x38] sm:$0xff]  ;;  %v295_v18 = vld [vmem:[%s3824_s28 + $0x40] sm:$0xff]  ;;  %v297_v20 = vld [vmem:[%s3824_s28 + $0x50] sm:$0xff] }
  0x84   : > { %416 = vmatpush1.msra.mxu0 %v311_v55  ;;  %577 = vmatpush1.msra.mxu1 %v313_v56  ;;  %v298_v21 = vld [vmem:[%s3824_s28 + $0x58] sm:$0xff]  ;;  %v299_v22 = vld [vmem:[%s3824_s28 + $0x60] sm:$0xff]  ;;  %v301_v24 = vld [vmem:[%s3824_s28 + $0x70] sm:$0xff] }
  0x85   : > { %417 = vmatprep.subr.mxu0 %v308_v57  ;;  %578 = vmatprep.subr.mxu1 %v310_v58  ;;  %v302_v25 = vld [vmem:[%s3824_s28 + $0x78] sm:$0xff]  ;;  %v2452_v27 = vld [vmem:[#allocation8 + $0x68] sm:$0xff]  ;;  %v2451_v31 = vld [vmem:[#allocation8 + $0x60] sm:$0xff]  ;;  %v369_v57 = vlaneseq }
  0x86   : > { %418 = vmatpush1.msra.mxu0 %v307_v59  ;;  %579 = vmatpush1.msra.mxu1 %v309_v60  ;;  %v2500_v28 = vld [vmem:[#allocation8 + $0x1e8] sm:$0xff]  ;;  %v2499_v32 = vld [vmem:[#allocation8 + $0x1e0] sm:$0xff]  ;;  %v2450_v34 = vld [vmem:[#allocation8 + $0x58] sm:$0xff] }
  0x87   : > { %419 = vmatprep.subr.mxu0 %v304_v61  ;;  %580 = vmatprep.subr.mxu1 %v306_v62  ;;  %v2484_v29 = vld [vmem:[#allocation8 + $0x168] sm:$0xff]  ;;  %v2483_v33 = vld [vmem:[#allocation8 + $0x160] sm:$0xff]  ;;  %v2498_v35 = vld [vmem:[#allocation8 + $0x1d8] sm:$0xff]  ;;  %v370_v59 = vshrl.u32 %v369_v57, 7 }
  0x88   : > { %420 = vmatpush1.msra.mxu0 %v303_v63  ;;  %581 = vmatpush1.msra.mxu1 %v305_v1  ;;  %v2482_v36 = vld [vmem:[#allocation8 + $0x158] sm:$0xff]  ;;  %v2465_v37 = vld [vmem:[#allocation8 + $0xd0] sm:$0xff]  ;;  %v2464_v41 = vld [vmem:[#allocation8 + $0xc8] sm:$0xff] }
  0x89   : > { %454 = vmatmul.mubr.f32.vlgmr.msra.gmra.mxu0 %v287_v2  ;;  %615 = vmatmul.mubr.f32.vlgmr.msra.gmra.mxu1 %v287_v2  ;;  %v2449_v38 = vld [vmem:[#allocation8 + $0x50] sm:$0xff]  ;;  %v2448_v42 = vld [vmem:[#allocation8 + $0x48] sm:$0xff]  ;;  %v2463_v45 = vld [vmem:[#allocation8 + $0xc0] sm:$0xff]  ;;  %v371_v62 = vsub.s32 0, %v370_v59  ;;  %v379_v63 = vsub.s32 2, %v370_v59 }
  0x8a   : > { %459 = vmatprep.mubr.f32.mxu0 %v3643_v0  ;;  %620 = vmatprep.mubr.f32.mxu1 %v3643_v0  ;;  %v2497_v39 = vld [vmem:[#allocation8 + $0x1d0] sm:$0xff]  ;;  %v2496_v43 = vld [vmem:[#allocation8 + $0x1c8] sm:$0xff]  ;;  %v2447_v46 = vld [vmem:[#allocation8 + $0x40] sm:$0xff] }
  0x8b   : > { %2955 = vmatprep.subr.mxu0 %v2470_v3  ;;  %3035 = vmatprep.subr.mxu1 %v2502_v4  ;;  %v2481_v40 = vld [vmem:[#allocation8 + $0x150] sm:$0xff]  ;;  %v2480_v44 = vld [vmem:[#allocation8 + $0x148] sm:$0xff]  ;;  %v2495_v47 = vld [vmem:[#allocation8 + $0x1c0] sm:$0xff] }
  0x8c   : > { %2956 = vmatpush3.msra.mxu0 %v2454_v5  ;;  %3036 = vmatpush3.msra.mxu1 %v2486_v6  ;;  %v2479_v48 = vld [vmem:[#allocation8 + $0x140] sm:$0xff]  ;;  %v2462_v49 = vld [vmem:[#allocation8 + $0xb8] sm:$0xff]  ;;  %v2461_v53 = vld [vmem:[#allocation8 + $0xb0] sm:$0xff] }
  0x8d   : > { %460 = vmatmul.mubr.f32.gmra.mxu0 %v288_v7  ;;  %621 = vmatmul.mubr.f32.gmra.mxu1 %v288_v7  ;;  %v2446_v50 = vld [vmem:[#allocation8 + $0x38] sm:$0xff]  ;;  %v2445_v54 = vld [vmem:[#allocation8 + $0x30] sm:$0xff]  ;;  %v2460_v58 = vld [vmem:[#allocation8 + $0xa8] sm:$0xff] }
  0x8e   : > { %465 = vmatprep.mubr.f32.mxu0 %v3643_v0  ;;  %626 = vmatprep.mubr.f32.mxu1 %v3643_v0  ;;  %v2494_v51 = vld [vmem:[#allocation8 + $0x1b8] sm:$0xff]  ;;  %v2493_v55 = vld [vmem:[#allocation8 + $0x1b0] sm:$0xff]  ;;  %v2444_v60 = vld [vmem:[#allocation8 + $0x28] sm:$0xff] }
  0x8f   : > { %2957 = vmatprep.subr.mxu0 %v2469_v8  ;;  %3037 = vmatprep.subr.mxu1 %v2501_v9  ;;  %v2478_v52 = vld [vmem:[#allocation8 + $0x138] sm:$0xff]  ;;  %v2477_v56 = vld [vmem:[#allocation8 + $0x130] sm:$0xff]  ;;  %v2492_v61 = vld [vmem:[#allocation8 + $0x1a8] sm:$0xff] }
  0x90   : > { %2958 = vmatpush3.msra.mxu0 %v2453_v10  ;;  %3038 = vmatpush3.msra.mxu1 %v2485_v11  ;;  %v2476_v1 = vld [vmem:[#allocation8 + $0x128] sm:$0xff]  ;;  %v367_v2 = vld [vmem:[#allocation7] sm:$0xf]  ;;  %v2459_v5 = vld [vmem:[#allocation8 + $0xa0] sm:$0xff] }
  0x91   : > { %466 = vmatmul.mubr.f32.gmra.mxu0 %v289_v12  ;;  %627 = vmatmul.mubr.f32.gmra.mxu1 %v289_v12  ;;  %v3886_v3 = vrot.slane %v367_v2, %v371_v62  ;;  %v3888_v4 = vrot.slane %v367_v2, %v379_v63  ;;  %v2443_v6 = vld [vmem:[#allocation8 + $0x20] sm:$0xff]  ;;  %v2440_v62 = vld [vmem:[#allocation8 + $0x8] sm:$0xff] }
  0x92   : > { %471 = vmatprep.mubr.f32.mxu0 %v3643_v0  ;;  %632 = vmatprep.mubr.f32.mxu1 %v3643_v0  ;;  %v2491_v11 = vld [vmem:[#allocation8 + $0x1a0] sm:$0xff] }
  0x93   : > { %2959 = vmatprep.subr.mxu0 %v2468_v26  ;;  %3039 = vmatprep.subr.mxu1 %v2500_v28  ;;  %v2490_v26 = vld [vmem:[#allocation8 + $0x198] sm:$0xff] }
  0x94   : > { %2960 = vmatpush3.msra.mxu0 %v2452_v27  ;;  %3040 = vmatpush3.msra.mxu1 %v2484_v29  ;;  %v2474_v28 = vld [vmem:[#allocation8 + $0x118] sm:$0xff] }
  0x95   : > { %472 = vmatmul.mubr.f32.gmra.mxu0 %v290_v13  ;;  %633 = vmatmul.mubr.f32.gmra.mxu1 %v290_v13 }
  0x96   : > { %477 = vmatprep.mubr.f32.mxu0 %v3643_v0  ;;  %638 = vmatprep.mubr.f32.mxu1 %v3643_v0 }
  0x97   : > { %2961 = vmatprep.subr.mxu0 %v2467_v30  ;;  %3041 = vmatprep.subr.mxu1 %v2499_v32 }
  0x98   : > { %2962 = vmatpush3.msra.mxu0 %v2451_v31  ;;  %3042 = vmatpush3.msra.mxu1 %v2483_v33  ;;  %v2457_v33 = vld [vmem:[#allocation8 + $0x90] sm:$0xff] }
  0x99   : > { %478 = vmatmul.mubr.f32.gmra.mxu0 %v291_v14  ;;  %639 = vmatmul.mubr.f32.gmra.mxu1 %v291_v14  ;;  %v2475_v14 = vld [vmem:[#allocation8 + $0x120] sm:$0xff] }
  0x9a   : > { %483 = vmatprep.mubr.f32.mxu0 %v3643_v0  ;;  %644 = vmatprep.mubr.f32.mxu1 %v3643_v0 }
  0x9b   : > { %3043 = vmatprep.subr.mxu1 %v2498_v35 }
  0x9c   : > { %3044 = vmatpush3.msra.mxu1 %v2482_v36 }
  0x9d   : > { %484 = vmatmul.mubr.f32.gmra.mxu0 %v292_v15  ;;  %645 = vmatmul.mubr.f32.gmra.mxu1 %v292_v15 }
  0x9e   : > { %489 = vmatprep.mubr.f32.mxu0 %v3643_v0  ;;  %650 = vmatprep.mubr.f32.mxu1 %v3643_v0 }
  0x9f   : > { %3045 = vmatprep.subr.mxu1 %v2497_v39 }
  0xa0   : > { %3046 = vmatpush3.msra.mxu1 %v2481_v40 }
  0xa1   : > { %490 = vmatmul.mubr.f32.gmra.mxu0 %v293_v16  ;;  %651 = vmatmul.mubr.f32.gmra.mxu1 %v293_v16 }
  0xa2   : > { %495 = vmatprep.mubr.f32.mxu0 %v3643_v0  ;;  %656 = vmatprep.mubr.f32.mxu1 %v3643_v0 }
  0xa3   : > { %3047 = vmatprep.subr.mxu1 %v2496_v43 }
  0xa4   : > { %3048 = vmatpush3.msra.mxu1 %v2480_v44 }
  0xa5   : > { %496 = vmatmul.mubr.f32.gmra.mxu0 %v294_v17  ;;  %657 = vmatmul.mubr.f32.gmra.mxu1 %v294_v17 }
  0xa6   : > { %501 = vmatprep.mubr.f32.mxu0 %v3643_v0  ;;  %662 = vmatprep.mubr.f32.mxu1 %v3643_v0 }
  0xa7   : > { %3049 = vmatprep.subr.mxu1 %v2495_v47 }
  0xa8   : > { %3050 = vmatpush3.msra.mxu1 %v2479_v48 }
  0xa9   : > { %502 = vmatmul.mubr.f32.gmra.mxu0 %v295_v18  ;;  %663 = vmatmul.mubr.f32.gmra.mxu1 %v295_v18 }
  0xaa   : > { %507 = vmatprep.mubr.f32.mxu0 %v3643_v0  ;;  %668 = vmatprep.mubr.f32.mxu1 %v3643_v0 }
  0xab   : > { %3051 = vmatprep.subr.mxu1 %v2494_v51 }
  0xac   : > { %3052 = vmatpush3.msra.mxu1 %v2478_v52 }
  0xad   : > { %508 = vmatmul.mubr.f32.gmra.mxu0 %v296_v19  ;;  %669 = vmatmul.mubr.f32.gmra.mxu1 %v296_v19  ;;  %v375_v19 = vsub.s32 1, %v370_v59 }
  0xae   : > { %513 = vmatprep.mubr.f32.mxu0 %v3643_v0  ;;  %674 = vmatprep.mubr.f32.mxu1 %v3643_v0 }
  0xaf   : > { %3053 = vmatprep.subr.mxu1 %v2493_v55 }
  0xb0   : > { %3054 = vmatpush3.msra.mxu1 %v2477_v56 }
  0xb1   : > { %514 = vmatmul.mubr.f32.gmra.mxu0 %v297_v20  ;;  %675 = vmatmul.mubr.f32.gmra.mxu1 %v297_v20 }
  0xb2   : > { %519 = vmatprep.mubr.f32.mxu0 %v3643_v0  ;;  %680 = vmatprep.mubr.f32.mxu1 %v3643_v0 }
  0xb3   : > { %3055 = vmatprep.subr.mxu1 %v2492_v61 }
  0xb4   : > { %3056 = vmatpush3.msra.mxu1 %v2476_v1 }
  0xb5   : > { %520 = vmatmul.mubr.f32.gmra.mxu0 %v298_v21  ;;  %681 = vmatmul.mubr.f32.gmra.mxu1 %v298_v21 }
  0xb6   : > { %525 = vmatprep.mubr.f32.mxu0 %v3643_v0  ;;  %686 = vmatprep.mubr.f32.mxu1 %v3643_v0 }
  0xb7   : > { %3057 = vmatprep.subr.mxu1 %v2491_v11 }
  0xb8   : > { %3058 = vmatpush3.msra.mxu1 %v2475_v14 }
  0xb9   : > { %526 = vmatmul.mubr.f32.gmra.mxu0 %v299_v22  ;;  %687 = vmatmul.mubr.f32.gmra.mxu1 %v299_v22  ;;  %v2458_v22 = vld [vmem:[#allocation8 + $0x98] sm:$0xff] }
  0xba   : > { %531 = vmatprep.mubr.f32.mxu0 %v3643_v0  ;;  %692 = vmatprep.mubr.f32.mxu1 %v3643_v0 }
  0xbb   : > { %3059 = vmatprep.subr.mxu1 %v2490_v26 }
  0xbc   : > { %3060 = vmatpush3.msra.mxu1 %v2474_v28 }
  0xbd   : > { %532 = vmatmul.mubr.f32.gmra.mxu0 %v300_v23  ;;  %693 = vmatmul.mubr.f32.gmra.mxu1 %v300_v23  ;;  %v2442_v23 = vld [vmem:[#allocation8 + $0x18] sm:$0xff] }
  0xbe   : > { %537 = vmatprep.mubr.f32.mxu0 %v3643_v0  ;;  %698 = vmatprep.mubr.f32.mxu1 %v3643_v0 }
  0xc1   : > { %538 = vmatmul.mubr.f32.gmra.mxu0 %v301_v24  ;;  %699 = vmatmul.mubr.f32.gmra.mxu1 %v301_v24  ;;  %v383_v24 = vsub.s32 3, %v370_v59 }
  0xc2   : > { %543 = vmatprep.mubr.f32.mxu0 %v3643_v0  ;;  %704 = vmatprep.mubr.f32.mxu1 %v3643_v0  ;;  %v2466_v0 = vld [vmem:[#allocation8 + $0xd8] sm:$0xff] }
  0xc3   : > { %2963 = vmatprep.subr.mxu0 %v2466_v0  ;;  %v3906_v29 = vrot.slane %v367_v2, %v383_v24  ;;  %v2441_v0 = vld [vmem:[#allocation8 + $0x10] sm:$0xff] }
  0xc4   : > { %2964 = vmatpush3.msra.mxu0 %v2450_v34 }
  0xc5   : > { %544 = vmatmul.mubr.f32.gmra.mxu0 %v302_v25  ;;  %705 = vmatmul.mubr.f32.gmra.mxu1 %v302_v25  ;;  %v3904_v25 = vrot.slane %v367_v2, %v375_v19 }
  0xc6   : > { %2965 = vmatprep.subr.mxu0 %v2465_v37 }
  0xc7   : > { %2966 = vmatpush3.msra.mxu0 %v2449_v38  ;;  %v2489_v38 = vld [vmem:[#allocation8 + $0x190] sm:$0xff] }
  0xc8   : > { %2967 = vmatprep.subr.mxu0 %v2464_v41  ;;  %3061 = vmatprep.subr.mxu1 %v2489_v38  ;;  %v2473_v41 = vld [vmem:[#allocation8 + $0x110] sm:$0xff] }
  0xc9   : > { %2968 = vmatpush3.msra.mxu0 %v2448_v42  ;;  %3062 = vmatpush3.msra.mxu1 %v2473_v41 }
  0xca   : > { %2969 = vmatprep.subr.mxu0 %v2463_v45 }
  0xcb   : > { %2970 = vmatpush3.msra.mxu0 %v2447_v46 }
  0xcc   : > { %2971 = vmatprep.subr.mxu0 %v2462_v49 }
  0xcd   : > { %2972 = vmatpush3.msra.mxu0 %v2446_v50 }
  0xce   : > { %2973 = vmatprep.subr.mxu0 %v2461_v53 }
  0xcf   : > { %2974 = vmatpush3.msra.mxu0 %v2445_v54 }
  0xd0   : > { %2975 = vmatprep.subr.mxu0 %v2460_v58  ;;  %v2456_v58 = vld [vmem:[#allocation8 + $0x88] sm:$0xff] }
  0xd1   : > { %2976 = vmatpush3.msra.mxu0 %v2444_v60 }
  0xd2   : > { %2977 = vmatprep.subr.mxu0 %v2459_v5 }
  0xd3   : > { %2978 = vmatpush3.msra.mxu0 %v2443_v6 }
  0xd4   : > { %2979 = vmatprep.subr.mxu0 %v2458_v22 }
  0xd5   : > { %2980 = vmatpush3.msra.mxu0 %v2442_v23  ;;  %v2472_v23 = vld [vmem:[#allocation8 + $0x108] sm:$0xff] }
  0xd6   : > { %2981 = vmatprep.subr.mxu0 %v2457_v33 }
  0xd7   : > { %2982 = vmatpush3.msra.mxu0 %v2441_v0 }
  0xd8   : > { %2983 = vmatprep.subr.mxu0 %v2456_v58 }
  0xd9   : > { %2984 = vmatpush3.msra.mxu0 %v2440_v62 }
 0x149   : > { %v455_v7 = vpop.f32.mrf.mxu0  ;;  %v616_v8 = vpop.f32.mrf.mxu1 }
 0x14a   : > { %v3891_v9 = vadd.f32 %v455_v7, %v3886_v3  ;;  %v3894_v10 = vadd.f32 %v616_v8, %v3888_v4 }
 0x14b   : > { %v457_v27 = vpop.f32.mrf.mxu0  ;;  %v618_v30 = vpop.f32.mrf.mxu1 }
 0x14c   : > { %v3897_v12 = vmul.f32 0.70710677, %v3891_v9  ;;  %v3900_v13 = vmul.f32 0.70710677, %v3894_v10  ;;  %v458_v31 = vadd.f32 %v457_v27, %v3904_v25  ;;  %v619_v32 = vadd.f32 %v618_v30, %v3906_v29 }
 0x14d   : > { %v461_v35 = vpop.f32.mrf.mxu0  ;;  %v622_v40 = vpop.f32.mrf.mxu1  ;;  %v3944_v11 = vmul.f32 0.5, %v3891_v9  ;;  %v3951_v19 = vmul.f32 0.5, %v3894_v10 }
 0x14e   : > { %v839_v15 = vand.u32 2147483647, %v3897_v12  ;;  %v841_v16 = vand.u32 2147483647, %v3900_v13  ;;  %v3910_v34 = vmul.f32 0.70710677, %v458_v31  ;;  %v3915_v39 = vadd.f32 %v461_v35, %v3886_v3 }
 0x14f   : > { %v3912_v37 = vmul.f32 0.70710677, %v619_v32  ;;  %v463_v47 = vpop.f32.mrf.mxu0  ;;  %v3929_v53 = vadd.f32 %v622_v40, %v3888_v4  ;;  %v624_v54 = vpop.f32.mrf.mxu1  ;;  %v3954_v9 = vmul.f32 0.5, %v458_v31  ;;  %v3959_v28 = vmul.f32 0.5, %v619_v32 }
 0x150   : > { %v903_v17 = vmul.f32 0.3275911, %v839_v15  ;;  %v905_v18 = vmul.f32 0.3275911, %v841_v16  ;;  %v1735_v36 = vsub.f32 0.0, %v839_v15  ;;  %v1737_v46 = vsub.f32 0.0, %v841_v16 }
 0x151   : > { %v840_v43 = vand.u32 2147483647, %v3910_v34  ;;  %v842_v50 = vand.u32 2147483647, %v3912_v37  ;;  %v3926_v52 = vmul.f32 0.70710677, %v3915_v39  ;;  %v3932_v57 = vadd.f32 %v463_v47, %v3904_v25  ;;  %v467_v22 = vpop.f32.mrf.mxu0  ;;  %v628_v0 = vpop.f32.mrf.mxu1 }
 0x152   : > { %v967_v20 = vadd.f32 1.0, %v903_v17  ;;  %v969_v21 = vadd.f32 1.0, %v905_v18  ;;  %v1799_v48 = vmul.f32 %v1735_v36, %v839_v15  ;;  %v1801_v60 = vmul.f32 %v1737_v46, %v841_v16  ;;  %v2488_v17 = vld [vmem:[#allocation8 + $0x188] sm:$0xff]  ;;  %v2455_v46 = vld [vmem:[#allocation8 + $0x80] sm:$0xff] }
 0x153   : > { %v1736_v56 = vsub.f32 0.0, %v840_v43  ;;  %v904_v61 = vmul.f32 0.3275911, %v840_v43  ;;  %v1738_v2 = vsub.f32 0.0, %v842_v50  ;;  %v3937_v5 = vadd.f32 %v624_v54, %v3906_v29  ;;  %3063 = vmatprep.subr.mxu1 %v2488_v17  ;;  %2985 = vmatprep.subr.mxu0 %v2455_v46  ;;  %v2439_v54 = vld [vmem:[#allocation8] sm:$0xff]  ;;  %v630_v62 = vpop.f32.mrf.mxu1 }
 0x154   : > { %3199 = vrcp.f32 %v967_v20  ;;  %v1863_v63 = vmul.f32 1.442695, %v1799_v48  ;;  %v843_v7 = vand.u32 2147483647, %v3926_v52  ;;  %v3941_v8 = vmul.f32 0.70710677, %v3929_v53  ;;  %3064 = vmatpush3.msra.mxu1 %v2472_v23  ;;  %2986 = vmatpush3.msra.mxu0 %v2439_v54 }
 0x155   : > { %3201 = vrcp.f32 %v969_v21  ;;  %v1800_v15 = vmul.f32 %v1736_v56, %v840_v43  ;;  %v3947_v16 = vmul.f32 0.70710677, %v3932_v57  ;;  %v1867_v20 = vmul.f32 1.442695, %v1801_v60 }
 0x156   : > { %v906_v21 = vmul.f32 0.3275911, %v842_v50  ;;  %v968_v26 = vadd.f32 1.0, %v904_v61  ;;  %v3957_v27 = vmul.f32 0.70710677, %v3937_v5  ;;  %v1802_v30 = vmul.f32 %v1738_v2, %v842_v50 }
 0x157   : > { %v1739_v33 = vsub.f32 0.0, %v843_v7  ;;  %v845_v10 = vand.u32 2147483647, %v3941_v8  ;;  %3203 = vpow2.f32 %v1863_v63  ;;  %v1865_v35 = vmul.f32 1.442695, %v1800_v15 }
 0x158   : > { %v844_v36 = vand.u32 2147483647, %v3947_v16  ;;  %v3964_v38 = vadd.f32 %v467_v22, %v3886_v3  ;;  %3205 = vpow2.f32 %v1867_v20  ;;  %v970_v41 = vadd.f32 1.0, %v906_v21 }
 0x159   : > { %3207 = vrcp.f32 %v968_v26  ;;  %v3967_v32 = vmul.f32 0.5, %v3915_v39  ;;  %v846_v43 = vand.u32 2147483647, %v3957_v27  ;;  %v1869_v47 = vmul.f32 1.442695, %v1802_v30 }
 0x15a   : > { %v907_v48 = vmul.f32 0.3275911, %v843_v7  ;;  %v1741_v50 = vsub.f32 0.0, %v845_v10  ;;  %3209 = vpow2.f32 %v1865_v35  ;;  %v1740_v56 = vsub.f32 0.0, %v844_v36 }
 0x15b   : > { %5666 = vst [vmem:[#allocation15_spill] sm:$0xff] %v3967_v32  ;;  %v3974_v58 = vmul.f32 0.70710677, %v3964_v38  ;;  %v3979_v60 = vmul.f32 0.5, %v3929_v53  ;;  %v3982_v61 = vmul.f32 0.5, %v3932_v57  ;;  %3211 = vrcp.f32 %v970_v41  ;;  %v2471_v53 = vld [vmem:[#allocation8 + $0x100] sm:$0xff] }
 0x15c   : > { %v908_v63 = vmul.f32 0.3275911, %v844_v36  ;;  %v1805_v17 = vmul.f32 %v1741_v50, %v845_v10  ;;  %v1804_v20 = vmul.f32 %v1740_v56, %v844_v36  ;;  %v3992_v21 = vadd.f32 %v630_v62, %v3906_v29 }
 0x15d   : > { %5667 = vst [vmem:[#allocation16_spill] sm:$0xff] %v3974_v58  ;;  %5668 = vst [vmem:[#allocation17_spill] sm:$0xff] %v3979_v60  ;;  %v847_v57 = vand.u32 2147483647, %v3974_v58  ;;  %3213 = vpow2.f32 %v1869_v47  ;;  %v910_v26 = vmul.f32 0.3275911, %v846_v43 }
 0x15e   : > { %5669 = vst [vmem:[#allocation18_spill] sm:$0xff] %v3982_v61  ;;  %v972_v30 = vadd.f32 1.0, %v908_v63  ;;  %v1875_v35 = vmul.f32 1.442695, %v1805_v17  ;;  %v3999_v36 = vmul.f32 0.5, %v3937_v5  ;;  %vm2119_vm0 = vcmp.lt.f32.partialorder %v3897_v12, 0.0 }
 0x15f   : > { %v1743_v41 = vsub.f32 0.0, %v847_v57  ;;  %v4005_v46 = vmul.f32 0.70710677, %v3992_v21  ;;  %v974_v50 = vadd.f32 1.0, %v910_v26  ;;  %vm2121_vm1 = vcmp.lt.f32.partialorder %v3900_v13, 0.0 }
 0x160   : > { %5672 = vst [vmem:[#allocation21_spill] sm:$0xff] %v3999_v36  ;;  %vm2120_vm2 = vcmp.lt.f32.partialorder %v3910_v34, 0.0  ;;  %vm2122_vm3 = vcmp.lt.f32.partialorder %v3912_v37, 0.0  ;;  %vm2124_vm4 = vcmp.lt.f32.partialorder %v3947_v16, 0.0  ;;  %vm2126_vm5 = vcmp.lt.f32.partialorder %v3957_v27, 0.0 }
 0x161   : > { %v3917_v42 = vpop.eup %3199  ;;  %5673 = vst [vmem:[#allocation22_spill] sm:$0xff] %v4005_v46  ;;  %v850_v63 = vand.u32 2147483647, %v4005_v46  ;;  %vm2123_vm6 = vcmp.lt.f32.partialorder %v3926_v52, 0.0  ;;  %vm2125_vm7 = vcmp.lt.f32.partialorder %v3941_v8, 0.0 }
 0x162   : > { %v3920_v44 = vpop.eup %3201  ;;  %v1159_v45 = vmul.f32 1.0614054, %v3917_v42 }
 0x163   : > { %v1161_v49 = vmul.f32 1.0614054, %v3920_v44 }
 0x164   : > { %v1223_v51 = vadd.f32 -1.4531521, %v1159_v45  ;;  %v3971_v45 = vadd.f32 %v628_v0, %v3888_v4  ;;  %v3204_v47 = vpop.eup %3203  ;;  %v5864_v8 = vld [vmem:[#allocation17_spill] sm:$0xff] }
 0x165   : > { %v1225_v55 = vadd.f32 -1.4531521, %v1161_v49  ;;  %v1803_v49 = vmul.f32 %v1739_v33, %v843_v7  ;;  %v2487_v7 = vld [vmem:[#allocation8 + $0x180] sm:$0xff] }
 0x166   : > { %v1287_v59 = vmul.f32 %v3917_v42, %v1223_v51  ;;  %v469_v51 = vpop.f32.mrf.mxu0  ;;  %v3985_v2 = vmul.f32 0.70710677, %v3971_v45  ;;  %3065 = vmatprep.subr.mxu1 %v2487_v7 }
 0x167   : > { %v1289_v1 = vmul.f32 %v3920_v44, %v1225_v55  ;;  %v909_v55 = vmul.f32 0.3275911, %v845_v10  ;;  %v1871_v15 = vmul.f32 1.442695, %v1803_v49  ;;  %3066 = vmatpush3.msra.mxu1 %v2471_v53  ;;  %v4029_v53 = vmul.f32 0.5, %v3971_v45  ;;  %v5859_v27 = vld [vmem:[#allocation21_spill] sm:$0xff] }
 0x168   : > { %v1351_v6 = vadd.f32 1.4214138, %v1287_v59  ;;  %5670 = vst [vmem:[#allocation19_spill] sm:$0xff] %v3985_v2  ;;  %v473_v22 = vpop.f32.mrf.mxu0  ;;  %v849_v0 = vand.u32 2147483647, %v3985_v2 }
 0x169   : > { %v1353_v14 = vadd.f32 1.4214138, %v1289_v1  ;;  %v1742_v1 = vsub.f32 0.0, %v846_v43  ;;  %5676 = vst [vmem:[#allocation25_spill] sm:$0xff] %v4029_v53 }
 0x16a   : > { %v1415_v18 = vmul.f32 %v3917_v42, %v1351_v6  ;;  %v3988_v6 = vadd.f32 %v469_v51, %v3904_v25  ;;  %v3206_v51 = vpop.eup %3205  ;;  %v1745_v54 = vsub.f32 0.0, %v849_v0  ;;  %v913_v17 = vmul.f32 0.3275911, %v849_v0 }
 0x16b   : > { %v1417_v24 = vmul.f32 %v3920_v44, %v1353_v14  ;;  %v971_v14 = vadd.f32 1.0, %v907_v48  ;;  %v1806_v33 = vmul.f32 %v1742_v1, %v846_v43  ;;  %v634_v43 = vpop.f32.mrf.mxu1  ;;  %v4010_v56 = vpop.eup %3207 }
 0x16c   : > { %v1479_v31 = vadd.f32 -0.28449672, %v1415_v18  ;;  %v973_v18 = vadd.f32 1.0, %v909_v55  ;;  %v3996_v10 = vmul.f32 0.70710677, %v3988_v6  ;;  %v4016_v62 = vadd.f32 %v634_v43, %v3888_v4  ;;  %v475_v1 = vpop.f32.mrf.mxu0  ;;  %v4022_v7 = vpop.eup %3209 }
 0x16d   : > { %v1481_v40 = vadd.f32 -0.28449672, %v1417_v24  ;;  %3215 = vrcp.f32 %v971_v14  ;;  %v1877_v5 = vmul.f32 1.442695, %v1806_v33  ;;  %v4038_v26 = vpop.eup %3211  ;;  %v4048_v43 = vmul.f32 0.5, %v3992_v21 }
 0x16e   : > { %v1543_v39 = vmul.f32 %v3917_v42, %v1479_v31  ;;  %5671 = vst [vmem:[#allocation20_spill] sm:$0xff] %v3996_v10  ;;  %v4002_v31 = vadd.f32 %v473_v22, %v3886_v3  ;;  %3217 = vpow2.f32 %v1871_v15  ;;  %v848_v55 = vand.u32 2147483647, %v3996_v10 }
 0x16f   : > { %v1545_v59 = vmul.f32 %v3920_v44, %v1481_v40  ;;  %v1873_v40 = vmul.f32 1.442695, %v1804_v20  ;;  %3219 = vrcp.f32 %v973_v18  ;;  %v1809_v18 = vmul.f32 %v1745_v54, %v849_v0  ;;  %5679 = vst [vmem:[#allocation28_spill] sm:$0xff] %v4048_v43 }
 0x170   : > { %v1607_v23 = vadd.f32 0.2548296, %v1543_v39  ;;  %3221 = vrcp.f32 %v972_v30  ;;  %v911_v39 = vmul.f32 0.3275911, %v847_v57  ;;  %v1744_v20 = vsub.f32 0.0, %v848_v55 }
 0x171   : > { %v1609_v24 = vadd.f32 0.2548296, %v1545_v59  ;;  %3223 = vpow2.f32 %v1875_v35  ;;  %v4013_v59 = vmul.f32 0.70710677, %v4002_v31  ;;  %v4033_v22 = vmul.f32 0.70710677, %v4016_v62 }
 0x172   : > { %v1671_v48 = vmul.f32 %v3917_v42, %v1607_v23  ;;  %3225 = vpow2.f32 %v1873_v40  ;;  %v4019_v42 = vmul.f32 0.5, %v3964_v38  ;;  %v975_v38 = vadd.f32 1.0, %v911_v39 }
 0x173   : > { %v1673_v49 = vmul.f32 %v3920_v44, %v1609_v24  ;;  %5674 = vst [vmem:[#allocation23_spill] sm:$0xff] %v4013_v59  ;;  %v1807_v44 = vmul.f32 %v1743_v41, %v847_v57  ;;  %3227 = vrcp.f32 %v974_v50  ;;  %v851_v57 = vand.u32 2147483647, %v4013_v59  ;;  %5677 = vst [vmem:[#allocation26_spill] sm:$0xff] %v4033_v22  ;;  %v636_v24 = vpop.f32.mrf.mxu1 }
 0x174   : > { %5675 = vst [vmem:[#allocation24_spill] sm:$0xff] %v4019_v42  ;;  %v4024_v14 = vmul.f32 %v3204_v47, %v1671_v48  ;;  %3229 = vpow2.f32 %v1877_v5  ;;  %v4036_v23 = vadd.f32 %v475_v1, %v3904_v25  ;;  %v4043_v30 = vmul.f32 0.5, %v3988_v6  ;;  %v4050_v47 = vpop.eup %3213  ;;  %v479_v6 = vpop.f32.mrf.mxu0 }
 0x175   : > { %v4026_v15 = vmul.f32 %v3206_v51, %v1673_v49  ;;  %v1879_v45 = vmul.f32 1.442695, %v1807_v44  ;;  %v912_v33 = vmul.f32 0.3275911, %v848_v55  ;;  %v1746_v0 = vsub.f32 0.0, %v850_v63  ;;  %v640_v44 = vpop.f32.mrf.mxu1 }
 0x176   : > { %5678 = vst [vmem:[#allocation27_spill] sm:$0xff] %v4043_v30  ;;  %v2055_v35 = vsub.f32 1.0, %v4024_v14  ;;  %v977_v41 = vadd.f32 1.0, %v913_v17  ;;  %v1883_v48 = vmul.f32 1.442695, %v1809_v18  ;;  %v1808_v49 = vmul.f32 %v1744_v20, %v848_v55 }
 0x177   : > { %v2057_v40 = vsub.f32 1.0, %v4026_v15  ;;  %v914_v50 = vmul.f32 0.3275911, %v850_v63  ;;  %v4053_v51 = vadd.f32 %v636_v24, %v3906_v29  ;;  %3231 = vrcp.f32 %v975_v38  ;;  %v642_v12 = vpop.f32.mrf.mxu1 }
 0x178   : > { %v1747_v5 = vsub.f32 0.0, %v851_v57  ;;  %v853_v54 = vand.u32 2147483647, %v4033_v22  ;;  %v4057_v39 = vmul.f32 0.70710677, %v4036_v23  ;;  %3233 = vpow2.f32 %v1879_v45 }
 0x179   : > { %v976_v21 = vadd.f32 1.0, %v912_v33  ;;  %v1810_v14 = vmul.f32 %v1746_v0, %v850_v63  ;;  %v915_v15 = vmul.f32 0.3275911, %v851_v57  ;;  %v2183_v17 = vsub.f32 0.0, %v2055_v35  ;;  %v481_v63 = vpop.f32.mrf.mxu0 }
 0x17a   : > { %5680 = vst [vmem:[#allocation29_spill] sm:$0xff] %v4057_v39  ;;  %v4059_v1 = vpop.eup %3215  ;;  %v2185_v18 = vsub.f32 0.0, %v2057_v40  ;;  %3235 = vrcp.f32 %v977_v41  ;;  %v4064_v20 = vadd.f32 %v479_v6, %v3886_v3  ;;  %v1881_v24 = vmul.f32 1.442695, %v1808_v49 }
 0x17b   : > { %v4061_v55 = vpop.eup %3217  ;;  %3237 = vpow2.f32 %v1883_v48  ;;  %v4069_v53 = vmul.f32 0.70710677, %v4053_v51  ;;  %v4072_v45 = vadd.f32 %v640_v44, %v3888_v4  ;;  %v978_v0 = vadd.f32 1.0, %v914_v50  ;;  %v485_v2 = vpop.f32.mrf.mxu0 }
 0x17c   : > { %v4066_v38 = vpop.eup %3219  ;;  %v1811_v42 = vmul.f32 %v1747_v5, %v851_v57  ;;  %v1749_v22 = vsub.f32 0.0, %v853_v54  ;;  %v852_v41 = vand.u32 2147483647, %v4057_v39  ;;  %3239 = vrcp.f32 %v976_v21 }
 0x17d   : > { %5681 = vst [vmem:[#allocation30_spill] sm:$0xff] %v4069_v53  ;;  %v4074_v33 = vpop.eup %3221  ;;  %v1885_v59 = vmul.f32 1.442695, %v1810_v14  ;;  %v4080_v48 = vmul.f32 0.5, %v4002_v31  ;;  %v979_v49 = vadd.f32 1.0, %v915_v15  ;;  %v2247_v44 = vsel %vm2119_vm0, %v2183_v17, %v2055_v35 }
 0x17e   : > { %v4077_v6 = vpop.eup %3223  ;;  %v2249_v50 = vsel %vm2121_vm1, %v2185_v18, %v2057_v40  ;;  %v4089_v57 = vmul.f32 0.70710677, %v4064_v20  ;;  %v4092_v5 = vadd.f32 %v481_v63, %v3904_v25  ;;  %3241 = vpow2.f32 %v1881_v24 }
 0x17f   : > { %5682 = vst [vmem:[#allocation31_spill] sm:$0xff] %v4080_v48  ;;  %v4082_v43 = vpop.eup %3225  ;;  %v917_v31 = vmul.f32 0.3275911, %v853_v54  ;;  %v854_v14 = vand.u32 2147483647, %v4069_v53  ;;  %3243 = vrcp.f32 %v978_v0  ;;  %v1813_v40 = vmul.f32 %v1749_v22, %v853_v54 }
 0x180   : > { %5683 = vst [vmem:[#allocation32_spill] sm:$0xff] %v4089_v57  ;;  %v4094_v21 = vpop.eup %3227  ;;  %v4098_v15 = vmul.f32 0.70710677, %v4072_v45  ;;  %v1887_v13 = vmul.f32 1.442695, %v1811_v42  ;;  %v1748_v17 = vsub.f32 0.0, %v852_v41  ;;  %3245 = vpow2.f32 %v1885_v59 }
 0x181   : > { %v4100_v35 = vpop.eup %3229  ;;  %v2311_v18 = vadd.f32 1.0, %v2247_v44  ;;  %v2313_v48 = vadd.f32 1.0, %v2249_v50  ;;  %v4103_v63 = vmul.f32 0.5, %v4016_v62  ;;  %3247 = vrcp.f32 %v979_v49  ;;  %v646_v44 = vpop.f32.mrf.mxu1 }
 0x182   : > { %5684 = vst [vmem:[#allocation33_spill] sm:$0xff] %v4098_v15  ;;  %v855_v24 = vand.u32 2147483647, %v4089_v57  ;;  %v4107_v53 = vmul.f32 0.70710677, %v4092_v5  ;;  %v4110_v39 = vadd.f32 %v642_v12, %v3906_v29  ;;  %v981_v0 = vadd.f32 1.0, %v917_v31 }
 0x183   : > { %5685 = vst [vmem:[#allocation34_spill] sm:$0xff] %v4103_v63  ;;  %v916_v42 = vmul.f32 0.3275911, %v852_v41  ;;  %v1750_v22 = vsub.f32 0.0, %v854_v14  ;;  %v857_v54 = vand.u32 2147483647, %v4098_v15  ;;  %3249 = vpow2.f32 %v1887_v13  ;;  %v648_v30 = vpop.f32.mrf.mxu1 }
 0x184   : > { %5686 = vst [vmem:[#allocation35_spill] sm:$0xff] %v4107_v53  ;;  %v1891_v59 = vmul.f32 1.442695, %v1813_v40  ;;  %v4114_v62 = vmul.f32 0.5, %v4036_v23  ;;  %v1812_v49 = vmul.f32 %v1748_v17, %v852_v41  ;;  %v4116_v50 = vpop.eup %3231  ;;  %v4119_v57 = vmul.f32 %v2311_v18, %v3944_v11  ;;  %v487_v11 = vpop.f32.mrf.mxu0 }
 0x185   : > { %v4122_v12 = vmul.f32 %v2313_v48, %v3951_v19  ;;  %v918_v31 = vmul.f32 0.3275911, %v854_v14  ;;  %v4125_v63 = vadd.f32 %v485_v2, %v3886_v3  ;;  %v4127_v15 = vpop.eup %3233  ;;  %v1751_v13 = vsub.f32 0.0, %v855_v24 }
 0x186   : > { %5687 = vst [vmem:[#allocation36_spill] sm:$0xff] %v4114_v62  ;;  %5688 = vst [vmem:[#allocation37_spill] sm:$0xff] %v4127_v15  ;;  %v856_v40 = vand.u32 2147483647, %v4107_v53  ;;  %v4131_v23 = vmul.f32 0.70710677, %v4110_v39  ;;  %v4134_v41 = vadd.f32 %v646_v44, %v3888_v4  ;;  %3251 = vrcp.f32 %v981_v0 }
 0x187   : > { %v4136_v17 = vpop.eup %3235  ;;  %v980_v19 = vadd.f32 1.0, %v916_v42  ;;  %v1814_v48 = vmul.f32 %v1750_v22, %v854_v14  ;;  %v1753_v18 = vsub.f32 0.0, %v857_v54  ;;  %3253 = vpow2.f32 %v1891_v59 }
 0x188   : > { %5689 = vst [vmem:[#allocation38_spill] sm:$0xff] %v4131_v23  ;;  %5690 = vst [vmem:[#allocation39_spill] sm:$0xff] %v4136_v17  ;;  %v4138_v2 = vpop.eup %3237  ;;  %v1889_v62 = vmul.f32 1.442695, %v1812_v49  ;;  %v4141_v15 = vmul.f32 0.5, %v4053_v51  ;;  %v982_v58 = vadd.f32 1.0, %v918_v31  ;;  %v4147_v60 = vadd.f32 %v487_v11, %v3904_v25 }
 0x189   : > { %5691 = vst [vmem:[#allocation40_spill] sm:$0xff] %v4138_v2  ;;  %v919_v53 = vmul.f32 0.3275911, %v855_v24  ;;  %v921_v46 = vmul.f32 0.3275911, %v857_v54  ;;  %v4149_v0 = vpop.eup %3239  ;;  %v1815_v14 = vmul.f32 %v1751_v13, %v855_v24  ;;  %v1752_v42 = vsub.f32 0.0, %v856_v40  ;;  %v491_v13 = vpop.f32.mrf.mxu0 }
 0x18a   : > { %5692 = vst [vmem:[#allocation41_spill] sm:$0xff] %v4141_v15  ;;  %v4144_v44 = vmul.f32 0.70710677, %v4125_v63  ;;  %v858_v22 = vand.u32 2147483647, %v4131_v23  ;;  %3255 = vrcp.f32 %v980_v19  ;;  %v1817_v49 = vmul.f32 %v1753_v18, %v857_v54 }
 0x18b   : > { %v4153_v59 = vmul.f32 0.70710677, %v4134_v41  ;;  %v1893_v51 = vmul.f32 1.442695, %v1814_v48  ;;  %v4156_v31 = vadd.f32 %v648_v30, %v3906_v29  ;;  %v4158_v15 = vpop.eup %3241  ;;  %3257 = vpow2.f32 %v1889_v62 }
 0x18c   : > { %5693 = vst [vmem:[#allocation42_spill] sm:$0xff] %v4144_v44  ;;  %5695 = vst [vmem:[#allocation44_spill] sm:$0xff] %v4158_v15  ;;  %v4161_v11 = vmul.f32 0.5, %v4064_v20  ;;  %v983_v2 = vadd.f32 1.0, %v919_v53  ;;  %v920_v24 = vmul.f32 0.3275911, %v856_v40  ;;  %v4163_v10 = vpop.eup %3243  ;;  %3259 = vrcp.f32 %v982_v58 }
 0x18d   : > { %5694 = vst [vmem:[#allocation43_spill] sm:$0xff] %v4153_v59  ;;  %v985_v23 = vadd.f32 1.0, %v921_v46  ;;  %v859_v19 = vand.u32 2147483647, %v4144_v44  ;;  %v4167_v54 = vmul.f32 0.70710677, %v4147_v60  ;;  %v4169_v30 = vpop.eup %3245  ;;  %v1816_v18 = vmul.f32 %v1752_v42, %v856_v40  ;;  %v652_v44 = vpop.f32.mrf.mxu1 }
 0x18e   : > { %5696 = vst [vmem:[#allocation45_spill] sm:$0xff] %v4161_v11  ;;  %5698 = vst [vmem:[#allocation47_spill] sm:$0xff] %v4169_v30  ;;  %v1895_v48 = vmul.f32 1.442695, %v1815_v14  ;;  %v1754_v62 = vsub.f32 0.0, %v858_v22  ;;  %v4172_v11 = vpop.eup %3247  ;;  %3261 = vpow2.f32 %v1893_v51  ;;  %v4178_v58 = vadd.f32 %v491_v13, %v3886_v3 }
 0x18f   : > { %5697 = vst [vmem:[#allocation46_spill] sm:$0xff] %v4167_v54  ;;  %v861_v20 = vand.u32 2147483647, %v4153_v59  ;;  %5699 = vst [vmem:[#allocation48_spill] sm:$0xff] %v4172_v11  ;;  %v1899_v53 = vmul.f32 1.442695, %v1817_v49  ;;  %3263 = vrcp.f32 %v983_v2  ;;  %v493_v2 = vpop.f32.mrf.mxu0 }
 0x190   : > { %v4175_v15 = vmul.f32 0.70710677, %v4156_v31  ;;  %v4181_v46 = vmul.f32 0.5, %v4072_v45  ;;  %v4184_v14 = vmul.f32 0.5, %v4092_v5  ;;  %v984_v40 = vadd.f32 1.0, %v920_v24  ;;  %v4186_v42 = vpop.eup %3249 }
 0x191   : > { %5703 = vst [vmem:[#allocation52_spill] sm:$0xff] %v4186_v42  ;;  %3265 = vrcp.f32 %v985_v23  ;;  %v922_v59 = vmul.f32 0.3275911, %v858_v22  ;;  %v1755_v51 = vsub.f32 0.0, %v859_v19  ;;  %v860_v49 = vand.u32 2147483647, %v4167_v54  ;;  %v654_v54 = vpop.f32.mrf.mxu1 }
 0x192   : > { %5700 = vst [vmem:[#allocation49_spill] sm:$0xff] %v4175_v15  ;;  %5701 = vst [vmem:[#allocation50_spill] sm:$0xff] %v4181_v46  ;;  %3267 = vpow2.f32 %v1895_v48  ;;  %v1897_v30 = vmul.f32 1.442695, %v1816_v18  ;;  %v1818_v13 = vmul.f32 %v1754_v62, %v858_v22  ;;  %v1757_v11 = vsub.f32 0.0, %v861_v20 }
 0x193   : > { %5702 = vst [vmem:[#allocation51_spill] sm:$0xff] %v4184_v14  ;;  %3269 = vpow2.f32 %v1899_v53  ;;  %v923_v45 = vmul.f32 0.3275911, %v859_v19  ;;  %v862_v46 = vand.u32 2147483647, %v4175_v15  ;;  %v4193_v24 = vpop.eup %3251  ;;  %v4196_v23 = vmul.f32 0.5, %v4110_v39 }
 0x194   : > { %v4191_v5 = vmul.f32 0.70710677, %v4178_v58  ;;  %5705 = vst [vmem:[#allocation54_spill] sm:$0xff] %v4193_v24  ;;  %3271 = vrcp.f32 %v984_v40  ;;  %v925_v14 = vmul.f32 0.3275911, %v861_v20  ;;  %v4199_v48 = vadd.f32 %v652_v44, %v3888_v4  ;;  %v4201_v22 = vpop.eup %3253 }
 0x195   : > { %5706 = vst [vmem:[#allocation55_spill] sm:$0xff] %v4196_v23  ;;  %5707 = vst [vmem:[#allocation56_spill] sm:$0xff] %v4201_v22  ;;  %v986_v18 = vadd.f32 1.0, %v922_v59  ;;  %v1819_v62 = vmul.f32 %v1755_v51, %v859_v19  ;;  %v1756_v53 = vsub.f32 0.0, %v860_v49  ;;  %v4204_v15 = vadd.f32 %v493_v2, %v3904_v25  ;;  %v497_v59 = vpop.f32.mrf.mxu0 }
 0x196   : > { %5704 = vst [vmem:[#allocation53_spill] sm:$0xff] %v4191_v5  ;;  %3273 = vpow2.f32 %v1897_v30  ;;  %v1901_v42 = vmul.f32 1.442695, %v1818_v13  ;;  %v4207_v40 = vmul.f32 0.5, %v4125_v63  ;;  %v1821_v39 = vmul.f32 %v1757_v11, %v861_v20 }
 0x197   : > { %v987_v23 = vadd.f32 1.0, %v923_v45  ;;  %v4210_v24 = vmul.f32 0.5, %v4134_v41  ;;  %v1758_v44 = vsub.f32 0.0, %v862_v46  ;;  %v863_v22 = vand.u32 2147483647, %v4191_v5  ;;  %v4213_v19 = vpop.eup %3255 }
 0x198   : > { %5708 = vst [vmem:[#allocation57_spill] sm:$0xff] %v4207_v40  ;;  %5710 = vst [vmem:[#allocation59_spill] sm:$0xff] %v4213_v19  ;;  %v989_v51 = vadd.f32 1.0, %v925_v14  ;;  %v924_v2 = vmul.f32 0.3275911, %v860_v49  ;;  %v4219_v30 = vadd.f32 %v654_v54, %v3906_v29  ;;  %v4221_v63 = vpop.eup %3257  ;;  %3275 = vrcp.f32 %v986_v18  ;;  %v658_v18 = vpop.f32.mrf.mxu1 }
 0x199   : > { %5709 = vst [vmem:[#allocation58_spill] sm:$0xff] %v4210_v24  ;;  %v4216_v32 = vmul.f32 0.70710677, %v4199_v48  ;;  %5712 = vst [vmem:[#allocation61_spill] sm:$0xff] %v4221_v63  ;;  %v1903_v11 = vmul.f32 1.442695, %v1819_v62  ;;  %v1820_v41 = vmul.f32 %v1756_v53, %v860_v49  ;;  %v4226_v13 = vpop.eup %3259  ;;  %3277 = vpow2.f32 %v1901_v42 }
 0x19a   : > { %v4224_v20 = vmul.f32 0.70710677, %v4204_v15  ;;  %5714 = vst [vmem:[#allocation63_spill] sm:$0xff] %v4226_v13  ;;  %v1907_v45 = vmul.f32 1.442695, %v1821_v39  ;;  %v4229_v14 = vmul.f32 0.5, %v4147_v60  ;;  %v4232_v5 = vadd.f32 %v497_v59, %v3886_v3  ;;  %v499_v39 = vpop.f32.mrf.mxu0 }
 0x19b   : > { %5711 = vst [vmem:[#allocation60_spill] sm:$0xff] %v4216_v32  ;;  %3279 = vrcp.f32 %v987_v23  ;;  %v926_v54 = vmul.f32 0.3275911, %v862_v46  ;;  %v1822_v24 = vmul.f32 %v1758_v44, %v862_v46  ;;  %v1759_v40 = vsub.f32 0.0, %v863_v22  ;;  %v4234_v62 = vpop.eup %3261 }
 0x19c   : > { %5713 = vst [vmem:[#allocation62_spill] sm:$0xff] %v4224_v20  ;;  %5715 = vst [vmem:[#allocation64_spill] sm:$0xff] %v4229_v14  ;;  %3281 = vrcp.f32 %v989_v51  ;;  %v988_v49 = vadd.f32 1.0, %v924_v2  ;;  %v865_v53 = vand.u32 2147483647, %v4216_v32  ;;  %v4240_v60 = vpop.eup %3263  ;;  %v4246_v44 = vmul.f32 0.5, %v4156_v31 }
 0x19d   : > { %5716 = vst [vmem:[#allocation65_spill] sm:$0xff] %v4234_v62  ;;  %v4238_v42 = vmul.f32 0.70710677, %v4219_v30  ;;  %5718 = vst [vmem:[#allocation67_spill] sm:$0xff] %v4240_v60  ;;  %3283 = vpow2.f32 %v1903_v11  ;;  %v1905_v59 = vmul.f32 1.442695, %v1820_v41  ;;  %v4252_v2 = vadd.f32 %v658_v18, %v3888_v4 }
 0x19e   : > { %v927_v14 = vmul.f32 0.3275911, %v863_v22  ;;  %v864_v23 = vand.u32 2147483647, %v4224_v20  ;;  %v4243_v46 = vpop.eup %3265  ;;  %3285 = vpow2.f32 %v1907_v45  ;;  %5720 = vst [vmem:[#allocation69_spill] sm:$0xff] %v4246_v44  ;;  %v990_v60 = vadd.f32 1.0, %v926_v54  ;;  %v660_v20 = vpop.f32.mrf.mxu1 }
 0x19f   : > { %5717 = vst [vmem:[#allocation66_spill] sm:$0xff] %v4238_v42  ;;  %5719 = vst [vmem:[#allocation68_spill] sm:$0xff] %v4243_v46  ;;  %v4249_v51 = vmul.f32 0.70710677, %v4232_v5  ;;  %v4254_v32 = vpop.eup %3267  ;;  %v1909_v11 = vmul.f32 1.442695, %v1822_v24  ;;  %v1823_v41 = vmul.f32 %v1759_v40, %v863_v22  ;;  %v4257_v62 = vadd.f32 %v499_v39, %v3904_v25 }
 0x1a0   : > { %5722 = vst [vmem:[#allocation71_spill] sm:$0xff] %v4254_v32  ;;  %v4259_v46 = vpop.eup %3269  ;;  %3287 = vrcp.f32 %v988_v49  ;;  %v929_v31 = vmul.f32 0.3275911, %v865_v53  ;;  %v1761_v45 = vsub.f32 0.0, %v865_v53  ;;  %v866_v44 = vand.u32 2147483647, %v4238_v42 }
 0x1a1   : > { %5721 = vst [vmem:[#allocation70_spill] sm:$0xff] %v4249_v51  ;;  %5723 = vst [vmem:[#allocation72_spill] sm:$0xff] %v4259_v46  ;;  %v4262_v63 = vpop.eup %3271  ;;  %3289 = vpow2.f32 %v1905_v59  ;;  %v4265_v18 = vmul.f32 0.5, %v4178_v58  ;;  %v991_v54 = vadd.f32 1.0, %v927_v14  ;;  %v928_v24 = vmul.f32 0.3275911, %v864_v23  ;;  %v503_v46 = vpop.f32.mrf.mxu0 }
 0x1a2   : > { %5724 = vst [vmem:[#allocation73_spill] sm:$0xff] %v4262_v63  ;;  %v1760_v22 = vsub.f32 0.0, %v864_v23  ;;  %v867_v40 = vand.u32 2147483647, %v4249_v51  ;;  %v4269_v39 = vmul.f32 0.70710677, %v4252_v2  ;;  %v4272_v49 = vadd.f32 %v660_v20, %v3906_v29  ;;  %v664_v63 = vpop.f32.mrf.mxu1 }
 0x1a3   : > { %5725 = vst [vmem:[#allocation74_spill] sm:$0xff] %v4265_v18  ;;  %v4274_v32 = vpop.eup %3273  ;;  %3291 = vrcp.f32 %v990_v60  ;;  %v1911_v42 = vmul.f32 1.442695, %v1823_v41  ;;  %v4277_v59 = vmul.f32 0.5, %v4199_v48  ;;  %v4280_v58 = vmul.f32 0.70710677, %v4257_v62 }
 0x1a4   : > { %5726 = vst [vmem:[#allocation75_spill] sm:$0xff] %v4269_v39  ;;  %5727 = vst [vmem:[#allocation76_spill] sm:$0xff] %v4274_v32  ;;  %3293 = vpow2.f32 %v1909_v11  ;;  %v993_v14 = vadd.f32 1.0, %v929_v31  ;;  %v1825_v18 = vmul.f32 %v1761_v45, %v865_v53  ;;  %v1762_v51 = vsub.f32 0.0, %v866_v44  ;;  %v505_v53 = vpop.f32.mrf.mxu0 }
 0x1a5   : > { %5728 = vst [vmem:[#allocation77_spill] sm:$0xff] %v4277_v59  ;;  %5729 = vst [vmem:[#allocation78_spill] sm:$0xff] %v4280_v58  ;;  %3295 = vrcp.f32 %v991_v54  ;;  %v4283_v20 = vmul.f32 0.5, %v4204_v15  ;;  %v992_v13 = vadd.f32 1.0, %v928_v24  ;;  %v4286_v32 = vadd.f32 %v503_v46, %v3886_v3  ;;  %v4288_v60 = vpop.eup %3275 }
 0x1a6   : > { %5731 = vst [vmem:[#allocation80_spill] sm:$0xff] %v4288_v60  ;;  %v1824_v48 = vmul.f32 %v1760_v22, %v864_v23  ;;  %v1763_v41 = vsub.f32 0.0, %v867_v40  ;;  %v869_v59 = vand.u32 2147483647, %v4269_v39  ;;  %v4292_v11 = vmul.f32 0.70710677, %v4272_v49  ;;  %v4294_v31 = vpop.eup %3277 }
 0x1a7   : > { %5730 = vst [vmem:[#allocation79_spill] sm:$0xff] %v4283_v20  ;;  %5733 = vst [vmem:[#allocation82_spill] sm:$0xff] %v4294_v31  ;;  %3297 = vpow2.f32 %v1911_v42  ;;  %v930_v45 = vmul.f32 0.3275911, %v866_v44  ;;  %v868_v15 = vand.u32 2147483647, %v4280_v58  ;;  %v4298_v54 = vadd.f32 %v664_v63, %v3888_v4 }
 0x1a8   : > { %5732 = vst [vmem:[#allocation81_spill] sm:$0xff] %v4292_v11  ;;  %v4300_v46 = vpop.eup %3279  ;;  %3299 = vrcp.f32 %v993_v14  ;;  %v1915_v23 = vmul.f32 1.442695, %v1825_v18  ;;  %v4303_v24 = vmul.f32 0.5, %v4219_v30  ;;  %v1826_v22 = vmul.f32 %v1762_v51, %v866_v44  ;;  %v666_v30 = vpop.f32.mrf.mxu1 }
 0x1a9   : > { %5734 = vst [vmem:[#allocation83_spill] sm:$0xff] %v4300_v46  ;;  %v4305_v39 = vpop.eup %3281  ;;  %3301 = vrcp.f32 %v992_v13  ;;  %v931_v20 = vmul.f32 0.3275911, %v867_v40  ;;  %v4308_v42 = vmul.f32 0.70710677, %v4286_v32  ;;  %v4311_v58 = vadd.f32 %v505_v53, %v3904_v25 }
 0x1aa   : > { %5735 = vst [vmem:[#allocation84_spill] sm:$0xff] %v4303_v24  ;;  %5736 = vst [vmem:[#allocation85_spill] sm:$0xff] %v4305_v39  ;;  %v4313_v63 = vpop.eup %3283  ;;  %v1913_v31 = vmul.f32 1.442695, %v1824_v48  ;;  %v1827_v46 = vmul.f32 %v1763_v41, %v867_v40  ;;  %v1765_v14 = vsub.f32 0.0, %v869_v59  ;;  %v994_v44 = vadd.f32 1.0, %v930_v45 }
 0x1ab   : > { %5737 = vst [vmem:[#allocation86_spill] sm:$0xff] %v4308_v42  ;;  %5738 = vst [vmem:[#allocation87_spill] sm:$0xff] %v4313_v63  ;;  %v870_v18 = vand.u32 2147483647, %v4292_v11  ;;  %v4316_v24 = vpop.eup %3285  ;;  %v933_v51 = vmul.f32 0.3275911, %v869_v59  ;;  %3303 = vpow2.f32 %v1915_v23  ;;  %v4331_v45 = vadd.f32 %v666_v30, %v3906_v29 }
 0x1ac   : > { %5739 = vst [vmem:[#allocation88_spill] sm:$0xff] %v4316_v24  ;;  %v1764_v13 = vsub.f32 0.0, %v868_v15  ;;  %v4319_v39 = vmul.f32 0.70710677, %v4298_v54  ;;  %v1917_v60 = vmul.f32 1.442695, %v1826_v22  ;;  %v509_v24 = vpop.f32.mrf.mxu0  ;;  %3305 = vpow2.f32 %v1913_v31 }
 0x1ad   : > { %v4322_v53 = vmul.f32 0.5, %v4232_v5  ;;  %v932_v63 = vmul.f32 0.3275911, %v868_v15  ;;  %v4324_v48 = vpop.eup %3287  ;;  %v995_v40 = vadd.f32 1.0, %v931_v20  ;;  %v871_v41 = vand.u32 2147483647, %v4308_v42 }
 0x1ae   : > { %5740 = vst [vmem:[#allocation89_spill] sm:$0xff] %v4319_v39  ;;  %5742 = vst [vmem:[#allocation91_spill] sm:$0xff] %v4324_v48  ;;  %v4328_v11 = vmul.f32 0.70710677, %v4311_v58  ;;  %v4333_v19 = vpop.eup %3289  ;;  %v1919_v23 = vmul.f32 1.442695, %v1827_v46  ;;  %v1829_v22 = vmul.f32 %v1765_v14, %v869_v59  ;;  %3307 = vrcp.f32 %v994_v44 }
 0x1af   : > { %5741 = vst [vmem:[#allocation90_spill] sm:$0xff] %v4322_v53  ;;  %5744 = vst [vmem:[#allocation93_spill] sm:$0xff] %v4333_v19  ;;  %v1766_v5 = vsub.f32 0.0, %v870_v18  ;;  %v997_v53 = vadd.f32 1.0, %v933_v51  ;;  %v1828_v17 = vmul.f32 %v1764_v13, %v868_v15  ;;  %v873_v20 = vand.u32 2147483647, %v4319_v39  ;;  %v670_v15 = vpop.f32.mrf.mxu1 }
 0x1b0   : > { %5743 = vst [vmem:[#allocation92_spill] sm:$0xff] %v4328_v11  ;;  %v4336_v48 = vpop.eup %3291  ;;  %3309 = vpow2.f32 %v1917_v60  ;;  %v996_v42 = vadd.f32 1.0, %v932_v63  ;;  %v934_v36 = vmul.f32 0.3275911, %v870_v18  ;;  %v4339_v30 = vadd.f32 %v509_v24, %v3886_v3 }
 0x1b1   : > { %v4341_v61 = vpop.eup %3293  ;;  %3311 = vrcp.f32 %v995_v40  ;;  %v1767_v31 = vsub.f32 0.0, %v871_v41  ;;  %v872_v59 = vand.u32 2147483647, %v4328_v11  ;;  %v4345_v46 = vmul.f32 0.70710677, %v4331_v45  ;;  %v511_v40 = vpop.f32.mrf.mxu0 }
 0x1b2   : > { %5745 = vst [vmem:[#allocation94_spill] sm:$0xff] %v4341_v61  ;;  %v4347_v14 = vpop.eup %3295  ;;  %3313 = vpow2.f32 %v1919_v23  ;;  %v4350_v60 = vmul.f32 0.5, %v4252_v2  ;;  %v1923_v63 = vmul.f32 1.442695, %v1829_v22  ;;  %v1830_v44 = vmul.f32 %v1766_v5, %v870_v18 }
 0x1b3   : > { %5746 = vst [vmem:[#allocation95_spill] sm:$0xff] %v4345_v46  ;;  %5747 = vst [vmem:[#allocation96_spill] sm:$0xff] %v4347_v14  ;;  %3315 = vrcp.f32 %v997_v53  ;;  %v4353_v24 = vmul.f32 0.5, %v4257_v62  ;;  %v1921_v51 = vmul.f32 1.442695, %v1828_v17  ;;  %v1769_v13 = vsub.f32 0.0, %v873_v20  ;;  %v672_v17 = vpop.f32.mrf.mxu1 }
 0x1b4   : > { %5748 = vst [vmem:[#allocation97_spill] sm:$0xff] %v4350_v60  ;;  %v4355_v39 = vpop.eup %3297  ;;  %3317 = vrcp.f32 %v996_v42  ;;  %v935_v11 = vmul.f32 0.3275911, %v871_v41  ;;  %v4358_v61 = vmul.f32 0.70710677, %v4339_v30  ;;  %v4361_v23 = vadd.f32 %v670_v15, %v3888_v4 }
 0x1b5   : > { %5749 = vst [vmem:[#allocation98_spill] sm:$0xff] %v4353_v24  ;;  %5750 = vst [vmem:[#allocation99_spill] sm:$0xff] %v4355_v39  ;;  %v4363_v2 = vpop.eup %3299  ;;  %v998_v18 = vadd.f32 1.0, %v934_v36  ;;  %v1831_v53 = vmul.f32 %v1767_v31, %v871_v41  ;;  %v1768_v22 = vsub.f32 0.0, %v872_v59  ;;  %v874_v62 = vand.u32 2147483647, %v4345_v46 }
 0x1b6   : > { %5751 = vst [vmem:[#allocation100_spill] sm:$0xff] %v4358_v61  ;;  %5752 = vst [vmem:[#allocation101_spill] sm:$0xff] %v4363_v2  ;;  %v4366_v5 = vpop.eup %3301  ;;  %3319 = vpow2.f32 %v1923_v63  ;;  %v1925_v60 = vmul.f32 1.442695, %v1830_v44  ;;  %v937_v42 = vmul.f32 0.3275911, %v873_v20  ;;  %v4369_v24 = vadd.f32 %v511_v40, %v3904_v25  ;;  %v515_v63 = vpop.f32.mrf.mxu0 }
 0x1b7   : > { %3321 = vpow2.f32 %v1921_v51  ;;  %v4372_v15 = vmul.f32 0.5, %v4272_v49  ;;  %v1833_v39 = vmul.f32 %v1769_v13, %v873_v20  ;;  %v936_v2 = vmul.f32 0.3275911, %v872_v59 }
 0x1b8   : > { %v999_v36 = vadd.f32 1.0, %v935_v11  ;;  %v875_v41 = vand.u32 2147483647, %v4358_v61  ;;  %v4376_v31 = vmul.f32 0.70710677, %v4361_v23  ;;  %v4379_v46 = vadd.f32 %v672_v17, %v3906_v29  ;;  %v4381_v44 = vpop.eup %3303 }
 0x1b9   : > { %5753 = vst [vmem:[#allocation102_spill] sm:$0xff] %v4372_v15  ;;  %5755 = vst [vmem:[#allocation104_spill] sm:$0xff] %v4381_v44  ;;  %3323 = vrcp.f32 %v998_v18  ;;  %v1927_v40 = vmul.f32 1.442695, %v1831_v53  ;;  %v1832_v51 = vmul.f32 %v1768_v22, %v872_v59  ;;  %v1770_v14 = vsub.f32 0.0, %v874_v62  ;;  %v4389_v13 = vpop.eup %3305  ;;  %v676_v53 = vpop.f32.mrf.mxu1 }
 0x1ba   : > { %5754 = vst [vmem:[#allocation103_spill] sm:$0xff] %v4376_v31  ;;  %3325 = vpow2.f32 %v1925_v60  ;;  %v4384_v49 = vmul.f32 0.5, %v4286_v32  ;;  %v1001_v11 = vadd.f32 1.0, %v937_v42  ;;  %v4387_v20 = vmul.f32 0.70710677, %v4369_v24  ;;  %5758 = vst [vmem:[#allocation107_spill] sm:$0xff] %v4389_v13  ;;  %v517_v44 = vpop.f32.mrf.mxu0 }
 0x1bb   : > { %v1931_v61 = vmul.f32 1.442695, %v1833_v39  ;;  %v1000_v17 = vadd.f32 1.0, %v936_v2  ;;  %v938_v15 = vmul.f32 0.3275911, %v874_v62  ;;  %v4392_v19 = vadd.f32 %v515_v63, %v3886_v3  ;;  %v4394_v18 = vpop.eup %3307 }
 0x1bc   : > { %5756 = vst [vmem:[#allocation105_spill] sm:$0xff] %v4384_v49  ;;  %5757 = vst [vmem:[#allocation106_spill] sm:$0xff] %v4387_v20  ;;  %3327 = vrcp.f32 %v999_v36  ;;  %v1771_v59 = vsub.f32 0.0, %v875_v41  ;;  %v877_v60 = vand.u32 2147483647, %v4376_v31  ;;  %v4403_v39 = vmul.f32 0.5, %v4298_v54 }
 0x1bd   : > { %5759 = vst [vmem:[#allocation108_spill] sm:$0xff] %v4394_v18  ;;  %v4398_v32 = vmul.f32 0.70710677, %v4379_v46  ;;  %v4400_v22 = vpop.eup %3309  ;;  %3329 = vpow2.f32 %v1927_v40  ;;  %v1929_v2 = vmul.f32 1.442695, %v1832_v51  ;;  %v1834_v42 = vmul.f32 %v1770_v14, %v874_v62 }
 0x1be   : > { %5761 = vst [vmem:[#allocation110_spill] sm:$0xff] %v4400_v22  ;;  %5762 = vst [vmem:[#allocation111_spill] sm:$0xff] %v4403_v39  ;;  %v4405_v63 = vpop.eup %3311  ;;  %3331 = vrcp.f32 %v1001_v11  ;;  %v939_v49 = vmul.f32 0.3275911, %v875_v41  ;;  %v876_v36 = vand.u32 2147483647, %v4387_v20  ;;  %v4417_v40 = vadd.f32 %v676_v53, %v3888_v4 }
 0x1bf   : > { %5760 = vst [vmem:[#allocation109_spill] sm:$0xff] %v4398_v32  ;;  %5763 = vst [vmem:[#allocation112_spill] sm:$0xff] %v4405_v63  ;;  %v4409_v31 = vmul.f32 0.70710677, %v4392_v19  ;;  %v4411_v13 = vpop.eup %3313  ;;  %v4414_v22 = vmul.f32 0.5, %v4311_v58  ;;  %3333 = vrcp.f32 %v1000_v17  ;;  %v1002_v54 = vadd.f32 1.0, %v938_v15  ;;  %v678_v17 = vpop.f32.mrf.mxu1 }
 0x1c0   : > { %5765 = vst [vmem:[#allocation114_spill] sm:$0xff] %v4411_v13  ;;  %v4419_v14 = vpop.eup %3315  ;;  %3335 = vpow2.f32 %v1931_v61  ;;  %v1835_v62 = vmul.f32 %v1771_v59, %v875_v41  ;;  %v1773_v51 = vsub.f32 0.0, %v877_v60  ;;  %v878_v11 = vand.u32 2147483647, %v4398_v32 }
 0x1c1   : > { %5764 = vst [vmem:[#allocation113_spill] sm:$0xff] %v4409_v31  ;;  %5766 = vst [vmem:[#allocation115_spill] sm:$0xff] %v4414_v22  ;;  %v4422_v39 = vpop.eup %3317  ;;  %3337 = vpow2.f32 %v1929_v2  ;;  %v1933_v20 = vmul.f32 1.442695, %v1834_v42  ;;  %v941_v13 = vmul.f32 0.3275911, %v877_v60  ;;  %v4425_v58 = vadd.f32 %v517_v44, %v3904_v25 }
 0x1c2   : > { %5767 = vst [vmem:[#allocation116_spill] sm:$0xff] %v4419_v14  ;;  %5768 = vst [vmem:[#allocation117_spill] sm:$0xff] %v4422_v39  ;;  %v1003_v15 = vadd.f32 1.0, %v939_v49  ;;  %v940_v22 = vmul.f32 0.3275911, %v876_v36  ;;  %v1772_v53 = vsub.f32 0.0, %v876_v36  ;;  %3339 = vrcp.f32 %v1002_v54 }
 0x1c3   : > { %v879_v63 = vand.u32 2147483647, %v4409_v31  ;;  %v4428_v14 = vpop.eup %3319  ;;  %v4431_v61 = vmul.f32 0.5, %v4331_v45  ;;  %v4434_v41 = vmul.f32 0.5, %v4339_v30  ;;  %v4437_v59 = vmul.f32 0.70710677, %v4417_v40  ;;  %v521_v31 = vpop.f32.mrf.mxu0 }
 0x1c4   : > { %5769 = vst [vmem:[#allocation118_spill] sm:$0xff] %v4428_v14  ;;  %v4439_v44 = vpop.eup %3321  ;;  %v1935_v2 = vmul.f32 1.442695, %v1835_v62  ;;  %v1837_v49 = vmul.f32 %v1773_v51, %v877_v60  ;;  %v1774_v42 = vsub.f32 0.0, %v878_v11  ;;  %v4442_v32 = vadd.f32 %v678_v17, %v3906_v29 }
 0x1c5   : > { %5770 = vst [vmem:[#allocation119_spill] sm:$0xff] %v4431_v61  ;;  %5771 = vst [vmem:[#allocation120_spill] sm:$0xff] %v4434_v41  ;;  %3341 = vpow2.f32 %v1933_v20  ;;  %v4445_v45 = vmul.f32 0.5, %v4361_v23  ;;  %v1005_v54 = vadd.f32 1.0, %v941_v13  ;;  %v4448_v30 = vmul.f32 0.70710677, %v4425_v58  ;;  %v682_v13 = vpop.f32.mrf.mxu1 }
 0x1c6   : > { %5772 = vst [vmem:[#allocation121_spill] sm:$0xff] %v4437_v59  ;;  %5773 = vst [vmem:[#allocation122_spill] sm:$0xff] %v4439_v44  ;;  %v4450_v41 = vpop.eup %3323  ;;  %3343 = vrcp.f32 %v1003_v15  ;;  %v1004_v61 = vadd.f32 1.0, %v940_v22  ;;  %v1836_v14 = vmul.f32 %v1772_v53, %v876_v36  ;;  %v1775_v62 = vsub.f32 0.0, %v879_v63  ;;  %v523_v36 = vpop.f32.mrf.mxu0 }
 0x1c7   : > { %5774 = vst [vmem:[#allocation123_spill] sm:$0xff] %v4445_v45  ;;  %5775 = vst [vmem:[#allocation124_spill] sm:$0xff] %v4448_v30  ;;  %v4452_v60 = vpop.eup %3325  ;;  %v942_v51 = vmul.f32 0.3275911, %v878_v11  ;;  %v881_v17 = vand.u32 2147483647, %v4437_v59  ;;  %v4459_v23 = vadd.f32 %v521_v31, %v3886_v3  ;;  %3345 = vpow2.f32 %v1935_v2 }
 0x1c8   : > { %5776 = vst [vmem:[#allocation125_spill] sm:$0xff] %v4450_v41  ;;  %5777 = vst [vmem:[#allocation126_spill] sm:$0xff] %v4452_v60  ;;  %v4456_v20 = vmul.f32 0.70710677, %v4442_v32  ;;  %v1939_v45 = vmul.f32 1.442695, %v1837_v49  ;;  %v1838_v22 = vmul.f32 %v1774_v42, %v878_v11  ;;  %3347 = vrcp.f32 %v1005_v54 }
 0x1c9   : > { %v4462_v44 = vmul.f32 0.5, %v4369_v24  ;;  %v4464_v15 = vpop.eup %3327  ;;  %v943_v53 = vmul.f32 0.3275911, %v879_v63  ;;  %v880_v59 = vand.u32 2147483647, %v4448_v30  ;;  %3349 = vrcp.f32 %v1004_v61 }
 0x1ca   : > { %5778 = vst [vmem:[#allocation127_spill] sm:$0xff] %v4456_v20  ;;  %5780 = vst [vmem:[#allocation129_spill] sm:$0xff] %v4464_v15  ;;  %v4468_v60 = vmul.f32 0.70710677, %v4459_v23  ;;  %v4470_v41 = vpop.eup %3329  ;;  %v1937_v31 = vmul.f32 1.442695, %v1836_v14  ;;  %v1839_v2 = vmul.f32 %v1775_v62, %v879_v63  ;;  %v4473_v49 = vadd.f32 %v682_v13, %v3888_v4 }
 0x1cb   : > { %5779 = vst [vmem:[#allocation128_spill] sm:$0xff] %v4462_v44  ;;  %5782 = vst [vmem:[#allocation131_spill] sm:$0xff] %v4470_v41  ;;  %v4475_v24 = vpop.eup %3331  ;;  %v1006_v11 = vadd.f32 1.0, %v942_v51  ;;  %v1777_v42 = vsub.f32 0.0, %v881_v17  ;;  %v882_v54 = vand.u32 2147483647, %v4456_v20  ;;  %v4479_v44 = vadd.f32 %v523_v36, %v3904_v25 }
 0x1cc   : > { %5781 = vst [vmem:[#allocation130_spill] sm:$0xff] %v4468_v60  ;;  %5783 = vst [vmem:[#allocation132_spill] sm:$0xff] %v4475_v24  ;;  %v4481_v30 = vpop.eup %3333  ;;  %3351 = vpow2.f32 %v1939_v45  ;;  %v1941_v15 = vmul.f32 1.442695, %v1838_v22  ;;  %v945_v41 = vmul.f32 0.3275911, %v881_v17  ;;  %v684_v24 = vpop.f32.mrf.mxu1 }
 0x1cd   : > { %5784 = vst [vmem:[#allocation133_spill] sm:$0xff] %v4481_v30  ;;  %v4484_v14 = vmul.f32 0.70710677, %v4473_v49  ;;  %v4486_v63 = vpop.eup %3335  ;;  %v1007_v61 = vadd.f32 1.0, %v943_v53  ;;  %v944_v62 = vmul.f32 0.3275911, %v880_v59  ;;  %3353 = vpow2.f32 %v1937_v31 }
 0x1ce   : > { %5786 = vst [vmem:[#allocation135_spill] sm:$0xff] %v4486_v63  ;;  %v1776_v13 = vsub.f32 0.0, %v880_v59  ;;  %v883_v51 = vand.u32 2147483647, %v4468_v60  ;;  %v4489_v20 = vpop.eup %3337  ;;  %v4492_v36 = vmul.f32 0.5, %v4379_v46  ;;  %v4495_v45 = vmul.f32 0.5, %v4392_v19  ;;  %v527_v46 = vpop.f32.mrf.mxu0 }
 0x1cf   : > { %5785 = vst [vmem:[#allocation134_spill] sm:$0xff] %v4484_v14  ;;  %5787 = vst [vmem:[#allocation136_spill] sm:$0xff] %v4489_v20  ;;  %v1943_v22 = vmul.f32 1.442695, %v1839_v2  ;;  %3355 = vrcp.f32 %v1006_v11  ;;  %v1841_v30 = vmul.f32 %v1777_v42, %v881_v17  ;;  %v1778_v39 = vsub.f32 0.0, %v882_v54  ;;  %v4500_v63 = vpop.eup %3339 }
 0x1d0   : > { %5788 = vst [vmem:[#allocation137_spill] sm:$0xff] %v4492_v36  ;;  %5789 = vst [vmem:[#allocation138_spill] sm:$0xff] %v4495_v45  ;;  %v4498_v53 = vmul.f32 0.70710677, %v4479_v44  ;;  %3357 = vpow2.f32 %v1941_v15  ;;  %v1009_v60 = vadd.f32 1.0, %v945_v41  ;;  %v4504_v31 = vadd.f32 %v684_v24, %v3906_v29 }
 0x1d1   : > { %5791 = vst [vmem:[#allocation140_spill] sm:$0xff] %v4500_v63  ;;  %v885_v20 = vand.u32 2147483647, %v4484_v14  ;;  %3359 = vrcp.f32 %v1007_v61  ;;  %v1008_v19 = vadd.f32 1.0, %v944_v62  ;;  %v1840_v45 = vmul.f32 %v1776_v13, %v880_v59  ;;  %v688_v59 = vpop.f32.mrf.mxu1 }
 0x1d2   : > { %5790 = vst [vmem:[#allocation139_spill] sm:$0xff] %v4498_v53  ;;  %v1779_v2 = vsub.f32 0.0, %v883_v51  ;;  %v4506_v11 = vpop.eup %3341  ;;  %3361 = vpow2.f32 %v1943_v22  ;;  %v4509_v17 = vmul.f32 0.5, %v4417_v40  ;;  %v946_v42 = vmul.f32 0.3275911, %v882_v54  ;;  %v529_v22 = vpop.f32.mrf.mxu0 }
 0x1d3   : > { %5792 = vst [vmem:[#allocation141_spill] sm:$0xff] %v4506_v11  ;;  %v4512_v15 = vmul.f32 0.70710677, %v4504_v31  ;;  %v4514_v41 = vpop.eup %3343  ;;  %v1947_v14 = vmul.f32 1.442695, %v1841_v30  ;;  %v1842_v24 = vmul.f32 %v1778_v39, %v882_v54  ;;  %v4518_v61 = vadd.f32 %v527_v46, %v3886_v3 }
 0x1d4   : > { %5793 = vst [vmem:[#allocation142_spill] sm:$0xff] %v4509_v17  ;;  %5795 = vst [vmem:[#allocation144_spill] sm:$0xff] %v4514_v41  ;;  %v884_v36 = vand.u32 2147483647, %v4498_v53  ;;  %3363 = vrcp.f32 %v1009_v60  ;;  %v4521_v62 = vmul.f32 0.5, %v4425_v58  ;;  %v1781_v13 = vsub.f32 0.0, %v885_v20  ;;  %v4523_v17 = vpop.eup %3345 }
 0x1d5   : > { %5794 = vst [vmem:[#allocation143_spill] sm:$0xff] %v4512_v15  ;;  %v947_v40 = vmul.f32 0.3275911, %v883_v51  ;;  %5797 = vst [vmem:[#allocation146_spill] sm:$0xff] %v4523_v17  ;;  %3365 = vrcp.f32 %v1008_v19  ;;  %v1945_v11 = vmul.f32 1.442695, %v1840_v45  ;;  %v1843_v41 = vmul.f32 %v1779_v2, %v883_v51  ;;  %v4528_v30 = vpop.eup %3347 }
 0x1d6   : > { %5796 = vst [vmem:[#allocation145_spill] sm:$0xff] %v4521_v62  ;;  %v4526_v39 = vmul.f32 0.70710677, %v4518_v61  ;;  %5799 = vst [vmem:[#allocation148_spill] sm:$0xff] %v4528_v30  ;;  %v1010_v54 = vadd.f32 1.0, %v946_v42  ;;  %v4532_v58 = vadd.f32 %v688_v59, %v3888_v4  ;;  %v4534_v62 = vpop.eup %3349  ;;  %3367 = vpow2.f32 %v1947_v14  ;;  %v690_v14 = vpop.f32.mrf.mxu1 }
 0x1d7   : > { %v949_v46 = vmul.f32 0.3275911, %v885_v20  ;;  %v886_v60 = vand.u32 2147483647, %v4512_v15  ;;  %5800 = vst [vmem:[#allocation149_spill] sm:$0xff] %v4534_v62  ;;  %v4537_v45 = vadd.f32 %v529_v22, %v3904_v25  ;;  %v1011_v51 = vadd.f32 1.0, %v947_v40 }
 0x1d8   : > { %5798 = vst [vmem:[#allocation147_spill] sm:$0xff] %v4526_v39  ;;  %v1949_v53 = vmul.f32 1.442695, %v1842_v24  ;;  %v948_v17 = vmul.f32 0.3275911, %v884_v36  ;;  %v1845_v19 = vmul.f32 %v1781_v13, %v885_v20  ;;  %v1780_v2 = vsub.f32 0.0, %v884_v36 }
 0x1d9   : > { %v4540_v30 = vmul.f32 0.70710677, %v4532_v58  ;;  %v4542_v42 = vpop.eup %3351  ;;  %3369 = vpow2.f32 %v1945_v11  ;;  %v1951_v15 = vmul.f32 1.442695, %v1843_v41  ;;  %v887_v59 = vand.u32 2147483647, %v4526_v39 }
 0x1da   : > { %5802 = vst [vmem:[#allocation151_spill] sm:$0xff] %v4542_v42  ;;  %v4546_v62 = vmul.f32 0.70710677, %v4537_v45  ;;  %v4549_v24 = vmul.f32 0.5, %v4442_v32  ;;  %3371 = vrcp.f32 %v1010_v54  ;;  %v1013_v40 = vadd.f32 1.0, %v949_v46  ;;  %v4551_v13 = vpop.eup %3353  ;;  %v533_v54 = vpop.f32.mrf.mxu0 }
 0x1db   : > { %5801 = vst [vmem:[#allocation150_spill] sm:$0xff] %v4540_v30  ;;  %v1782_v20 = vsub.f32 0.0, %v886_v60  ;;  %5805 = vst [vmem:[#allocation154_spill] sm:$0xff] %v4551_v13  ;;  %3373 = vpow2.f32 %v1949_v53  ;;  %v4554_v22 = vmul.f32 0.5, %v4459_v23  ;;  %v1012_v11 = vadd.f32 1.0, %v948_v17 }
 0x1dc   : > { %5803 = vst [vmem:[#allocation152_spill] sm:$0xff] %v4546_v62  ;;  %5804 = vst [vmem:[#allocation153_spill] sm:$0xff] %v4549_v24  ;;  %v889_v41 = vand.u32 2147483647, %v4540_v30  ;;  %v4557_v39 = vpop.eup %3355  ;;  %3375 = vrcp.f32 %v1011_v51  ;;  %v1955_v42 = vmul.f32 1.442695, %v1845_v19  ;;  %v1844_v63 = vmul.f32 %v1780_v2, %v884_v36 }
 0x1dd   : > { %5806 = vst [vmem:[#allocation155_spill] sm:$0xff] %v4554_v22  ;;  %5807 = vst [vmem:[#allocation156_spill] sm:$0xff] %v4557_v39  ;;  %v4560_v32 = vadd.f32 %v690_v14, %v3906_v29  ;;  %v4562_v46 = vpop.eup %3357  ;;  %3377 = vpow2.f32 %v1951_v15  ;;  %v950_v24 = vmul.f32 0.3275911, %v886_v60  ;;  %v1783_v53 = vsub.f32 0.0, %v887_v59  ;;  %v694_v14 = vpop.f32.mrf.mxu1 }
 0x1de   : > { %5808 = vst [vmem:[#allocation157_spill] sm:$0xff] %v4562_v46  ;;  %v888_v23 = vand.u32 2147483647, %v4546_v62  ;;  %v4565_v22 = vpop.eup %3359  ;;  %3379 = vrcp.f32 %v1013_v40  ;;  %v1846_v17 = vmul.f32 %v1782_v20, %v886_v60  ;;  %v951_v30 = vmul.f32 0.3275911, %v887_v59  ;;  %v535_v20 = vpop.f32.mrf.mxu0 }
 0x1df   : > { %5809 = vst [vmem:[#allocation158_spill] sm:$0xff] %v4565_v22  ;;  %v4568_v51 = vmul.f32 0.70710677, %v4560_v32  ;;  %v4570_v36 = vpop.eup %3361  ;;  %v4573_v19 = vmul.f32 0.5, %v4473_v49  ;;  %3381 = vrcp.f32 %v1012_v11  ;;  %v1785_v2 = vsub.f32 0.0, %v889_v41 }
 0x1e0   : > { %5811 = vst [vmem:[#allocation160_spill] sm:$0xff] %v4570_v36  ;;  %v534_v15 = vadd.f32 %v533_v54, %v3886_v3  ;;  %3383 = vpow2.f32 %v1955_v42  ;;  %v4577_v62 = vmul.f32 0.5, %v4479_v44  ;;  %v1953_v40 = vmul.f32 1.442695, %v1844_v63 }
 0x1e1   : > { %5810 = vst [vmem:[#allocation159_spill] sm:$0xff] %v4568_v51  ;;  %5812 = vst [vmem:[#allocation161_spill] sm:$0xff] %v4573_v19  ;;  %v890_v60 = vand.u32 2147483647, %v4568_v51  ;;  %v4580_v22 = vpop.eup %3363  ;;  %v1014_v46 = vadd.f32 1.0, %v950_v24  ;;  %v1847_v36 = vmul.f32 %v1783_v53, %v887_v59  ;;  %v1784_v13 = vsub.f32 0.0, %v888_v23 }
 0x1e2   : > { %5813 = vst [vmem:[#allocation162_spill] sm:$0xff] %v4577_v62  ;;  %5814 = vst [vmem:[#allocation163_spill] sm:$0xff] %v4580_v22  ;;  %v4582_v49 = vmul.f32 0.70710677, %v534_v15  ;;  %v4584_v11 = vpop.eup %3365  ;;  %v1957_v19 = vmul.f32 1.442695, %v1846_v17  ;;  %v695_v42 = vadd.f32 %v694_v14, %v3888_v4  ;;  %v1849_v44 = vmul.f32 %v1785_v2, %v889_v41 }
 0x1e3   : > { %v1015_v54 = vadd.f32 1.0, %v951_v30  ;;  %v953_v39 = vmul.f32 0.3275911, %v889_v41  ;;  %v952_v62 = vmul.f32 0.3275911, %v888_v23  ;;  %v536_v51 = vadd.f32 %v535_v20, %v3904_v25  ;;  %v4589_v18 = vpop.eup %3367  ;;  %v696_v41 = vpop.f32.mrf.mxu1 }
 0x1e4   : > { %5815 = vst [vmem:[#allocation164_spill] sm:$0xff] %v4582_v49  ;;  %v891_v63 = vand.u32 2147483647, %v4582_v49  ;;  %5816 = vst [vmem:[#allocation165_spill] sm:$0xff] %v4589_v18  ;;  %3385 = vpow2.f32 %v1953_v40  ;;  %v4592_v59 = vmul.f32 0.5, %v4504_v31  ;;  %v1786_v24 = vsub.f32 0.0, %v890_v60 }
 0x1e5   : > { %v4594_v53 = vmul.f32 0.70710677, %v695_v42  ;;  %3387 = vrcp.f32 %v1014_v46  ;;  %v1959_v30 = vmul.f32 1.442695, %v1847_v36  ;;  %v1848_v17 = vmul.f32 %v1784_v13, %v888_v23 }
 0x1e6   : > { %5817 = vst [vmem:[#allocation166_spill] sm:$0xff] %v4592_v59  ;;  %v4596_v22 = vmul.f32 0.70710677, %v536_v51  ;;  %v4598_v2 = vpop.eup %3369  ;;  %3389 = vpow2.f32 %v1957_v19  ;;  %v4601_v14 = vmul.f32 0.5, %v4518_v61  ;;  %v4604_v40 = vmul.f32 0.5, %v4532_v58  ;;  %v539_v61 = vpop.f32.mrf.mxu0 }
 0x1e7   : > { %5818 = vst [vmem:[#allocation167_spill] sm:$0xff] %v4594_v53  ;;  %5820 = vst [vmem:[#allocation169_spill] sm:$0xff] %v4598_v2  ;;  %v1017_v31 = vadd.f32 1.0, %v953_v39  ;;  %v4606_v20 = vpop.eup %3371  ;;  %3391 = vrcp.f32 %v1015_v54  ;;  %v1963_v49 = vmul.f32 1.442695, %v1849_v44  ;;  %v1016_v46 = vadd.f32 1.0, %v952_v62 }
 0x1e8   : > { %5819 = vst [vmem:[#allocation168_spill] sm:$0xff] %v4596_v22  ;;  %5821 = vst [vmem:[#allocation170_spill] sm:$0xff] %v4601_v14  ;;  %v1787_v36 = vsub.f32 0.0, %v891_v63  ;;  %v4608_v13 = vpop.eup %3373  ;;  %v954_v23 = vmul.f32 0.3275911, %v890_v60  ;;  %v1850_v59 = vmul.f32 %v1786_v24, %v890_v60  ;;  %v697_v19 = vadd.f32 %v696_v41, %v3906_v29 }
 0x1e9   : > { %5822 = vst [vmem:[#allocation171_spill] sm:$0xff] %v4604_v40  ;;  %5823 = vst [vmem:[#allocation172_spill] sm:$0xff] %v4608_v13  ;;  %v893_v18 = vand.u32 2147483647, %v4594_v53  ;;  %v4612_v14 = vpop.eup %3375  ;;  %3393 = vpow2.f32 %v1959_v30  ;;  %v4615_v39 = vmul.f32 0.5, %v4537_v45  ;;  %v4621_v44 = vmul.f32 0.5, %v4560_v32 }
 0x1ea   : > { %5824 = vst [vmem:[#allocation173_spill] sm:$0xff] %v4612_v14  ;;  %v1961_v58 = vmul.f32 1.442695, %v1848_v17  ;;  %v892_v54 = vand.u32 2147483647, %v4596_v22  ;;  %v4618_v62 = vpop.eup %3377  ;;  %3395 = vrcp.f32 %v1017_v31  ;;  %v4627_v40 = vmul.f32 0.5, %v534_v15  ;;  %v700_v17 = vpop.f32.mrf.mxu1 }
 0x1eb   : > { %5825 = vst [vmem:[#allocation174_spill] sm:$0xff] %v4615_v39  ;;  %5826 = vst [vmem:[#allocation175_spill] sm:$0xff] %v4618_v62  ;;  %v955_v60 = vmul.f32 0.3275911, %v891_v63  ;;  %v4623_v24 = vmul.f32 0.70710677, %v697_v19  ;;  %v4625_v41 = vpop.eup %3379  ;;  %3397 = vrcp.f32 %v1016_v46  ;;  %v1851_v30 = vmul.f32 %v1787_v36, %v891_v63 }
 0x1ec   : > { %5827 = vst [vmem:[#allocation176_spill] sm:$0xff] %v4621_v44  ;;  %5829 = vst [vmem:[#allocation178_spill] sm:$0xff] %v4625_v41  ;;  %v4630_v45 = vadd.f32 %v539_v61, %v3886_v3  ;;  %v4632_v53 = vpop.eup %3381  ;;  %3399 = vpow2.f32 %v1963_v49  ;;  %v1018_v31 = vadd.f32 1.0, %v954_v23  ;;  %v1965_v39 = vmul.f32 1.442695, %v1850_v59 }
 0x1ed   : > { %5828 = vst [vmem:[#allocation177_spill] sm:$0xff] %v4623_v24  ;;  %5830 = vst [vmem:[#allocation179_spill] sm:$0xff] %v4627_v40  ;;  %v957_v32 = vmul.f32 0.3275911, %v893_v18  ;;  %v4634_v44 = vpop.eup %3383  ;;  %3401 = vpow2.f32 %v1961_v58  ;;  %v1789_v22 = vsub.f32 0.0, %v893_v18  ;;  %v1019_v15 = vadd.f32 1.0, %v955_v60  ;;  %v541_v58 = vpop.f32.mrf.mxu0 }
 0x1ee   : > { %5831 = vst [vmem:[#allocation180_spill] sm:$0xff] %v4634_v44  ;;  %v956_v62 = vmul.f32 0.3275911, %v892_v54  ;;  %v4637_v46 = vmul.f32 0.70710677, %v4630_v45  ;;  %v1788_v63 = vsub.f32 0.0, %v892_v54  ;;  %v4641_v61 = vadd.f32 %v700_v17, %v3888_v4 }
 0x1ef   : > { %v894_v36 = vand.u32 2147483647, %v4623_v24  ;;  %v1967_v40 = vmul.f32 1.442695, %v1851_v30  ;;  %v4643_v49 = vmul.f32 0.5, %v695_v42  ;;  %v4645_v59 = vmul.f32 0.5, %v536_v51 }
 0x1f0   : > { %5832 = vst [vmem:[#allocation181_spill] sm:$0xff] %v4637_v46  ;;  %v1160_v23 = vmul.f32 1.0614054, %v4010_v56  ;;  %3403 = vrcp.f32 %v1018_v31  ;;  %v1021_v44 = vadd.f32 1.0, %v957_v32  ;;  %v895_v13 = vand.u32 2147483647, %v4637_v46 }
 0x1f1   : > { %5833 = vst [vmem:[#allocation182_spill] sm:$0xff] %v4643_v49  ;;  %5834 = vst [vmem:[#allocation183_spill] sm:$0xff] %v4645_v59  ;;  %v4650_v60 = vmul.f32 0.70710677, %v4641_v61  ;;  %v4652_v2 = vpop.eup %3385  ;;  %3405 = vpow2.f32 %v1965_v39  ;;  %v1853_v17 = vmul.f32 %v1789_v22, %v893_v18  ;;  %v1020_v24 = vadd.f32 1.0, %v956_v62  ;;  %v702_v18 = vpop.f32.mrf.mxu1 }
 0x1f2   : > { %5836 = vst [vmem:[#allocation185_spill] sm:$0xff] %v4652_v2  ;;  %v1224_v30 = vadd.f32 -1.4531521, %v1160_v23  ;;  %v4654_v42 = vpop.eup %3387  ;;  %3407 = vrcp.f32 %v1019_v15  ;;  %v1852_v51 = vmul.f32 %v1788_v63, %v892_v54  ;;  %v1790_v49 = vsub.f32 0.0, %v894_v36 }
 0x1f3   : > { %5835 = vst [vmem:[#allocation184_spill] sm:$0xff] %v4650_v60  ;;  %5837 = vst [vmem:[#allocation186_spill] sm:$0xff] %v4654_v42  ;;  %v4657_v59 = vadd.f32 %v541_v58, %v3904_v25  ;;  %v4659_v31 = vpop.eup %3389  ;;  %3409 = vpow2.f32 %v1967_v40  ;;  %v897_v32 = vand.u32 2147483647, %v4650_v60  ;;  %v1162_v39 = vmul.f32 1.0614054, %v4038_v26 }
 0x1f4   : > { %5838 = vst [vmem:[#allocation187_spill] sm:$0xff] %v4659_v31  ;;  %v1288_v46 = vmul.f32 %v4010_v56, %v1224_v30  ;;  %v4664_v22 = vpop.eup %3391  ;;  %3411 = vrcp.f32 %v1021_v44  ;;  %v4666_v62 = vmul.f32 0.5, %v697_v19  ;;  %v958_v54 = vmul.f32 0.3275911, %v894_v36  ;;  %v545_v31 = vpop.f32.mrf.mxu0 }
 0x1f5   : > { %5839 = vst [vmem:[#allocation188_spill] sm:$0xff] %v4664_v22  ;;  %v1791_v15 = vsub.f32 0.0, %v895_v13  ;;  %v1971_v63 = vmul.f32 1.442695, %v1853_v17  ;;  %3413 = vrcp.f32 %v1020_v24  ;;  %v1226_v58 = vadd.f32 -1.4531521, %v1162_v39 }
 0x1f6   : > { %5840 = vst [vmem:[#allocation189_spill] sm:$0xff] %v4666_v62  ;;  %v1352_v23 = vadd.f32 1.4214138, %v1288_v46  ;;  %v4668_v40 = vpop.eup %3393  ;;  %v1969_v60 = vmul.f32 1.442695, %v1852_v51  ;;  %v1854_v2 = vmul.f32 %v1790_v49, %v894_v36  ;;  %v703_v41 = vadd.f32 %v702_v18, %v3906_v29 }
 0x1f7   : > { %5841 = vst [vmem:[#allocation190_spill] sm:$0xff] %v4668_v40  ;;  %v4671_v30 = vmul.f32 0.70710677, %v4657_v59  ;;  %v4674_v22 = vpop.eup %3395  ;;  %v959_v19 = vmul.f32 0.3275911, %v895_v13  ;;  %v1793_v44 = vsub.f32 0.0, %v897_v32  ;;  %v1290_v24 = vmul.f32 %v4038_v26, %v1226_v58 }
 0x1f8   : > { %5843 = vst [vmem:[#allocation192_spill] sm:$0xff] %v4674_v22  ;;  %v1416_v62 = vmul.f32 %v4010_v56, %v1352_v23  ;;  %v4678_v46 = vpop.eup %3397  ;;  %v1022_v17 = vadd.f32 1.0, %v958_v54  ;;  %v1855_v39 = vmul.f32 %v1791_v15, %v895_v13  ;;  %v4682_v36 = vadd.f32 %v545_v31, %v3886_v3 }
 0x1f9   : > { %5842 = vst [vmem:[#allocation191_spill] sm:$0xff] %v4671_v30  ;;  %v896_v51 = vand.u32 2147483647, %v4671_v30  ;;  %v4684_v49 = vpop.eup %3399  ;;  %3415 = vpow2.f32 %v1971_v63  ;;  %v961_v18 = vmul.f32 0.3275911, %v897_v32  ;;  %v1023_v54 = vadd.f32 1.0, %v959_v19 }
 0x1fa   : > { %5844 = vst [vmem:[#allocation193_spill] sm:$0xff] %v4682_v36  ;;  %5845 = vst [vmem:[#allocation194_spill] sm:$0xff] %v4684_v49  ;;  %v1480_v40 = vadd.f32 -0.28449672, %v1416_v62  ;;  %v1354_v22 = vadd.f32 1.4214138, %v1290_v24  ;;  %v4686_v14 = vpop.eup %3401  ;;  %3417 = vpow2.f32 %v1969_v60  ;;  %v1857_v13 = vmul.f32 %v1793_v44, %v897_v32 }
 0x1fb   : > { %5846 = vst [vmem:[#allocation195_spill] sm:$0xff] %v4686_v14  ;;  %v1973_v23 = vmul.f32 1.442695, %v1854_v2  ;;  %v1792_v58 = vsub.f32 0.0, %v896_v51  ;;  %v4688_v42 = vmul.f32 0.70710677, %v703_v41  ;;  %3419 = vrcp.f32 %v1022_v17 }
 0x1fc   : > { %v1544_v15 = vmul.f32 %v4010_v56, %v1480_v40  ;;  %v1418_v3 = vmul.f32 %v4038_v26, %v1354_v22  ;;  %v1975_v31 = vmul.f32 1.442695, %v1855_v39  ;;  %v960_v30 = vmul.f32 0.3275911, %v896_v51 }
 0x1fd   : > { %v4693_v63 = vmul.f32 0.70710677, %v4682_v36  ;;  %v4695_v62 = vpop.eup %3403  ;;  %v1025_v24 = vadd.f32 1.0, %v961_v18  ;;  %v1856_v49 = vmul.f32 %v1792_v58, %v896_v51  ;;  %3421 = vpow2.f32 %v1973_v23  ;;  %v706_v51 = vpop.f32.mrf.mxu1 }
 0x1fe   : > { %v1608_v60 = vadd.f32 0.2548296, %v1544_v15  ;;  %v1482_v2 = vadd.f32 -0.28449672, %v1418_v3  ;;  %v4697_v14 = vpop.eup %3405  ;;  %v4701_v32 = vmul.f32 0.5, %v4630_v45  ;;  %v4704_v22 = vmul.f32 0.5, %v4641_v61  ;;  %v547_v58 = vpop.f32.mrf.mxu0 }
 0x1ff   : > { %5847 = vst [vmem:[#allocation196_spill] sm:$0xff] %v4693_v63  ;;  %v898_v40 = vand.u32 2147483647, %v4688_v42  ;;  %v4707_v19 = vpop.eup %3407  ;;  %3423 = vrcp.f32 %v1023_v54  ;;  %v1979_v44 = vmul.f32 1.442695, %v1857_v13  ;;  %v4714_v45 = vmul.f32 0.5, %v4657_v59 }
 0x200   : > { %5848 = vst [vmem:[#allocation197_spill] sm:$0xff] %v4701_v32  ;;  %5849 = vst [vmem:[#allocation198_spill] sm:$0xff] %v4704_v22  ;;  %v1672_v17 = vmul.f32 %v4010_v56, %v1608_v60  ;;  %v1546_v39 = vmul.f32 %v4038_v26, %v1482_v2  ;;  %v4711_v18 = vpop.eup %3409  ;;  %3425 = vpow2.f32 %v1975_v31  ;;  %v1024_v23 = vadd.f32 1.0, %v960_v30 }
 0x201   : > { %5850 = vst [vmem:[#allocation199_spill] sm:$0xff] %v4714_v45  ;;  %v899_v61 = vand.u32 2147483647, %v4693_v63  ;;  %v4717_v15 = vpop.eup %3411  ;;  %3427 = vrcp.f32 %v1025_v24  ;;  %v1977_v56 = vmul.f32 1.442695, %v1856_v49  ;;  %v4723_v60 = vmul.f32 0.5, %v703_v41 }
 0x202   : > { %v1992_v54 = vmul.f32 %v4022_v7, %v1672_v17  ;;  %v1610_v13 = vadd.f32 0.2548296, %v1546_v39  ;;  %v4720_v3 = vpop.eup %3413  ;;  %v962_v31 = vmul.f32 0.3275911, %v898_v40  ;;  %v1794_v59 = vsub.f32 0.0, %v898_v40  ;;  %v5885_v45 = vld [vmem:[#allocation26_spill] sm:$0xff] }
 0x203   : > { %5851 = vst [vmem:[#allocation200_spill] sm:$0xff] %v4723_v60  ;;  %v4726_v30 = vadd.f32 %v706_v51, %v3888_v4  ;;  %3429 = vpow2.f32 %v1979_v44  ;;  %v4730_v24 = vadd.f32 %v547_v58, %v3904_v25  ;;  %v963_v7 = vmul.f32 0.3275911, %v899_v61 }
 0x204   : > { %v2056_v2 = vsub.f32 1.0, %v1992_v54  ;;  %v1674_v36 = vmul.f32 %v4038_v26, %v1610_v13  ;;  %3431 = vrcp.f32 %v1024_v23  ;;  %v1795_v49 = vsub.f32 0.0, %v899_v61 }
 0x205   : > { %5852 = vst [vmem:[#allocation201_spill] sm:$0xff] %v4726_v30  ;;  %v1164_v17 = vmul.f32 1.0614054, %v4074_v33  ;;  %3433 = vpow2.f32 %v1977_v56  ;;  %v1166_v63 = vmul.f32 1.0614054, %v4094_v21  ;;  %v1026_v44 = vadd.f32 1.0, %v962_v31 }
 0x206   : > { %v2184_v39 = vsub.f32 0.0, %v2056_v2  ;;  %v1994_v41 = vmul.f32 %v4050_v47, %v1674_v36  ;;  %v4735_v4 = vpop.eup %3415  ;;  %v1858_v51 = vmul.f32 %v1794_v59, %v898_v40  ;;  %v4738_v26 = vmul.f32 0.70710677, %v4726_v30 }
 0x207   : > { %v1228_v25 = vadd.f32 -1.4531521, %v1164_v17  ;;  %v4740_v58 = vpop.eup %3417  ;;  %v1230_v13 = vadd.f32 -1.4531521, %v1166_v63  ;;  %v1163_v47 = vmul.f32 1.0614054, %v4059_v1  ;;  %v1859_v22 = vmul.f32 %v1795_v49, %v899_v61 }
 0x208   : > { %5853 = vst [vmem:[#allocation202_spill] sm:$0xff] %v4738_v26  ;;  %v2248_v23 = vsel %vm2120_vm2, %v2184_v39, %v2056_v2  ;;  %v2058_v54 = vsub.f32 1.0, %v1994_v41  ;;  %v1027_v56 = vadd.f32 1.0, %v963_v7  ;;  %v4746_v31 = vpop.eup %3419  ;;  %v1165_v30 = vmul.f32 1.0614054, %v4066_v38  ;;  %v708_v39 = vpop.f32.mrf.mxu1 }
 0x209   : > { %v2312_v36 = vadd.f32 1.0, %v2248_v23  ;;  %v1292_v32 = vmul.f32 %v4074_v33, %v1228_v25  ;;  %v1294_v59 = vmul.f32 %v4094_v21, %v1230_v13  ;;  %v1227_v17 = vadd.f32 -1.4531521, %v1163_v47 }
 0x20a   : > { %v2186_v40 = vsub.f32 0.0, %v2058_v54  ;;  %3435 = vrcp.f32 %v1026_v44  ;;  %v901_v63 = vand.u32 2147483647, %v4738_v26  ;;  %v4752_v41 = vpop.eup %3421  ;;  %v1229_v25 = vadd.f32 -1.4531521, %v1165_v30 }
 0x20b   : > { %v2376_v34 = vmul.f32 %v2312_v36, %v3954_v9  ;;  %v1356_v2 = vadd.f32 1.4214138, %v1292_v32  ;;  %v1358_v7 = vadd.f32 1.4214138, %v1294_v59  ;;  %v1291_v49 = vmul.f32 %v4059_v1, %v1227_v17 }
 0x20c   : > { %v2250_v61 = vsel %vm2122_vm3, %v2186_v40, %v2058_v54  ;;  %v4757_v23 = vpop.eup %3423  ;;  %v1981_v47 = vmul.f32 1.442695, %v1858_v51  ;;  %v4761_v44 = vmul.f32 0.70710677, %v4730_v24  ;;  %v1293_v36 = vmul.f32 %v4066_v38, %v1229_v25 }
 0x20d   : > { %2574 = vmatprep.mubr.f32.mxu0 %v2376_v34  ;;  %v2314_v13 = vadd.f32 1.0, %v2250_v61  ;;  %v1420_v9 = vmul.f32 %v4074_v33, %v1356_v2  ;;  %v4763_v32 = vpop.eup %3425  ;;  %v1422_v37 = vmul.f32 %v4094_v21, %v1358_v7  ;;  %v1355_v54 = vadd.f32 1.4214138, %v1291_v49 }
 0x20e   : > { %2575 = vmatmul.mubr.f32.vlgmr.msra.gmra.mxu0 %v4119_v57  ;;  %v4769_v30 = vadd.f32 %v708_v39, %v3906_v29  ;;  %v4771_v40 = vpop.eup %3427  ;;  %v1797_v59 = vsub.f32 0.0, %v901_v63  ;;  %v900_v34 = vand.u32 2147483647, %v4761_v44  ;;  %v1983_v2 = vmul.f32 1.442695, %v1859_v22 }
 0x20f   : > { %v2378_v51 = vmul.f32 %v2314_v13, %v3959_v28  ;;  %v1484_v17 = vadd.f32 -0.28449672, %v1420_v9  ;;  %v1486_v61 = vadd.f32 -0.28449672, %v1422_v37  ;;  %v1419_v57 = vmul.f32 %v4059_v1, %v1355_v54 }
 0x210   : > { %5854 = vst [vmem:[#allocation203_spill] sm:$0xff] %v4769_v30  ;;  %v1357_v26 = vadd.f32 1.4214138, %v1293_v36  ;;  %v4776_v7 = vpop.eup %3429  ;;  %3437 = vrcp.f32 %v1027_v56  ;;  %v1796_v39 = vsub.f32 0.0, %v900_v34  ;;  %v4780_v49 = vmul.f32 0.70710677, %v4769_v30 }
 0x211   : > { %2719 = vmatprep.mubr.f32.mxu1 %v2378_v51  ;;  %v1548_v29 = vmul.f32 %v4074_v33, %v1484_v17  ;;  %v4782_v28 = vpop.eup %3431  ;;  %3439 = vpow2.f32 %v1981_v47  ;;  %v1550_v22 = vmul.f32 %v4094_v21, %v1486_v61  ;;  %v1483_v25 = vadd.f32 -0.28449672, %v1419_v57 }
 0x212   : > { %5855 = vst [vmem:[#allocation204_spill] sm:$0xff] %v4780_v49  ;;  %2720 = vmatmul.mubr.f32.vlgmr.msra.gmra.mxu1 %v4122_v12  ;;  %v1421_v13 = vmul.f32 %v4066_v38, %v1357_v26  ;;  %v4787_v9 = vpop.eup %3433  ;;  %v1861_v37 = vmul.f32 %v1797_v59, %v901_v63  ;;  %v902_v54 = vand.u32 2147483647, %v4780_v49  ;;  %v1168_v36 = vmul.f32 1.0614054, %v4149_v0 }
 0x213   : > { %v1612_v56 = vadd.f32 0.2548296, %v1548_v29  ;;  %3441 = vpow2.f32 %v1983_v2  ;;  %v1614_v51 = vadd.f32 0.2548296, %v1550_v22  ;;  %v1547_v12 = vmul.f32 %v4059_v1, %v1483_v25 }
 0x214   : > { %v1485_v47 = vadd.f32 -0.28449672, %v1421_v13  ;;  %v965_v17 = vmul.f32 0.3275911, %v901_v63  ;;  %v4796_v61 = vmul.f32 0.5, %v4730_v24  ;;  %v1860_v59 = vmul.f32 %v1796_v39, %v900_v34 }
 0x215   : > { %v1676_v26 = vmul.f32 %v4074_v33, %v1612_v56  ;;  %v1678_v57 = vmul.f32 %v4094_v21, %v1614_v51  ;;  %v1611_v29 = vadd.f32 0.2548296, %v1547_v12  ;;  %v1798_v49 = vsub.f32 0.0, %v902_v54 }
 0x216   : > { %5856 = vst [vmem:[#allocation205_spill] sm:$0xff] %v4796_v61  ;;  %v1549_v30 = vmul.f32 %v4066_v38, %v1485_v47  ;;  %v4801_v2 = vmul.f32 1.442695, %v1861_v37  ;;  %v964_v25 = vmul.f32 0.3275911, %v900_v34  ;;  %v5870_v61 = vld [vmem:[#allocation47_spill] sm:$0xff] }
 0x217   : > { %v1996_v22 = vmul.f32 %v4082_v43, %v1676_v26  ;;  %v1232_v63 = vadd.f32 -1.4531521, %v1168_v36  ;;  %v4804_v13 = vpop.eup %3435  ;;  %v1998_v33 = vmul.f32 %v4100_v35, %v1678_v57  ;;  %v1675_v24 = vmul.f32 %v4059_v1, %v1611_v29 }
 0x218   : > { %v1613_v39 = vadd.f32 0.2548296, %v1549_v30  ;;  %v1862_v21 = vmul.f32 %v1798_v49, %v902_v54  ;;  %v4809_v51 = vmul.f32 1.442695, %v1860_v59  ;;  %v1170_v12 = vmul.f32 1.0614054, %v4163_v10 }
 0x219   : > { %v2060_v56 = vsub.f32 1.0, %v1996_v22  ;;  %v1296_v37 = vmul.f32 %v4149_v0, %v1232_v63  ;;  %v2062_v43 = vsub.f32 1.0, %v1998_v33  ;;  %v1995_v34 = vmul.f32 %v4061_v55, %v1675_v24 }
 0x21a   : > { %v1677_v36 = vmul.f32 %v4066_v38, %v1613_v39  ;;  %v4815_v47 = vmul.f32 0.3275911, %v902_v54  ;;  %v1029_v35 = vadd.f32 1.0, %v965_v17  ;;  %v1234_v49 = vadd.f32 -1.4531521, %v1170_v12  ;;  %v5857_v12 = vld [vmem:[#allocation18_spill] sm:$0xff] }
 0x21b   : > { %v2188_v1 = vsub.f32 0.0, %v2060_v56  ;;  %v1360_v30 = vadd.f32 1.4214138, %v1296_v37  ;;  %v2190_v26 = vsub.f32 0.0, %v2062_v43  ;;  %v2059_v57 = vsub.f32 1.0, %v1995_v34 }
 0x21c   : > { %v1997_v59 = vmul.f32 %v4077_v6, %v1677_v36  ;;  %v4818_v29 = vmul.f32 1.442695, %v1862_v21  ;;  %v1298_v55 = vmul.f32 %v4163_v10, %v1234_v49  ;;  %v1167_v38 = vmul.f32 1.0614054, %v4116_v50 }
 0x21d   : > { %v2252_v22 = vsel %vm2124_vm4, %v2188_v1, %v2060_v56  ;;  %v1424_v63 = vmul.f32 %v4149_v0, %v1360_v30  ;;  %v4825_v54 = vpop.eup %3437  ;;  %v2254_v33 = vsel %vm2126_vm5, %v2190_v26, %v2062_v43  ;;  %v2187_v24 = vsub.f32 0.0, %v2059_v57 }
 0x21e   : > { %v2316_v17 = vadd.f32 1.0, %v2252_v22  ;;  %v2061_v39 = vsub.f32 1.0, %v1997_v59  ;;  %v4829_v6 = vpop.eup %3439  ;;  %v2318_v21 = vadd.f32 1.0, %v2254_v33  ;;  %v4831_v37 = vadd.f32 1.0, %v964_v25 }
 0x21f   : > { %v1488_v16 = vadd.f32 -0.28449672, %v1424_v63  ;;  %v1362_v56 = vadd.f32 1.4214138, %v1298_v55  ;;  %v2251_v36 = vsel %vm2123_vm6, %v2187_v24, %v2059_v57  ;;  %v1231_v30 = vadd.f32 -1.4531521, %v1167_v38 }
 0x220   : > { %v2380_v34 = vmul.f32 %v2316_v17, %v5857_v12  ;;  %v2189_v1 = vsub.f32 0.0, %v2061_v39  ;;  %v4836_v49 = vpop.eup %3441  ;;  %v2382_v43 = vmul.f32 %v2318_v21, %v5859_v27  ;;  %v2315_v26 = vadd.f32 1.0, %v2251_v36  ;;  %v5860_v55 = vld [vmem:[#allocation39_spill] sm:$0xff]  ;;  %v5863_v36 = vld [vmem:[#allocation20_spill] sm:$0xff] }
 0x221   : > { %5858 = vst [vmem:[#allocation18_spill] sm:$0xff] %v4836_v49  ;;  %v1552_v59 = vmul.f32 %v4149_v0, %v1488_v16  ;;  %v1426_v22 = vmul.f32 %v4163_v10, %v1362_v56  ;;  %v1295_v63 = vmul.f32 %v4116_v50, %v1231_v30  ;;  %v1169_v52 = vmul.f32 1.0614054, %v5860_v55  ;;  %v5861_v57 = vld [vmem:[#allocation59_spill] sm:$0xff] }
 0x222   : > { %2579 = vmatprep.mubr.f32.mxu0 %v2380_v34  ;;  %v2253_v25 = vsel %vm2125_vm7, %v2189_v1, %v2061_v39  ;;  %v1172_v17 = vmul.f32 1.0614054, %v5861_v57  ;;  %2724 = vmatprep.mubr.f32.mxu1 %v2382_v43  ;;  %v5862_v38 = vld [vmem:[#allocation15_spill] sm:$0xff]  ;;  %vm2128_vm8 = vcmp.lt.f32.partialorder %v5863_v36, 0.0  ;;  %3443 = vrcp.f32 %v1029_v35  ;;  %v5873_v36 = vld [vmem:[#allocation37_spill] sm:$0xff] }
 0x223   : > { %v2379_v33 = vmul.f32 %v2315_v26, %v5862_v38  ;;  %v2317_v24 = vadd.f32 1.0, %v2253_v25  ;;  %v1616_v21 = vadd.f32 0.2548296, %v1552_v59  ;;  %v1490_v12 = vadd.f32 -0.28449672, %v1426_v22  ;;  %v5865_v27 = vld [vmem:[#allocation63_spill] sm:$0xff] }
 0x224   : > { %v1359_v16 = vadd.f32 1.4214138, %v1295_v63  ;;  %v1233_v56 = vadd.f32 -1.4531521, %v1169_v52  ;;  %v1236_v34 = vadd.f32 -1.4531521, %v1172_v17  ;;  %3445 = vpow2.f32 %v4801_v2 }
 0x225   : > { %2580 = vmatmul.mubr.f32.gmra.mxu0 %v2379_v33  ;;  %v2381_v39 = vmul.f32 %v2317_v24, %v5864_v8  ;;  %v1680_v1 = vmul.f32 %v4149_v0, %v1616_v21  ;;  %v1554_v30 = vmul.f32 %v4163_v10, %v1490_v12  ;;  %v1174_v43 = vmul.f32 1.0614054, %v5865_v27  ;;  %v5866_v25 = vld [vmem:[#allocation48_spill] sm:$0xff]  ;;  %v5868_v33 = vld [vmem:[#allocation54_spill] sm:$0xff] }
 0x226   : > { %v1423_v26 = vmul.f32 %v4116_v50, %v1359_v16  ;;  %v1297_v59 = vmul.f32 %v5860_v55, %v1233_v56  ;;  %v1300_v22 = vmul.f32 %v5861_v57, %v1236_v34  ;;  %v1171_v35 = vmul.f32 1.0614054, %v5866_v25  ;;  %v5867_v63 = vld [vmem:[#allocation44_spill] sm:$0xff]  ;;  %v5869_v0 = vld [vmem:[#allocation22_spill] sm:$0xff] }
 0x227   : > { %2725 = vmatmul.mubr.f32.gmra.mxu1 %v2381_v39  ;;  %v2000_v52 = vmul.f32 %v5867_v63, %v1680_v1  ;;  %v1618_v17 = vadd.f32 0.2548296, %v1554_v30  ;;  %v1238_v38 = vadd.f32 -1.4531521, %v1174_v43  ;;  %v1173_v24 = vmul.f32 1.0614054, %v5868_v33 }
 0x228   : > { %vm2130_vm9 = vcmp.lt.f32.partialorder %v5869_v0, 0.0  ;;  %v1487_v21 = vadd.f32 -0.28449672, %v1423_v26  ;;  %v1361_v12 = vadd.f32 1.4214138, %v1297_v59  ;;  %v5877_v0 = vld [vmem:[#allocation30_spill] sm:$0xff]  ;;  %3447 = vrcp.f32 %v4831_v37 }
 0x229   : > { %v1364_v16 = vadd.f32 1.4214138, %v1300_v22  ;;  %v2064_v8 = vsub.f32 1.0, %v2000_v52  ;;  %v1682_v56 = vmul.f32 %v4163_v10, %v1618_v17  ;;  %v1302_v34 = vmul.f32 %v5865_v27, %v1238_v38  ;;  %v5871_v17 = vld [vmem:[#allocation16_spill] sm:$0xff] }
 0x22a   : > { %v1235_v49 = vadd.f32 -1.4531521, %v1171_v35  ;;  %v1551_v39 = vmul.f32 %v4116_v50, %v1487_v21  ;;  %v1425_v1 = vmul.f32 %v5860_v55, %v1361_v12  ;;  %v1237_v43 = vadd.f32 -1.4531521, %v1173_v24 }
 0x22b   : > { %v1428_v30 = vmul.f32 %v5861_v57, %v1364_v16  ;;  %v2192_v63 = vsub.f32 0.0, %v2064_v8  ;;  %v2002_v60 = vmul.f32 %v5870_v61, %v1682_v56  ;;  %v1366_v2 = vadd.f32 1.4214138, %v1302_v34 }
 0x22c   : > { %v1299_v26 = vmul.f32 %v5866_v25, %v1235_v49  ;;  %v1615_v59 = vadd.f32 0.2548296, %v1551_v39  ;;  %v1489_v22 = vadd.f32 -0.28449672, %v1425_v1  ;;  %v1301_v10 = vmul.f32 %v5868_v33, %v1237_v43 }
 0x22d   : > { %v1492_v52 = vadd.f32 -0.28449672, %v1428_v30  ;;  %vm2127_vm10 = vcmp.lt.f32.partialorder %v5871_v17, 0.0  ;;  %v2256_v35 = vsel %vm2128_vm8, %v2192_v63, %v2064_v8  ;;  %v2066_v38 = vsub.f32 1.0, %v2002_v60  ;;  %v5872_v30 = vld [vmem:[#allocation27_spill] sm:$0xff] }
 0x22e   : > { %v1430_v21 = vmul.f32 %v5865_v27, %v1366_v2  ;;  %v1363_v24 = vadd.f32 1.4214138, %v1299_v26  ;;  %v2320_v12 = vadd.f32 1.0, %v2256_v35  ;;  %v1679_v61 = vmul.f32 %v4116_v50, %v1615_v59  ;;  %v5874_v26 = vld [vmem:[#allocation19_spill] sm:$0xff]  ;;  %v5875_v50 = vld [vmem:[#allocation29_spill] sm:$0xff] }
 0x22f   : > { %v1553_v16 = vmul.f32 %v5860_v55, %v1489_v22  ;;  %v1556_v49 = vmul.f32 %v5861_v57, %v1492_v52  ;;  %v2194_v56 = vsub.f32 0.0, %v2066_v38  ;;  %v1365_v1 = vadd.f32 1.4214138, %v1301_v10  ;;  %v4878_v2 = vpop.eup %3443 }
 0x230   : > { %v1494_v34 = vadd.f32 -0.28449672, %v1430_v21  ;;  %v1427_v39 = vmul.f32 %v5866_v25, %v1363_v24  ;;  %v2384_v43 = vmul.f32 %v2320_v12, %v5872_v30  ;;  %v1999_v8 = vmul.f32 %v5873_v36, %v1679_v61  ;;  %v5876_v30 = vld [vmem:[#allocation73_spill] sm:$0xff] }
 0x231   : > { %v1617_v60 = vadd.f32 0.2548296, %v1553_v16  ;;  %v1620_v63 = vadd.f32 0.2548296, %v1556_v49  ;;  %vm2129_vm11 = vcmp.lt.f32.partialorder %v5874_v26, 0.0  ;;  %vm2132_vm12 = vcmp.lt.f32.partialorder %v5875_v50, 0.0 }
 0x232   : > { %v2258_v59 = vsel %vm2130_vm9, %v2194_v56, %v2066_v38  ;;  %v1558_v22 = vmul.f32 %v5865_v27, %v1494_v34  ;;  %v1491_v52 = vadd.f32 -0.28449672, %v1427_v39  ;;  %v1429_v10 = vmul.f32 %v5868_v33, %v1365_v1  ;;  %2584 = vmatprep.mubr.f32.mxu0 %v2384_v43  ;;  %v5878_v38 = vld [vmem:[#allocation28_spill] sm:$0xff]  ;;  %v5880_v43 = vld [vmem:[#allocation61_spill] sm:$0xff] }
 0x233   : > { %v2322_v35 = vadd.f32 1.0, %v2258_v59  ;;  %v2063_v21 = vsub.f32 1.0, %v1999_v8  ;;  %v1681_v24 = vmul.f32 %v5860_v55, %v1617_v60  ;;  %v1684_v12 = vmul.f32 %v5861_v57, %v1620_v63  ;;  %v5879_v39 = vld [vmem:[#allocation40_spill] sm:$0xff]  ;;  %v4894_v8 = vpop.eup %3445  ;;  %v5890_v26 = vld [vmem:[#allocation25_spill] sm:$0xff] }
 0x234   : > { %v1622_v61 = vadd.f32 0.2548296, %v1558_v22  ;;  %v1555_v16 = vmul.f32 %v5866_v25, %v1491_v52  ;;  %v1493_v49 = vadd.f32 -0.28449672, %v1429_v10  ;;  %v1176_v36 = vmul.f32 1.0614054, %v5876_v30 }
 0x235   : > { %vm2134_vm13 = vcmp.lt.f32.partialorder %v5877_v0, 0.0  ;;  %v2386_v56 = vmul.f32 %v2322_v35, %v5878_v38  ;;  %v2191_v34 = vsub.f32 0.0, %v2063_v21  ;;  %v2001_v1 = vmul.f32 %v5879_v39, %v1681_v24  ;;  %5881 = vst [vmem:[#allocation21_spill] sm:$0xff] %v4894_v8  ;;  %v5882_v22 = vld [vmem:[#allocation23_spill] sm:$0xff]  ;;  %v5883_v38 = vld [vmem:[#allocation80_spill] sm:$0xff] }
 0x236   : > { %v2004_v59 = vmul.f32 %v5880_v43, %v1684_v12  ;;  %v1686_v55 = vmul.f32 %v5865_v27, %v1622_v61  ;;  %v1619_v57 = vadd.f32 0.2548296, %v1555_v16  ;;  %v1557_v60 = vmul.f32 %v5868_v33, %v1493_v49  ;;  %v5884_v12 = vld [vmem:[#allocation65_spill] sm:$0xff] }
 0x237   : > { %v1240_v63 = vadd.f32 -1.4531521, %v1176_v36  ;;  %vm2131_vm14 = vcmp.lt.f32.partialorder %v5882_v22, 0.0  ;;  %2729 = vmatprep.mubr.f32.mxu1 %v2386_v56  ;;  %v2255_v52 = vsel %vm2127_vm10, %v2191_v34, %v2063_v21  ;;  %v2065_v10 = vsub.f32 1.0, %v2001_v1  ;;  %v5886_v56 = vld [vmem:[#allocation24_spill] sm:$0xff] }
 0x238   : > { %v2068_v35 = vsub.f32 1.0, %v2004_v59  ;;  %v1178_v24 = vmul.f32 1.0614054, %v5883_v38  ;;  %v2319_v39 = vadd.f32 1.0, %v2255_v52  ;;  %v2006_v43 = vmul.f32 %v5884_v12, %v1686_v55  ;;  %v5887_v34 = vld [vmem:[#allocation52_spill] sm:$0xff] }
 0x239   : > { %v1683_v8 = vmul.f32 %v5866_v25, %v1619_v57  ;;  %v1621_v27 = vadd.f32 0.2548296, %v1557_v60  ;;  %v2193_v61 = vsub.f32 0.0, %v2065_v10  ;;  %v1304_v49 = vmul.f32 %v5876_v30, %v1240_v63 }
 0x23a   : > { %v2196_v16 = vsub.f32 0.0, %v2068_v35  ;;  %v1242_v36 = vadd.f32 -1.4531521, %v1178_v24  ;;  %vm2133_vm15 = vcmp.lt.f32.partialorder %v5885_v45, 0.0  ;;  %v2383_v17 = vmul.f32 %v2319_v39, %v5886_v56  ;;  %v5888_v39 = vld [vmem:[#allocation56_spill] sm:$0xff] }
 0x23b   : > { %v2070_v21 = vsub.f32 1.0, %v2006_v43  ;;  %v2003_v1 = vmul.f32 %v5887_v34, %v1683_v8  ;;  %v1685_v59 = vmul.f32 %v5868_v33, %v1621_v27  ;;  %v2257_v55 = vsel %vm2129_vm11, %v2193_v61, %v2065_v10  ;;  %v5889_v33 = vld [vmem:[#allocation67_spill] sm:$0xff]  ;;  %v5891_v61 = vld [vmem:[#allocation36_spill] sm:$0xff] }
 0x23c   : > { %v2260_v25 = vsel %vm2132_vm12, %v2196_v16, %v2068_v35  ;;  %v1368_v57 = vadd.f32 1.4214138, %v1304_v49  ;;  %v1306_v60 = vmul.f32 %v5883_v38, %v1242_v36  ;;  %2585 = vmatmul.mubr.f32.gmra.mxu0 %v2383_v17  ;;  %v2321_v63 = vadd.f32 1.0, %v2257_v55  ;;  %v5892_v55 = vld [vmem:[#allocation68_spill] sm:$0xff] }
 0x23d   : > { %v2324_v52 = vadd.f32 1.0, %v2260_v25  ;;  %v2198_v24 = vsub.f32 0.0, %v2070_v21  ;;  %v2067_v12 = vsub.f32 1.0, %v2003_v1  ;;  %v2005_v43 = vmul.f32 %v5888_v39, %v1685_v59 }
 0x23e   : > { %v1432_v8 = vmul.f32 %v5876_v30, %v1368_v57  ;;  %v1370_v56 = vadd.f32 1.4214138, %v1306_v60  ;;  %v1175_v27 = vmul.f32 1.0614054, %v5889_v33  ;;  %v2385_v10 = vmul.f32 %v2321_v63, %v5890_v26  ;;  %v5893_v57 = vld [vmem:[#allocation91_spill] sm:$0xff]  ;;  %v5894_v63 = vld [vmem:[#allocation41_spill] sm:$0xff] }
 0x23f   : > { %v2388_v50 = vmul.f32 %v2324_v52, %v5891_v61  ;;  %v2262_v35 = vsel %vm2134_vm13, %v2198_v24, %v2070_v21  ;;  %v2195_v16 = vsub.f32 0.0, %v2067_v12  ;;  %v2069_v36 = vsub.f32 1.0, %v2005_v43  ;;  %v5895_v26 = vld [vmem:[#allocation31_spill] sm:$0xff] }
 0x240   : > { %v2326_v49 = vadd.f32 1.0, %v2262_v35  ;;  %v1496_v17 = vadd.f32 -0.28449672, %v1432_v8  ;;  %v1434_v34 = vmul.f32 %v5883_v38, %v1370_v56  ;;  %2730 = vmatmul.mubr.f32.gmra.mxu1 %v2385_v10  ;;  %v1239_v59 = vadd.f32 -1.4531521, %v1175_v27  ;;  %v5896_v61 = vld [vmem:[#allocation35_spill] sm:$0xff] }
 0x241   : > { %2589 = vmatprep.mubr.f32.mxu0 %v2388_v50  ;;  %v2259_v1 = vsel %vm2131_vm14, %v2195_v16, %v2067_v12  ;;  %v1177_v25 = vmul.f32 1.0614054, %v5892_v55  ;;  %v1180_v60 = vmul.f32 1.0614054, %v5893_v57  ;;  %v2197_v21 = vsub.f32 0.0, %v2069_v36 }
 0x242   : > { %v2390_v52 = vmul.f32 %v2326_v49, %v5894_v63  ;;  %v2323_v0 = vadd.f32 1.0, %v2259_v1  ;;  %v1560_v24 = vmul.f32 %v5876_v30, %v1496_v17  ;;  %v1498_v39 = vadd.f32 -0.28449672, %v1434_v34 }
 0x243   : > { %v1303_v43 = vmul.f32 %v5889_v33, %v1239_v59  ;;  %v1241_v8 = vadd.f32 -1.4531521, %v1177_v25  ;;  %v1244_v56 = vadd.f32 -1.4531521, %v1180_v60  ;;  %v2261_v12 = vsel %vm2133_vm15, %v2197_v21, %v2069_v36  ;;  %v5897_v59 = vld [vmem:[#allocation83_spill] sm:$0xff]  ;;  %v5898_v36 = vld [vmem:[#allocation34_spill] sm:$0xff] }
 0x244   : > { %2734 = vmatprep.mubr.f32.mxu1 %v2390_v52  ;;  %v2387_v22 = vmul.f32 %v2323_v0, %v5895_v26  ;;  %v1624_v27 = vadd.f32 0.2548296, %v1560_v24  ;;  %v1182_v10 = vmul.f32 1.0614054, %v4336_v48  ;;  %vm2136_vm0 = vcmp.lt.f32.partialorder %v5896_v61, 0.0  ;;  %v5899_v0 = vld [vmem:[#allocation38_spill] sm:$0xff] }
 0x245   : > { %v2325_v50 = vadd.f32 1.0, %v2261_v12  ;;  %v1562_v35 = vmul.f32 %v5883_v38, %v1498_v39  ;;  %v1367_v16 = vadd.f32 1.4214138, %v1303_v43  ;;  %v1305_v49 = vmul.f32 %v5892_v55, %v1241_v8  ;;  %v5900_v21 = vld [vmem:[#allocation76_spill] sm:$0xff]  ;;  %v5906_v61 = vld [vmem:[#allocation51_spill] sm:$0xff] }
 0x246   : > { %2590 = vmatmul.mubr.f32.gmra.mxu0 %v2387_v22  ;;  %v1688_v17 = vmul.f32 %v5876_v30, %v1624_v27  ;;  %v1308_v34 = vmul.f32 %v5893_v57, %v1244_v56  ;;  %v1246_v1 = vadd.f32 -1.4531521, %v1182_v10  ;;  %v1179_v45 = vmul.f32 1.0614054, %v5897_v59  ;;  %v5901_v22 = vld [vmem:[#allocation85_spill] sm:$0xff] }
 0x247   : > { %v2389_v25 = vmul.f32 %v2325_v50, %v5898_v36  ;;  %v1626_v60 = vadd.f32 0.2548296, %v1562_v35  ;;  %v1431_v63 = vmul.f32 %v5889_v33, %v1367_v16  ;;  %v1369_v52 = vadd.f32 1.4214138, %v1305_v49  ;;  %v5902_v16 = vld [vmem:[#allocation82_spill] sm:$0xff] }
 0x248   : > { %vm2138_vm1 = vcmp.lt.f32.partialorder %v5899_v0, 0.0  ;;  %v2008_v24 = vmul.f32 %v5900_v21, %v1688_v17  ;;  %v1372_v39 = vadd.f32 1.4214138, %v1308_v34  ;;  %v1310_v43 = vmul.f32 %v4336_v48, %v1246_v1 }
 0x249   : > { %v1243_v8 = vadd.f32 -1.4531521, %v1179_v45  ;;  %2735 = vmatmul.mubr.f32.gmra.mxu1 %v2389_v25  ;;  %v1690_v30 = vmul.f32 %v5883_v38, %v1626_v60  ;;  %v1495_v56 = vadd.f32 -0.28449672, %v1431_v63  ;;  %v1433_v26 = vmul.f32 %v5892_v55, %v1369_v52 }
 0x24a   : > { %v1181_v12 = vmul.f32 1.0614054, %v5901_v22  ;;  %v2072_v27 = vsub.f32 1.0, %v2008_v24  ;;  %v1436_v10 = vmul.f32 %v5893_v57, %v1372_v39  ;;  %v1374_v50 = vadd.f32 1.4214138, %v1310_v43  ;;  %v5903_v24 = vld [vmem:[#allocation32_spill] sm:$0xff] }
 0x24b   : > { %v1307_v35 = vmul.f32 %v5897_v59, %v1243_v8  ;;  %v2010_v49 = vmul.f32 %v5902_v16, %v1690_v30  ;;  %v1559_v17 = vmul.f32 %v5889_v33, %v1495_v56  ;;  %v1497_v34 = vadd.f32 -0.28449672, %v1433_v26 }
 0x24c   : > { %v1245_v1 = vadd.f32 -1.4531521, %v1181_v12  ;;  %v2200_v45 = vsub.f32 0.0, %v2072_v27  ;;  %v1500_v36 = vadd.f32 -0.28449672, %v1436_v10  ;;  %v1438_v38 = vmul.f32 %v4336_v48, %v1374_v50  ;;  %v5904_v50 = vld [vmem:[#allocation33_spill] sm:$0xff] }
 0x24d   : > { %v1371_v25 = vadd.f32 1.4214138, %v1307_v35  ;;  %v2074_v60 = vsub.f32 1.0, %v2010_v49  ;;  %v1623_v63 = vadd.f32 0.2548296, %v1559_v17  ;;  %v1561_v52 = vmul.f32 %v5892_v55, %v1497_v34  ;;  %v5905_v34 = vld [vmem:[#allocation46_spill] sm:$0xff] }
 0x24e   : > { %v1309_v21 = vmul.f32 %v5901_v22, %v1245_v1  ;;  %vm2135_vm2 = vcmp.lt.f32.partialorder %v5903_v24, 0.0  ;;  %v2264_v39 = vsel %vm2136_vm0, %v2200_v45, %v2072_v27  ;;  %v1564_v43 = vmul.f32 %v5893_v57, %v1500_v36  ;;  %v5907_v45 = vld [vmem:[#allocation71_spill] sm:$0xff]  ;;  %v5917_v24 = vld [vmem:[#allocation45_spill] sm:$0xff] }
 0x24f   : > { %v1502_v8 = vadd.f32 -0.28449672, %v1438_v38  ;;  %v1435_v30 = vmul.f32 %v5897_v59, %v1371_v25  ;;  %v2328_v56 = vadd.f32 1.0, %v2264_v39  ;;  %v2202_v26 = vsub.f32 0.0, %v2074_v60  ;;  %v5908_v39 = vld [vmem:[#allocation49_spill] sm:$0xff] }
 0x250   : > { %v1687_v12 = vmul.f32 %v5889_v33, %v1623_v63  ;;  %v1625_v10 = vadd.f32 0.2548296, %v1561_v52  ;;  %vm2137_vm3 = vcmp.lt.f32.partialorder %v5904_v50, 0.0  ;;  %v1628_v35 = vadd.f32 0.2548296, %v1564_v43  ;;  %v5909_v43 = vld [vmem:[#allocation72_spill] sm:$0xff] }
 0x251   : > { %v1566_v16 = vmul.f32 %v4336_v48, %v1502_v8  ;;  %v1499_v49 = vadd.f32 -0.28449672, %v1435_v30  ;;  %v1373_v17 = vadd.f32 1.4214138, %v1309_v21  ;;  %vm2140_vm4 = vcmp.lt.f32.partialorder %v5905_v34, 0.0  ;;  %v5918_v50 = vld [vmem:[#allocation50_spill] sm:$0xff] }
 0x252   : > { %v2392_v27 = vmul.f32 %v2328_v56, %v5906_v61  ;;  %v2266_v1 = vsel %vm2138_vm1, %v2202_v26, %v2074_v60  ;;  %v2007_v36 = vmul.f32 %v5907_v45, %v1687_v12  ;;  %v1689_v38 = vmul.f32 %v5892_v55, %v1625_v10  ;;  %v5910_v60 = vld [vmem:[#allocation55_spill] sm:$0xff]  ;;  %v5911_v26 = vld [vmem:[#allocation93_spill] sm:$0xff]  ;;  %v5912_v61 = vld [vmem:[#allocation42_spill] sm:$0xff] }
 0x253   : > { %v2330_v33 = vadd.f32 1.0, %v2266_v1  ;;  %v1692_v25 = vmul.f32 %v5893_v57, %v1628_v35  ;;  %v1630_v63 = vadd.f32 0.2548296, %v1566_v16  ;;  %v1563_v52 = vmul.f32 %v5897_v59, %v1499_v49  ;;  %v5913_v1 = vld [vmem:[#allocation94_spill] sm:$0xff] }
 0x254   : > { %vm2142_vm5 = vcmp.lt.f32.partialorder %v5908_v39, 0.0  ;;  %2594 = vmatprep.mubr.f32.mxu0 %v2392_v27  ;;  %v2071_v21 = vsub.f32 1.0, %v2007_v36  ;;  %v2009_v8 = vmul.f32 %v5909_v43, %v1689_v38  ;;  %v1437_v30 = vmul.f32 %v5901_v22, %v1373_v17  ;;  %v5914_v36 = vld [vmem:[#allocation108_spill] sm:$0xff] }
 0x255   : > { %v1184_v0 = vmul.f32 1.0614054, %v4366_v5  ;;  %v2394_v56 = vmul.f32 %v2330_v33, %v5910_v60  ;;  %v2012_v55 = vmul.f32 %v5911_v26, %v1692_v25  ;;  %v1694_v12 = vmul.f32 %v4336_v48, %v1630_v63 }
 0x256   : > { %v1627_v57 = vadd.f32 0.2548296, %v1563_v52  ;;  %v2199_v10 = vsub.f32 0.0, %v2071_v21  ;;  %v2073_v35 = vsub.f32 1.0, %v2009_v8  ;;  %v1501_v16 = vadd.f32 -0.28449672, %v1437_v30 }
 0x257   : > { %v1248_v49 = vadd.f32 -1.4531521, %v1184_v0  ;;  %vm2139_vm6 = vcmp.lt.f32.partialorder %v5912_v61, 0.0  ;;  %2739 = vmatprep.mubr.f32.mxu1 %v2394_v56  ;;  %v2076_v27 = vsub.f32 1.0, %v2012_v55  ;;  %v2014_v45 = vmul.f32 %v5913_v1, %v1694_v12  ;;  %v5915_v30 = vld [vmem:[#allocation87_spill] sm:$0xff] }
 0x258   : > { %v1691_v17 = vmul.f32 %v5897_v59, %v1627_v57  ;;  %v1186_v38 = vmul.f32 1.0614054, %v5914_v36  ;;  %v2263_v33 = vsel %vm2135_vm2, %v2199_v10, %v2071_v21  ;;  %v2201_v25 = vsub.f32 0.0, %v2073_v35  ;;  %v5916_v55 = vld [vmem:[#allocation43_spill] sm:$0xff] }
 0x259   : > { %v1565_v48 = vmul.f32 %v5901_v22, %v1501_v16  ;;  %v1312_v63 = vmul.f32 %v4366_v5, %v1248_v49  ;;  %v2327_v52 = vadd.f32 1.0, %v2263_v33  ;;  %v2204_v43 = vsub.f32 0.0, %v2076_v27  ;;  %v5919_v33 = vld [vmem:[#allocation96_spill] sm:$0xff] }
 0x25a   : > { %v2078_v8 = vsub.f32 1.0, %v2014_v45  ;;  %v2011_v0 = vmul.f32 %v5915_v30, %v1691_v17  ;;  %v2265_v60 = vsel %vm2137_vm3, %v2201_v25, %v2073_v35  ;;  %v1250_v26 = vadd.f32 -1.4531521, %v1186_v38 }
 0x25b   : > { %v1629_v56 = vadd.f32 0.2548296, %v1565_v48  ;;  %v1376_v59 = vadd.f32 1.4214138, %v1312_v63  ;;  %vm2141_vm7 = vcmp.lt.f32.partialorder %v5916_v55, 0.0  ;;  %v2391_v21 = vmul.f32 %v2327_v52, %v5917_v24  ;;  %v5920_v48 = vld [vmem:[#allocation64_spill] sm:$0xff] }
 0x25c   : > { %v2329_v12 = vadd.f32 1.0, %v2265_v60  ;;  %v2268_v57 = vsel %vm2140_vm4, %v2204_v43, %v2076_v27  ;;  %v2206_v10 = vsub.f32 0.0, %v2078_v8  ;;  %v2075_v49 = vsub.f32 1.0, %v2011_v0  ;;  %v5921_v52 = vld [vmem:[#allocation88_spill] sm:$0xff]  ;;  %v5922_v60 = vld [vmem:[#allocation69_spill] sm:$0xff] }
 0x25d   : > { %v2332_v16 = vadd.f32 1.0, %v2268_v57  ;;  %v1693_v1 = vmul.f32 %v5901_v22, %v1629_v56  ;;  %v1440_v45 = vmul.f32 %v4366_v5, %v1376_v59  ;;  %2595 = vmatmul.mubr.f32.gmra.mxu0 %v2391_v21  ;;  %v1314_v38 = vmul.f32 %v5914_v36, %v1250_v26  ;;  %v5923_v59 = vld [vmem:[#allocation101_spill] sm:$0xff] }
 0x25e   : > { %v2393_v35 = vmul.f32 %v2329_v12, %v5918_v50  ;;  %v2270_v17 = vsel %vm2142_vm5, %v2206_v10, %v2078_v8  ;;  %v1183_v25 = vmul.f32 1.0614054, %v5919_v33  ;;  %v2203_v63 = vsub.f32 0.0, %v2075_v49 }
 0x25f   : > { %v2396_v34 = vmul.f32 %v2332_v16, %v5920_v48  ;;  %v2334_v27 = vadd.f32 1.0, %v2270_v17  ;;  %v2013_v43 = vmul.f32 %v5921_v52, %v1693_v1  ;;  %v1504_v22 = vadd.f32 -0.28449672, %v1440_v45  ;;  %v5924_v16 = vld [vmem:[#allocation117_spill] sm:$0xff]  ;;  %v5926_v17 = vld [vmem:[#allocation62_spill] sm:$0xff] }
 0x260   : > { %2740 = vmatmul.mubr.f32.gmra.mxu1 %v2393_v35  ;;  %v1378_v30 = vadd.f32 1.4214138, %v1314_v38  ;;  %v1247_v0 = vadd.f32 -1.4531521, %v1183_v25  ;;  %v2267_v8 = vsel %vm2139_vm6, %v2203_v63, %v2075_v49  ;;  %v1185_v26 = vmul.f32 1.0614054, %v5923_v59 }
 0x261   : > { %2599 = vmatprep.mubr.f32.mxu0 %v2396_v34  ;;  %v2398_v39 = vmul.f32 %v2334_v27, %v5922_v60  ;;  %v2077_v56 = vsub.f32 1.0, %v2013_v43  ;;  %v2331_v24 = vadd.f32 1.0, %v2267_v8  ;;  %v1568_v21 = vmul.f32 %v4366_v5, %v1504_v22  ;;  %v5925_v45 = vld [vmem:[#allocation57_spill] sm:$0xff]  ;;  %v5928_v60 = vld [vmem:[#allocation112_spill] sm:$0xff] }
 0x262   : > { %v1442_v12 = vmul.f32 %v5914_v36, %v1378_v30  ;;  %v1311_v37 = vmul.f32 %v5919_v33, %v1247_v0  ;;  %3449 = vpow2.f32 %v4809_v51  ;;  %v1249_v10 = vadd.f32 -1.4531521, %v1185_v26  ;;  %v5927_v34 = vld [vmem:[#allocation125_spill] sm:$0xff] }
 0x263   : > { %2744 = vmatprep.mubr.f32.mxu1 %v2398_v39  ;;  %v2205_v57 = vsub.f32 0.0, %v2077_v56  ;;  %v1188_v1 = vmul.f32 1.0614054, %v5924_v16  ;;  %v2395_v61 = vmul.f32 %v2331_v24, %v5925_v45  ;;  %v1632_v49 = vadd.f32 0.2548296, %v1568_v21  ;;  %v5929_v39 = vld [vmem:[#allocation58_spill] sm:$0xff] }
 0x264   : > { %v1506_v50 = vadd.f32 -0.28449672, %v1442_v12  ;;  %v1375_v35 = vadd.f32 1.4214138, %v1311_v37  ;;  %vm2144_vm8 = vcmp.lt.f32.partialorder %v5926_v17, 0.0  ;;  %v1313_v25 = vmul.f32 %v5923_v59, %v1249_v10  ;;  %v5931_v12 = vld [vmem:[#allocation66_spill] sm:$0xff] }
 0x265   : > { %v2269_v38 = vsel %vm2141_vm7, %v2205_v57, %v2077_v56  ;;  %v1252_v48 = vadd.f32 -1.4531521, %v1188_v1  ;;  %v1190_v51 = vmul.f32 1.0614054, %v5927_v34  ;;  %2600 = vmatmul.mubr.f32.gmra.mxu0 %v2395_v61  ;;  %v1696_v63 = vmul.f32 %v4366_v5, %v1632_v49  ;;  %v5930_v56 = vld [vmem:[#allocation107_spill] sm:$0xff]  ;;  %v5932_v49 = vld [vmem:[#allocation116_spill] sm:$0xff] }
 0x266   : > { %v2333_v27 = vadd.f32 1.0, %v2269_v38  ;;  %v1570_v52 = vmul.f32 %v5914_v36, %v1506_v50  ;;  %v1439_v43 = vmul.f32 %v5919_v33, %v1375_v35  ;;  %v1377_v22 = vadd.f32 1.4214138, %v1313_v25 }
 0x267   : > { %v1316_v30 = vmul.f32 %v5924_v16, %v1252_v48  ;;  %v1254_v0 = vadd.f32 -1.4531521, %v1190_v51  ;;  %v1187_v55 = vmul.f32 1.0614054, %v5928_v60  ;;  %v2016_v26 = vmul.f32 %v5930_v56, %v1696_v63 }
 0x268   : > { %v2397_v8 = vmul.f32 %v2333_v27, %v5929_v39  ;;  %v1634_v24 = vadd.f32 0.2548296, %v1570_v52  ;;  %v1503_v21 = vadd.f32 -0.28449672, %v1439_v43  ;;  %vm2146_vm9 = vcmp.lt.f32.partialorder %v5931_v12, 0.0  ;;  %v5933_v27 = vld [vmem:[#allocation110_spill] sm:$0xff] }
 0x269   : > { %v1441_v5 = vmul.f32 %v5923_v59, %v1377_v22  ;;  %v1380_v37 = vadd.f32 1.4214138, %v1316_v30  ;;  %v1318_v57 = vmul.f32 %v5927_v34, %v1254_v0  ;;  %v1251_v10 = vadd.f32 -1.4531521, %v1187_v55  ;;  %v5033_v22 = vpop.eup %3447  ;;  %v5934_v30 = vld [vmem:[#allocation53_spill] sm:$0xff] }
 0x26a   : > { %2745 = vmatmul.mubr.f32.gmra.mxu1 %v2397_v8  ;;  %v2080_v1 = vsub.f32 1.0, %v2016_v26  ;;  %v1698_v45 = vmul.f32 %v5914_v36, %v1634_v24  ;;  %v1567_v61 = vmul.f32 %v5919_v33, %v1503_v21  ;;  %v1189_v50 = vmul.f32 1.0614054, %v5932_v49 }
 0x26b   : > { %v1505_v35 = vadd.f32 -0.28449672, %v1441_v5  ;;  %v1444_v38 = vmul.f32 %v5924_v16, %v1380_v37  ;;  %v1382_v25 = vadd.f32 1.4214138, %v1318_v57  ;;  %v1315_v48 = vmul.f32 %v5928_v60, %v1251_v10 }
 0x26c   : > { %v2208_v51 = vsub.f32 0.0, %v2080_v1  ;;  %v2018_v63 = vmul.f32 %v5933_v27, %v1698_v45  ;;  %v1631_v52 = vadd.f32 0.2548296, %v1567_v61  ;;  %v1253_v43 = vadd.f32 -1.4531521, %v1189_v50  ;;  %v5935_v45 = vld [vmem:[#allocation60_spill] sm:$0xff] }
 0x26d   : > { %vm2143_vm10 = vcmp.lt.f32.partialorder %v5934_v30, 0.0  ;;  %v1569_v36 = vmul.f32 %v5923_v59, %v1505_v35  ;;  %v1508_v0 = vadd.f32 -0.28449672, %v1444_v38  ;;  %v1446_v55 = vmul.f32 %v5927_v34, %v1382_v25  ;;  %v5936_v50 = vld [vmem:[#allocation99_spill] sm:$0xff]  ;;  %v5938_v27 = vld [vmem:[#allocation78_spill] sm:$0xff] }
 0x26e   : > { %v1379_v39 = vadd.f32 1.4214138, %v1315_v48  ;;  %v2272_v8 = vsel %vm2144_vm8, %v2208_v51, %v2080_v1  ;;  %v2082_v56 = vsub.f32 1.0, %v2018_v63  ;;  %v1695_v26 = vmul.f32 %v5919_v33, %v1631_v52  ;;  %v5937_v38 = vld [vmem:[#allocation79_spill] sm:$0xff] }
 0x26f   : > { %v1317_v24 = vmul.f32 %v5932_v49, %v1253_v43  ;;  %v2336_v21 = vadd.f32 1.0, %v2272_v8  ;;  %v1633_v5 = vadd.f32 0.2548296, %v1569_v36  ;;  %v1572_v37 = vmul.f32 %v5924_v16, %v1508_v0  ;;  %v5043_v10 = vpop.eup %3449 }
 0x270   : > { %v1510_v57 = vadd.f32 -0.28449672, %v1446_v55  ;;  %vm2145_vm11 = vcmp.lt.f32.partialorder %v5935_v45, 0.0  ;;  %v2210_v61 = vsub.f32 0.0, %v2082_v56  ;;  %v2015_v35 = vmul.f32 %v5936_v50, %v1695_v26  ;;  %v5939_v55 = vld [vmem:[#allocation104_spill] sm:$0xff]  ;;  %v5943_v50 = vld [vmem:[#allocation122_spill] sm:$0xff] }
 0x271   : > { %v1443_v17 = vmul.f32 %v5928_v60, %v1379_v39  ;;  %v1381_v1 = vadd.f32 1.4214138, %v1317_v24  ;;  %v2400_v25 = vmul.f32 %v2336_v21, %v5937_v38  ;;  %v1697_v33 = vmul.f32 %v5923_v59, %v1633_v5  ;;  %v5940_v59 = vld [vmem:[#allocation81_spill] sm:$0xff] }
 0x272   : > { %v1636_v48 = vadd.f32 0.2548296, %v1572_v37  ;;  %v1574_v51 = vmul.f32 %v5927_v34, %v1510_v57  ;;  %vm2148_vm12 = vcmp.lt.f32.partialorder %v5938_v27, 0.0  ;;  %v2274_v63 = vsel %vm2146_vm9, %v2210_v61, %v2082_v56  ;;  %v5941_v37 = vld [vmem:[#allocation133_spill] sm:$0xff]  ;;  %v5942_v56 = vld [vmem:[#allocation84_spill] sm:$0xff]  ;;  %v5953_v27 = vld [vmem:[#allocation98_spill] sm:$0xff] }
 0x273   : > { %v2079_v52 = vsub.f32 1.0, %v2015_v35  ;;  %v1507_v43 = vadd.f32 -0.28449672, %v1443_v17  ;;  %v1445_v36 = vmul.f32 %v5932_v49, %v1381_v1  ;;  %2604 = vmatprep.mubr.f32.mxu0 %v2400_v25  ;;  %v2338_v0 = vadd.f32 1.0, %v2274_v63 }
 0x274   : > { %v2017_v39 = vmul.f32 %v5939_v55, %v1697_v33  ;;  %v1700_v8 = vmul.f32 %v5924_v16, %v1636_v48  ;;  %v1638_v26 = vadd.f32 0.2548296, %v1574_v51  ;;  %vm2150_vm13 = vcmp.lt.f32.partialorder %v5940_v59, 0.0  ;;  %v5944_v33 = vld [vmem:[#allocation70_spill] sm:$0xff] }
 0x275   : > { %v2207_v24 = vsub.f32 0.0, %v2079_v52  ;;  %v1571_v21 = vmul.f32 %v5928_v60, %v1507_v43  ;;  %v1509_v5 = vadd.f32 -0.28449672, %v1445_v36  ;;  %v1192_v12 = vmul.f32 1.0614054, %v5941_v37  ;;  %v5945_v43 = vld [vmem:[#allocation126_spill] sm:$0xff] }
 0x276   : > { %v2402_v57 = vmul.f32 %v2338_v0, %v5942_v56  ;;  %v2081_v61 = vsub.f32 1.0, %v2017_v39  ;;  %v2020_v35 = vmul.f32 %v5943_v50, %v1700_v8  ;;  %v1702_v17 = vmul.f32 %v5927_v34, %v1638_v26  ;;  %v5946_v39 = vld [vmem:[#allocation140_spill] sm:$0xff]  ;;  %v5948_v8 = vld [vmem:[#allocation74_spill] sm:$0xff] }
 0x277   : > { %v2271_v1 = vsel %vm2143_vm10, %v2207_v24, %v2079_v52  ;;  %v1635_v16 = vadd.f32 0.2548296, %v1571_v21  ;;  %v1573_v38 = vmul.f32 %v5932_v49, %v1509_v5  ;;  %v1256_v25 = vadd.f32 -1.4531521, %v1192_v12  ;;  %v5947_v52 = vld [vmem:[#allocation75_spill] sm:$0xff]  ;;  %v5949_v56 = vld [vmem:[#allocation114_spill] sm:$0xff] }
 0x278   : > { %vm2147_vm14 = vcmp.lt.f32.partialorder %v5944_v33, 0.0  ;;  %2749 = vmatprep.mubr.f32.mxu1 %v2402_v57  ;;  %v2335_v48 = vadd.f32 1.0, %v2271_v1  ;;  %v2209_v51 = vsub.f32 0.0, %v2081_v61  ;;  %v2084_v63 = vsub.f32 1.0, %v2020_v35  ;;  %v5955_v59 = vld [vmem:[#allocation102_spill] sm:$0xff] }
 0x279   : > { %v2022_v36 = vmul.f32 %v5945_v43, %v1702_v17  ;;  %v1699_v0 = vmul.f32 %v5928_v60, %v1635_v16  ;;  %v1637_v55 = vadd.f32 0.2548296, %v1573_v38  ;;  %v1320_v34 = vmul.f32 %v5941_v37, %v1256_v25  ;;  %v5950_v16 = vld [vmem:[#allocation129_spill] sm:$0xff] }
 0x27a   : > { %v1194_v30 = vmul.f32 1.0614054, %v5946_v39  ;;  %vm2149_vm15 = vcmp.lt.f32.partialorder %v5947_v52, 0.0  ;;  %v2399_v26 = vmul.f32 %v2335_v48, %v5948_v8  ;;  %v2273_v24 = vsel %vm2145_vm11, %v2209_v51, %v2081_v61  ;;  %v5951_v25 = vld [vmem:[#allocation77_spill] sm:$0xff]  ;;  %v5952_v51 = vld [vmem:[#allocation118_spill] sm:$0xff] }
 0x27b   : > { %v2212_v21 = vsub.f32 0.0, %v2084_v63  ;;  %v2086_v5 = vsub.f32 1.0, %v2022_v36  ;;  %v2337_v12 = vadd.f32 1.0, %v2273_v24  ;;  %v2019_v57 = vmul.f32 %v5949_v56, %v1699_v0  ;;  %v5960_v52 = vld [vmem:[#allocation97_spill] sm:$0xff] }
 0x27c   : > { %v1701_v50 = vmul.f32 %v5932_v49, %v1637_v55  ;;  %v1384_v60 = vadd.f32 1.4214138, %v1320_v34  ;;  %2605 = vmatmul.mubr.f32.gmra.mxu0 %v2399_v26  ;;  %v1258_v1 = vadd.f32 -1.4531521, %v1194_v30  ;;  %v1191_v38 = vmul.f32 1.0614054, %v5950_v16 }
 0x27d   : > { %v2276_v35 = vsel %vm2148_vm12, %v2212_v21, %v2084_v63  ;;  %v2214_v17 = vsub.f32 0.0, %v2086_v5  ;;  %v2401_v48 = vmul.f32 %v2337_v12, %v5951_v25  ;;  %v2083_v61 = vsub.f32 1.0, %v2019_v57  ;;  %v5954_v12 = vld [vmem:[#allocation132_spill] sm:$0xff] }
 0x27e   : > { %v2340_v45 = vadd.f32 1.0, %v2276_v35  ;;  %v2021_v43 = vmul.f32 %v5952_v51, %v1701_v50  ;;  %v1448_v49 = vmul.f32 %v5941_v37, %v1384_v60  ;;  %v1322_v0 = vmul.f32 %v5946_v39, %v1258_v1  ;;  %v5956_v60 = vld [vmem:[#allocation149_spill] sm:$0xff] }
 0x27f   : > { %v2278_v36 = vsel %vm2150_vm13, %v2214_v17, %v2086_v5  ;;  %v1255_v55 = vadd.f32 -1.4531521, %v1191_v38  ;;  %2750 = vmatmul.mubr.f32.gmra.mxu1 %v2401_v48  ;;  %v2211_v30 = vsub.f32 0.0, %v2083_v61  ;;  %v1193_v56 = vmul.f32 1.0614054, %v5954_v12 }
 0x280   : > { %v2404_v63 = vmul.f32 %v2340_v45, %v5953_v27  ;;  %v2342_v34 = vadd.f32 1.0, %v2278_v36  ;;  %v2085_v8 = vsub.f32 1.0, %v2021_v43  ;;  %v1512_v26 = vadd.f32 -0.28449672, %v1448_v49  ;;  %v5957_v43 = vld [vmem:[#allocation156_spill] sm:$0xff]  ;;  %v5958_v49 = vld [vmem:[#allocation90_spill] sm:$0xff] }
 0x281   : > { %v1386_v24 = vadd.f32 1.4214138, %v1322_v0  ;;  %v1319_v21 = vmul.f32 %v5950_v16, %v1255_v55  ;;  %v2275_v57 = vsel %vm2147_vm14, %v2211_v30, %v2083_v61  ;;  %v1196_v35 = vmul.f32 1.0614054, %v5956_v60  ;;  %v5959_v27 = vld [vmem:[#allocation92_spill] sm:$0xff] }
 0x282   : > { %2609 = vmatprep.mubr.f32.mxu0 %v2404_v63  ;;  %v2406_v5 = vmul.f32 %v2342_v34, %v5955_v59  ;;  %v2213_v50 = vsub.f32 0.0, %v2085_v8  ;;  %v2339_v17 = vadd.f32 1.0, %v2275_v57  ;;  %v1576_v1 = vmul.f32 %v5941_v37, %v1512_v26 }
 0x283   : > { %v1450_v38 = vmul.f32 %v5946_v39, %v1386_v24  ;;  %v1383_v25 = vadd.f32 1.4214138, %v1319_v21  ;;  %v1257_v45 = vadd.f32 -1.4531521, %v1193_v56  ;;  %v1260_v51 = vadd.f32 -1.4531521, %v1196_v35 }
 0x284   : > { %2754 = vmatprep.mubr.f32.mxu1 %v2406_v5  ;;  %v2277_v48 = vsel %vm2149_vm15, %v2213_v50, %v2085_v8  ;;  %v1198_v36 = vmul.f32 1.0614054, %v5957_v43  ;;  %v2403_v33 = vmul.f32 %v2339_v17, %v5958_v49  ;;  %v1640_v0 = vadd.f32 0.2548296, %v1576_v1  ;;  %v5961_v56 = vld [vmem:[#allocation144_spill] sm:$0xff] }
 0x285   : > { %v2341_v61 = vadd.f32 1.0, %v2277_v48  ;;  %v1514_v55 = vadd.f32 -0.28449672, %v1450_v38  ;;  %vm2152_vm0 = vcmp.lt.f32.partialorder %v5959_v27, 0.0  ;;  %v1447_v63 = vmul.f32 %v5950_v16, %v1383_v25  ;;  %v5962_v17 = vld [vmem:[#allocation136_spill] sm:$0xff] }
 0x286   : > { %v1321_v34 = vmul.f32 %v5954_v12, %v1257_v45  ;;  %v1324_v30 = vmul.f32 %v5956_v60, %v1260_v51  ;;  %v1262_v26 = vadd.f32 -1.4531521, %v1198_v36  ;;  %2610 = vmatmul.mubr.f32.gmra.mxu0 %v2403_v33  ;;  %v1704_v24 = vmul.f32 %v5941_v37, %v1640_v0  ;;  %v5963_v48 = vld [vmem:[#allocation148_spill] sm:$0xff]  ;;  %v5964_v51 = vld [vmem:[#allocation95_spill] sm:$0xff] }
 0x287   : > { %v2405_v8 = vmul.f32 %v2341_v61, %v5960_v52  ;;  %v1578_v21 = vmul.f32 %v5946_v39, %v1514_v55  ;;  %v1195_v59 = vmul.f32 1.0614054, %v5961_v56  ;;  %v1511_v5 = vadd.f32 -0.28449672, %v1447_v63 }
 0x288   : > { %v1385_v57 = vadd.f32 1.4214138, %v1321_v34  ;;  %v1388_v50 = vadd.f32 1.4214138, %v1324_v30  ;;  %v1326_v35 = vmul.f32 %v5957_v43, %v1262_v26  ;;  %v2024_v1 = vmul.f32 %v5962_v17, %v1704_v24 }
 0x289   : > { %2755 = vmatmul.mubr.f32.gmra.mxu1 %v2405_v8  ;;  %v1642_v38 = vadd.f32 0.2548296, %v1578_v21  ;;  %v1259_v25 = vadd.f32 -1.4531521, %v1195_v59  ;;  %v1197_v45 = vmul.f32 1.0614054, %v5963_v48  ;;  %v1575_v37 = vmul.f32 %v5950_v16, %v1511_v5 }
 0x28a   : > { %vm2154_vm1 = vcmp.lt.f32.partialorder %v5964_v51, 0.0  ;;  %v1449_v36 = vmul.f32 %v5954_v12, %v1385_v57  ;;  %v1452_v49 = vmul.f32 %v5956_v60, %v1388_v50  ;;  %v1390_v33 = vadd.f32 1.4214138, %v1326_v35  ;;  %v5965_v8 = vld [vmem:[#allocation86_spill] sm:$0xff]  ;;  %v5966_v21 = vld [vmem:[#allocation141_spill] sm:$0xff] }
 0x28b   : > { %v2088_v61 = vsub.f32 1.0, %v2024_v1  ;;  %v1706_v0 = vmul.f32 %v5946_v39, %v1642_v38  ;;  %v1323_v55 = vmul.f32 %v5961_v56, %v1259_v25  ;;  %v1261_v63 = vadd.f32 -1.4531521, %v1197_v45 }
 0x28c   : > { %v1639_v34 = vadd.f32 0.2548296, %v1575_v37  ;;  %v1513_v30 = vadd.f32 -0.28449672, %v1449_v36  ;;  %v1516_v26 = vadd.f32 -0.28449672, %v1452_v49  ;;  %v1454_v52 = vmul.f32 %v5957_v43, %v1390_v33 }
 0x28d   : > { %vm2151_vm2 = vcmp.lt.f32.partialorder %v5965_v8, 0.0  ;;  %v2216_v24 = vsub.f32 0.0, %v2088_v61  ;;  %v2026_v59 = vmul.f32 %v5966_v21, %v1706_v0  ;;  %v1387_v5 = vadd.f32 1.4214138, %v1323_v55  ;;  %v5967_v36 = vld [vmem:[#allocation131_spill] sm:$0xff]  ;;  %v5968_v55 = vld [vmem:[#allocation89_spill] sm:$0xff] }
 0x28e   : > { %v1325_v57 = vmul.f32 %v5963_v48, %v1261_v63  ;;  %v1703_v50 = vmul.f32 %v5950_v16, %v1639_v34  ;;  %v1577_v39 = vmul.f32 %v5954_v12, %v1513_v30  ;;  %v1580_v35 = vmul.f32 %v5956_v60, %v1516_v26  ;;  %v5969_v16 = vld [vmem:[#allocation106_spill] sm:$0xff] }
 0x28f   : > { %v1518_v17 = vadd.f32 -0.28449672, %v1454_v52  ;;  %v2280_v1 = vsel %vm2152_vm0, %v2216_v24, %v2088_v61  ;;  %v2090_v38 = vsub.f32 1.0, %v2026_v59  ;;  %v1451_v25 = vmul.f32 %v5961_v56, %v1387_v5  ;;  %v5970_v61 = vld [vmem:[#allocation115_spill] sm:$0xff] }
 0x290   : > { %v1389_v45 = vadd.f32 1.4214138, %v1325_v57  ;;  %v2344_v37 = vadd.f32 1.0, %v2280_v1  ;;  %v2023_v49 = vmul.f32 %v5967_v36, %v1703_v50  ;;  %v1641_v33 = vadd.f32 0.2548296, %v1577_v39  ;;  %v5971_v39 = vld [vmem:[#allocation109_spill] sm:$0xff] }
 0x291   : > { %v1644_v0 = vadd.f32 0.2548296, %v1580_v35  ;;  %vm2153_vm3 = vcmp.lt.f32.partialorder %v5968_v55, 0.0  ;;  %vm2156_vm4 = vcmp.lt.f32.partialorder %v5969_v16, 0.0  ;;  %v2218_v63 = vsub.f32 0.0, %v2090_v38  ;;  %v5972_v1 = vld [vmem:[#allocation135_spill] sm:$0xff] }
 0x292   : > { %v1582_v34 = vmul.f32 %v5957_v43, %v1518_v17  ;;  %v1515_v30 = vadd.f32 -0.28449672, %v1451_v25  ;;  %v1453_v27 = vmul.f32 %v5963_v48, %v1389_v45  ;;  %v2408_v26 = vmul.f32 %v2344_v37, %v5970_v61  ;;  %v5973_v45 = vld [vmem:[#allocation154_spill] sm:$0xff]  ;;  %v5982_v55 = vld [vmem:[#allocation111_spill] sm:$0xff] }
 0x293   : > { %v2087_v52 = vsub.f32 1.0, %v2023_v49  ;;  %v1705_v24 = vmul.f32 %v5954_v12, %v1641_v33  ;;  %v1708_v21 = vmul.f32 %v5956_v60, %v1644_v0  ;;  %v2282_v59 = vsel %vm2154_vm1, %v2218_v63, %v2090_v38  ;;  %v5974_v38 = vld [vmem:[#allocation100_spill] sm:$0xff]  ;;  %v5975_v49 = vld [vmem:[#allocation119_spill] sm:$0xff] }
 0x294   : > { %v1646_v5 = vadd.f32 0.2548296, %v1582_v34  ;;  %v1579_v57 = vmul.f32 %v5961_v56, %v1515_v30  ;;  %v1517_v50 = vadd.f32 -0.28449672, %v1453_v27  ;;  %vm2158_vm5 = vcmp.lt.f32.partialorder %v5971_v39, 0.0  ;;  %2614 = vmatprep.mubr.f32.mxu0 %v2408_v26  ;;  %v5976_v27 = vld [vmem:[#allocation157_spill] sm:$0xff] }
 0x295   : > { %v2346_v35 = vadd.f32 1.0, %v2282_v59  ;;  %v2215_v17 = vsub.f32 0.0, %v2087_v52  ;;  %v2025_v25 = vmul.f32 %v5972_v1, %v1705_v24  ;;  %v2028_v37 = vmul.f32 %v5973_v45, %v1708_v21 }
 0x296   : > { %v1710_v12 = vmul.f32 %v5957_v43, %v1646_v5  ;;  %v1643_v36 = vadd.f32 0.2548296, %v1579_v57  ;;  %v1581_v60 = vmul.f32 %v5963_v48, %v1517_v50  ;;  %v1200_v51 = vmul.f32 1.0614054, %v4584_v11  ;;  %v5977_v57 = vld [vmem:[#allocation103_spill] sm:$0xff]  ;;  %v5978_v50 = vld [vmem:[#allocation105_spill] sm:$0xff] }
 0x297   : > { %vm2155_vm6 = vcmp.lt.f32.partialorder %v5974_v38, 0.0  ;;  %v2410_v33 = vmul.f32 %v2346_v35, %v5975_v49  ;;  %v2279_v0 = vsel %vm2151_vm2, %v2215_v17, %v2087_v52  ;;  %v2089_v63 = vsub.f32 1.0, %v2025_v25  ;;  %v5979_v52 = vld [vmem:[#allocation146_spill] sm:$0xff]  ;;  %v5980_v49 = vld [vmem:[#allocation151_spill] sm:$0xff] }
 0x298   : > { %v2092_v34 = vsub.f32 1.0, %v2028_v37  ;;  %v2343_v30 = vadd.f32 1.0, %v2279_v0  ;;  %v2030_v61 = vmul.f32 %v5976_v27, %v1710_v12  ;;  %v1707_v26 = vmul.f32 %v5961_v56, %v1643_v36 }
 0x299   : > { %v1645_v43 = vadd.f32 0.2548296, %v1581_v60  ;;  %2759 = vmatprep.mubr.f32.mxu1 %v2410_v33  ;;  %v2217_v24 = vsub.f32 0.0, %v2089_v63  ;;  %v1264_v59 = vadd.f32 -1.4531521, %v1200_v51  ;;  %vm2157_vm7 = vcmp.lt.f32.partialorder %v5977_v57, 0.0 }
 0x29a   : > { %v2220_v21 = vsub.f32 0.0, %v2092_v34  ;;  %v1202_v5 = vmul.f32 1.0614054, %v4606_v20  ;;  %v2407_v35 = vmul.f32 %v2343_v30, %v5978_v50  ;;  %v2094_v8 = vsub.f32 1.0, %v2030_v61  ;;  %v5983_v61 = vld [vmem:[#allocation128_spill] sm:$0xff]  ;;  %v5990_v57 = vld [vmem:[#allocation123_spill] sm:$0xff] }
 0x29b   : > { %v2027_v17 = vmul.f32 %v5979_v52, %v1707_v26  ;;  %v1709_v1 = vmul.f32 %v5963_v48, %v1645_v43  ;;  %v2281_v25 = vsel %vm2153_vm3, %v2217_v24, %v2089_v63  ;;  %v1328_v45 = vmul.f32 %v4584_v11, %v1264_v59  ;;  %v5981_v48 = vld [vmem:[#allocation158_spill] sm:$0xff] }
 0x29c   : > { %v2284_v56 = vsel %vm2156_vm4, %v2220_v21, %v2092_v34  ;;  %v1266_v37 = vadd.f32 -1.4531521, %v1202_v5  ;;  %2615 = vmatmul.mubr.f32.gmra.mxu0 %v2407_v35  ;;  %v2345_v12 = vadd.f32 1.0, %v2281_v25  ;;  %v2222_v60 = vsub.f32 0.0, %v2094_v8  ;;  %v5984_v35 = vld [vmem:[#allocation163_spill] sm:$0xff] }
 0x29d   : > { %v2348_v36 = vadd.f32 1.0, %v2284_v56  ;;  %v2091_v51 = vsub.f32 1.0, %v2027_v17  ;;  %v2029_v33 = vmul.f32 %v5980_v49, %v1709_v1  ;;  %v1392_v0 = vadd.f32 1.4214138, %v1328_v45  ;;  %v5985_v1 = vld [vmem:[#allocation137_spill] sm:$0xff] }
 0x29e   : > { %v1330_v30 = vmul.f32 %v4606_v20, %v1266_v37  ;;  %v1199_v27 = vmul.f32 1.0614054, %v5981_v48  ;;  %v2409_v63 = vmul.f32 %v2345_v12, %v5982_v55  ;;  %v2286_v34 = vsel %vm2158_vm5, %v2222_v60, %v2094_v8  ;;  %v5986_v60 = vld [vmem:[#allocation120_spill] sm:$0xff] }
 0x29f   : > { %v2412_v16 = vmul.f32 %v2348_v36, %v5983_v61  ;;  %v2219_v26 = vsub.f32 0.0, %v2091_v51  ;;  %v2350_v43 = vadd.f32 1.0, %v2286_v34  ;;  %v2093_v24 = vsub.f32 1.0, %v2029_v33  ;;  %v5987_v33 = vld [vmem:[#allocation186_spill] sm:$0xff] }
 0x2a0   : > { %v1456_v21 = vmul.f32 %v4584_v11, %v1392_v0  ;;  %v1394_v59 = vadd.f32 1.4214138, %v1330_v30  ;;  %2760 = vmatmul.mubr.f32.gmra.mxu1 %v2409_v63  ;;  %v1263_v50 = vadd.f32 -1.4531521, %v1199_v27  ;;  %v1201_v52 = vmul.f32 1.0614054, %v5984_v35 }
 0x2a1   : > { %2619 = vmatprep.mubr.f32.mxu0 %v2412_v16  ;;  %v2283_v5 = vsel %vm2155_vm6, %v2219_v26, %v2091_v51  ;;  %v1204_v17 = vmul.f32 1.0614054, %v4632_v53  ;;  %v2414_v25 = vmul.f32 %v2350_v43, %v5985_v1  ;;  %v2221_v8 = vsub.f32 0.0, %v2093_v24  ;;  %v5988_v26 = vld [vmem:[#allocation173_spill] sm:$0xff] }
 0x2a2   : > { %v2347_v39 = vadd.f32 1.0, %v2283_v5  ;;  %v1520_v56 = vadd.f32 -0.28449672, %v1456_v21  ;;  %v1458_v45 = vmul.f32 %v4606_v20, %v1394_v59  ;;  %v1327_v37 = vmul.f32 %v5981_v48, %v1263_v50  ;;  %v5989_v21 = vld [vmem:[#allocation124_spill] sm:$0xff] }
 0x2a3   : > { %v1265_v12 = vadd.f32 -1.4531521, %v1201_v52  ;;  %v1268_v36 = vadd.f32 -1.4531521, %v1204_v17  ;;  %2764 = vmatprep.mubr.f32.mxu1 %v2414_v25  ;;  %v2285_v51 = vsel %vm2157_vm7, %v2221_v8, %v2093_v24  ;;  %v1206_v0 = vmul.f32 1.0614054, %v5987_v33 }
 0x2a4   : > { %v2411_v38 = vmul.f32 %v2347_v39, %v5986_v60  ;;  %v1584_v49 = vmul.f32 %v4584_v11, %v1520_v56  ;;  %v2349_v30 = vadd.f32 1.0, %v2285_v51  ;;  %v1522_v27 = vadd.f32 -0.28449672, %v1458_v45  ;;  %v5991_v45 = vld [vmem:[#allocation178_spill] sm:$0xff] }
 0x2a5   : > { %v1391_v55 = vadd.f32 1.4214138, %v1327_v37  ;;  %v1329_v63 = vmul.f32 %v5984_v35, %v1265_v12  ;;  %v1332_v16 = vmul.f32 %v4632_v53, %v1268_v36  ;;  %v1270_v34 = vadd.f32 -1.4531521, %v1206_v0  ;;  %v5992_v12 = vld [vmem:[#allocation127_spill] sm:$0xff]  ;;  %v5993_v36 = vld [vmem:[#allocation169_spill] sm:$0xff] }
 0x2a6   : > { %2620 = vmatmul.mubr.f32.gmra.mxu0 %v2411_v38  ;;  %v1648_v61 = vadd.f32 0.2548296, %v1584_v49  ;;  %v1203_v43 = vmul.f32 1.0614054, %v5988_v26  ;;  %vm2160_vm8 = vcmp.lt.f32.partialorder %v5989_v21, 0.0  ;;  %v2413_v24 = vmul.f32 %v2349_v30, %v5990_v57 }
 0x2a7   : > { %v1586_v59 = vmul.f32 %v4606_v20, %v1522_v27  ;;  %v1455_v5 = vmul.f32 %v5981_v48, %v1391_v55  ;;  %v1393_v50 = vadd.f32 1.4214138, %v1329_v63  ;;  %v1396_v17 = vadd.f32 1.4214138, %v1332_v16 }
 0x2a8   : > { %v1712_v52 = vmul.f32 %v4584_v11, %v1648_v61  ;;  %v1334_v1 = vmul.f32 %v5987_v33, %v1270_v34  ;;  %v1267_v25 = vadd.f32 -1.4531521, %v1203_v43  ;;  %2765 = vmatmul.mubr.f32.gmra.mxu1 %v2413_v24  ;;  %v1205_v37 = vmul.f32 1.0614054, %v5991_v45  ;;  %v5994_v34 = vld [vmem:[#allocation172_spill] sm:$0xff] }
 0x2a9   : > { %v1650_v39 = vadd.f32 0.2548296, %v1586_v59  ;;  %v1519_v8 = vadd.f32 -0.28449672, %v1455_v5  ;;  %v1457_v56 = vmul.f32 %v5984_v35, %v1393_v50  ;;  %vm2162_vm9 = vcmp.lt.f32.partialorder %v5992_v12, 0.0  ;;  %v5995_v5 = vld [vmem:[#allocation113_spill] sm:$0xff] }
 0x2aa   : > { %v2032_v60 = vmul.f32 %v5993_v36, %v1712_v52  ;;  %v1460_v38 = vmul.f32 %v4632_v53, %v1396_v17  ;;  %v1398_v51 = vadd.f32 1.4214138, %v1334_v1  ;;  %v1331_v11 = vmul.f32 %v5988_v26, %v1267_v25 }
 0x2ab   : > { %v1714_v49 = vmul.f32 %v4606_v20, %v1650_v39  ;;  %v1583_v0 = vmul.f32 %v5981_v48, %v1519_v8  ;;  %v1521_v30 = vadd.f32 -0.28449672, %v1457_v56  ;;  %v1269_v27 = vadd.f32 -1.4531521, %v1205_v37  ;;  %v5996_v56 = vld [vmem:[#allocation121_spill] sm:$0xff] }
 0x2ac   : > { %v2096_v55 = vsub.f32 1.0, %v2032_v60  ;;  %v1524_v63 = vadd.f32 -0.28449672, %v1460_v38  ;;  %v1462_v61 = vmul.f32 %v5987_v33, %v1398_v51  ;;  %v1395_v16 = vadd.f32 1.4214138, %v1331_v11  ;;  %v5997_v51 = vld [vmem:[#allocation139_spill] sm:$0xff] }
 0x2ad   : > { %v2034_v43 = vmul.f32 %v5994_v34, %v1714_v49  ;;  %v1647_v57 = vadd.f32 0.2548296, %v1583_v0  ;;  %v1585_v24 = vmul.f32 %v5984_v35, %v1521_v30  ;;  %v1333_v59 = vmul.f32 %v5991_v45, %v1269_v27  ;;  %v5998_v0 = vld [vmem:[#allocation160_spill] sm:$0xff] }
 0x2ae   : > { %vm2159_vm10 = vcmp.lt.f32.partialorder %v5995_v5, 0.0  ;;  %v2224_v50 = vsub.f32 0.0, %v2096_v55  ;;  %v1588_v20 = vmul.f32 %v4632_v53, %v1524_v63  ;;  %v1526_v52 = vadd.f32 -0.28449672, %v1462_v61  ;;  %v6007_v5 = vld [vmem:[#allocation134_spill] sm:$0xff] }
 0x2af   : > { %v1459_v17 = vmul.f32 %v5988_v26, %v1395_v16  ;;  %v2098_v1 = vsub.f32 1.0, %v2034_v43  ;;  %v1711_v25 = vmul.f32 %v5981_v48, %v1647_v57  ;;  %v1649_v39 = vadd.f32 0.2548296, %v1585_v24  ;;  %v6000_v16 = vld [vmem:[#allocation145_spill] sm:$0xff] }
 0x2b0   : > { %v1397_v8 = vadd.f32 1.4214138, %v1333_v59  ;;  %vm2161_vm11 = vcmp.lt.f32.partialorder %v5996_v56, 0.0  ;;  %v2288_v37 = vsel %vm2160_vm8, %v2224_v50, %v2096_v55  ;;  %v1652_v36 = vadd.f32 0.2548296, %v1588_v20  ;;  %v5999_v55 = vld [vmem:[#allocation143_spill] sm:$0xff] }
 0x2b1   : > { %v1590_v60 = vmul.f32 %v5987_v33, %v1526_v52  ;;  %v1523_v38 = vadd.f32 -0.28449672, %v1459_v17  ;;  %vm2164_vm12 = vcmp.lt.f32.partialorder %v5997_v51, 0.0  ;;  %v2352_v11 = vadd.f32 1.0, %v2288_v37  ;;  %v6001_v24 = vld [vmem:[#allocation165_spill] sm:$0xff]  ;;  %v6003_v37 = vld [vmem:[#allocation130_spill] sm:$0xff] }
 0x2b2   : > { %v2226_v49 = vsub.f32 0.0, %v2098_v1  ;;  %v2031_v30 = vmul.f32 %v5998_v0, %v1711_v25  ;;  %v1713_v27 = vmul.f32 %v5984_v35, %v1649_v39  ;;  %v1716_v48 = vmul.f32 %v4632_v53, %v1652_v36  ;;  %v6002_v20 = vld [vmem:[#allocation185_spill] sm:$0xff] }
 0x2b3   : > { %v1654_v63 = vadd.f32 0.2548296, %v1590_v60  ;;  %v1587_v61 = vmul.f32 %v5988_v26, %v1523_v38  ;;  %v1461_v21 = vmul.f32 %v5991_v45, %v1397_v8  ;;  %vm2166_vm13 = vcmp.lt.f32.partialorder %v5999_v55, 0.0  ;;  %v6004_v36 = vld [vmem:[#allocation153_spill] sm:$0xff]  ;;  %v6005_v60 = vld [vmem:[#allocation187_spill] sm:$0xff]  ;;  %v6014_v55 = vld [vmem:[#allocation166_spill] sm:$0xff] }
 0x2b4   : > { %v2416_v34 = vmul.f32 %v2352_v11, %v6000_v16  ;;  %v2290_v43 = vsel %vm2162_vm9, %v2226_v49, %v2098_v1  ;;  %v2095_v57 = vsub.f32 1.0, %v2031_v30  ;;  %v2033_v59 = vmul.f32 %v6001_v24, %v1713_v27 }
 0x2b5   : > { %v2354_v50 = vadd.f32 1.0, %v2290_v43  ;;  %v2036_v35 = vmul.f32 %v6002_v20, %v1716_v48  ;;  %v1718_v53 = vmul.f32 %v5987_v33, %v1654_v63  ;;  %v1651_v52 = vadd.f32 0.2548296, %v1587_v61  ;;  %v6006_v61 = vld [vmem:[#allocation175_spill] sm:$0xff] }
 0x2b6   : > { %2624 = vmatprep.mubr.f32.mxu0 %v2416_v34  ;;  %v2223_v17 = vsub.f32 0.0, %v2095_v57  ;;  %v2097_v25 = vsub.f32 1.0, %v2033_v59  ;;  %v1525_v39 = vadd.f32 -0.28449672, %v1461_v21  ;;  %v1208_v8 = vmul.f32 1.0614054, %v4678_v46 }
 0x2b7   : > { %vm2163_vm14 = vcmp.lt.f32.partialorder %v6003_v37, 0.0  ;;  %v2418_v12 = vmul.f32 %v2354_v50, %v6004_v36  ;;  %v2100_v1 = vsub.f32 1.0, %v2036_v35  ;;  %v2038_v38 = vmul.f32 %v6005_v60, %v1718_v53  ;;  %v6010_v36 = vld [vmem:[#allocation188_spill] sm:$0xff]  ;;  %v6011_v60 = vld [vmem:[#allocation162_spill] sm:$0xff] }
 0x2b8   : > { %v1715_v11 = vmul.f32 %v5988_v26, %v1651_v52  ;;  %v2287_v49 = vsel %vm2159_vm10, %v2223_v17, %v2095_v57  ;;  %v2225_v33 = vsub.f32 0.0, %v2097_v25  ;;  %v1589_v0 = vmul.f32 %v5991_v45, %v1525_v39  ;;  %v6008_v57 = vld [vmem:[#allocation138_spill] sm:$0xff] }
 0x2b9   : > { %v1272_v30 = vadd.f32 -1.4531521, %v1208_v8  ;;  %2769 = vmatprep.mubr.f32.mxu1 %v2418_v12  ;;  %v2351_v27 = vadd.f32 1.0, %v2287_v49  ;;  %v2228_v48 = vsub.f32 0.0, %v2100_v1  ;;  %v2102_v63 = vsub.f32 1.0, %v2038_v38  ;;  %v6009_v17 = vld [vmem:[#allocation142_spill] sm:$0xff] }
 0x2ba   : > { %v2035_v21 = vmul.f32 %v6006_v61, %v1715_v11  ;;  %v2289_v16 = vsel %vm2161_vm11, %v2225_v33, %v2097_v25  ;;  %v1653_v34 = vadd.f32 0.2548296, %v1589_v0  ;;  %v1210_v26 = vmul.f32 1.0614054, %v4695_v62 }
 0x2bb   : > { %v1336_v43 = vmul.f32 %v4678_v46, %v1272_v30  ;;  %vm2165_vm15 = vcmp.lt.f32.partialorder %v6007_v5, 0.0  ;;  %v2415_v24 = vmul.f32 %v2351_v27, %v6008_v57  ;;  %v2353_v59 = vadd.f32 1.0, %v2289_v16  ;;  %v6013_v30 = vld [vmem:[#allocation192_spill] sm:$0xff]  ;;  %v6017_v5 = vld [vmem:[#allocation161_spill] sm:$0xff] }
 0x2bc   : > { %v2292_v50 = vsel %vm2164_vm12, %v2228_v48, %v2100_v1  ;;  %v2230_v20 = vsub.f32 0.0, %v2102_v63  ;;  %v2099_v53 = vsub.f32 1.0, %v2035_v21  ;;  %v1717_v52 = vmul.f32 %v5991_v45, %v1653_v34  ;;  %v6012_v1 = vld [vmem:[#allocation180_spill] sm:$0xff] }
 0x2bd   : > { %v2356_v35 = vadd.f32 1.0, %v2292_v50  ;;  %v1400_v56 = vadd.f32 1.4214138, %v1336_v43  ;;  %2625 = vmatmul.mubr.f32.gmra.mxu0 %v2415_v24  ;;  %v2417_v25 = vmul.f32 %v2353_v59, %v6009_v17  ;;  %v1274_v8 = vadd.f32 -1.4531521, %v1210_v26 }
 0x2be   : > { %v2294_v39 = vsel %vm2166_vm13, %v2230_v20, %v2102_v63  ;;  %v1207_v12 = vmul.f32 1.0614054, %v6010_v36  ;;  %v2227_v51 = vsub.f32 0.0, %v2099_v53  ;;  %v2037_v49 = vmul.f32 %v6012_v1, %v1717_v52  ;;  %v6015_v20 = vld [vmem:[#allocation155_spill] sm:$0xff] }
 0x2bf   : > { %v2420_v38 = vmul.f32 %v2356_v35, %v6011_v60  ;;  %v2358_v11 = vadd.f32 1.0, %v2294_v39  ;;  %2770 = vmatmul.mubr.f32.gmra.mxu1 %v2417_v25  ;;  %v1464_v33 = vmul.f32 %v4678_v46, %v1400_v56  ;;  %v1338_v45 = vmul.f32 %v4695_v62, %v1274_v8 }
 0x2c0   : > { %v1271_v0 = vadd.f32 -1.4531521, %v1207_v12  ;;  %v1209_v27 = vmul.f32 1.0614054, %v6013_v30  ;;  %v2291_v63 = vsel %vm2163_vm14, %v2227_v51, %v2099_v53  ;;  %v2101_v61 = vsub.f32 1.0, %v2037_v49 }
 0x2c1   : > { %2629 = vmatprep.mubr.f32.mxu0 %v2420_v38  ;;  %v2422_v48 = vmul.f32 %v2358_v11, %v6014_v55  ;;  %v1212_v21 = vmul.f32 1.0614054, %v4720_v3  ;;  %v2355_v16 = vadd.f32 1.0, %v2291_v63  ;;  %v1528_v34 = vadd.f32 -0.28449672, %v1464_v33  ;;  %v6016_v38 = vld [vmem:[#allocation152_spill] sm:$0xff] }
 0x2c2   : > { %v1402_v43 = vadd.f32 1.4214138, %v1338_v45  ;;  %v1335_v26 = vmul.f32 %v6010_v36, %v1271_v0  ;;  %v1030_v57 = vadd.f32 1.0, %v4815_v47  ;;  %v2229_v24 = vsub.f32 0.0, %v2101_v61 }
 0x2c3   : > { %2774 = vmatprep.mubr.f32.mxu1 %v2422_v48  ;;  %v1273_v59 = vadd.f32 -1.4531521, %v1209_v27  ;;  %v1276_v50 = vadd.f32 -1.4531521, %v1212_v21  ;;  %v2419_v35 = vmul.f32 %v2355_v16, %v6015_v20  ;;  %v1592_v52 = vmul.f32 %v4678_v46, %v1528_v34 }
 0x2c4   : > { %v1466_v37 = vmul.f32 %v4695_v62, %v1402_v43  ;;  %v1399_v53 = vadd.f32 1.4214138, %v1335_v26  ;;  %v2293_v56 = vsel %vm2165_vm15, %v2229_v24, %v2101_v61  ;;  %v1214_v47 = vmul.f32 1.0614054, %v4746_v31  ;;  %v6018_v61 = vld [vmem:[#allocation195_spill] sm:$0xff] }
 0x2c5   : > { %v1337_v17 = vmul.f32 %v6013_v30, %v1273_v59  ;;  %v1340_v25 = vmul.f32 %v4720_v3, %v1276_v50  ;;  %2630 = vmatmul.mubr.f32.gmra.mxu0 %v2419_v35  ;;  %v2357_v39 = vadd.f32 1.0, %v2293_v56  ;;  %v1656_v8 = vadd.f32 0.2548296, %v1592_v52  ;;  %v6020_v52 = vld [vmem:[#allocation147_spill] sm:$0xff] }
 0x2c6   : > { %v1530_v12 = vadd.f32 -0.28449672, %v1466_v37  ;;  %v1463_v60 = vmul.f32 %v6010_v36, %v1399_v53  ;;  %vm2168_vm0 = vcmp.lt.f32.partialorder %v6016_v38, 0.0  ;;  %3451 = vrcp.f32 %v1030_v57  ;;  %v6025_v38 = vld [vmem:[#allocation194_spill] sm:$0xff] }
 0x2c7   : > { %v1401_v11 = vadd.f32 1.4214138, %v1337_v17  ;;  %v1404_v51 = vadd.f32 1.4214138, %v1340_v25  ;;  %v1278_v1 = vadd.f32 -1.4531521, %v1214_v47  ;;  %v2421_v49 = vmul.f32 %v2357_v39, %v6017_v5 }
 0x2c8   : > { %v1720_v33 = vmul.f32 %v4678_v46, %v1656_v8  ;;  %v1594_v45 = vmul.f32 %v4695_v62, %v1530_v12  ;;  %v1527_v0 = vadd.f32 -0.28449672, %v1463_v60  ;;  %v1211_v63 = vmul.f32 1.0614054, %v4707_v19  ;;  %v6019_v46 = vld [vmem:[#allocation159_spill] sm:$0xff] }
 0x2c9   : > { %v1465_v27 = vmul.f32 %v6013_v30, %v1401_v11  ;;  %v1468_v55 = vmul.f32 %v4720_v3, %v1404_v51  ;;  %v1342_v48 = vmul.f32 %v4746_v31, %v1278_v1  ;;  %2775 = vmatmul.mubr.f32.gmra.mxu1 %v2421_v49  ;;  %v1213_v43 = vmul.f32 1.0614054, %v4717_v15  ;;  %v6021_v11 = vld [vmem:[#allocation150_spill] sm:$0xff]  ;;  %v6022_v51 = vld [vmem:[#allocation168_spill] sm:$0xff] }
 0x2ca   : > { %v2040_v21 = vmul.f32 %v6018_v61, %v1720_v33  ;;  %v1658_v16 = vadd.f32 0.2548296, %v1594_v45  ;;  %v1591_v34 = vmul.f32 %v6010_v36, %v1527_v0  ;;  %vm2170_vm1 = vcmp.lt.f32.partialorder %v6019_v46, 0.0  ;;  %v6023_v49 = vld [vmem:[#allocation190_spill] sm:$0xff] }
 0x2cb   : > { %3453 = vpow2.f32 %v4818_v29  ;;  %v1529_v26 = vadd.f32 -0.28449672, %v1465_v27  ;;  %v1532_v57 = vadd.f32 -0.28449672, %v1468_v55  ;;  %v1406_v24 = vadd.f32 1.4214138, %v1342_v48 }
 0x2cc   : > { %v2104_v59 = vsub.f32 1.0, %v2040_v21  ;;  %v1722_v50 = vmul.f32 %v4695_v62, %v1658_v16  ;;  %v1655_v20 = vadd.f32 0.2548296, %v1591_v34  ;;  %v1275_v35 = vadd.f32 -1.4531521, %v1211_v63  ;;  %v6024_v21 = vld [vmem:[#allocation174_spill] sm:$0xff] }
 0x2cd   : > { %vm2167_vm2 = vcmp.lt.f32.partialorder %v6020_v52, 0.0  ;;  %v1593_v37 = vmul.f32 %v6013_v30, %v1529_v26  ;;  %v1596_v53 = vmul.f32 %v4720_v3, %v1532_v57  ;;  %v1470_v56 = vmul.f32 %v4746_v31, %v1406_v24  ;;  %v6028_v52 = vld [vmem:[#allocation164_spill] sm:$0xff] }
 0x2ce   : > { %v1277_v17 = vadd.f32 -1.4531521, %v1213_v43  ;;  %v2232_v25 = vsub.f32 0.0, %v2104_v59  ;;  %v2042_v29 = vmul.f32 %v4697_v14, %v1722_v50  ;;  %v1719_v47 = vmul.f32 %v6010_v36, %v1655_v20  ;;  %v6026_v50 = vld [vmem:[#allocation177_spill] sm:$0xff] }
 0x2cf   : > { %v1339_v39 = vmul.f32 %v4707_v19, %v1275_v35  ;;  %v1657_v8 = vadd.f32 0.2548296, %v1593_v37  ;;  %v1660_v62 = vadd.f32 0.2548296, %v1596_v53  ;;  %v1534_v12 = vadd.f32 -0.28449672, %v1470_v56 }
 0x2d0   : > { %v1341_v60 = vmul.f32 %v4717_v15, %v1277_v17  ;;  %vm2169_vm3 = vcmp.lt.f32.partialorder %v6021_v11, 0.0  ;;  %vm2172_vm4 = vcmp.lt.f32.partialorder %v6022_v51, 0.0  ;;  %v2296_v1 = vsel %vm2168_vm0, %v2232_v25, %v2104_v59  ;;  %v6027_v25 = vld [vmem:[#allocation176_spill] sm:$0xff]  ;;  %v6031_v11 = vld [vmem:[#allocation171_spill] sm:$0xff] }
 0x2d1   : > { %v2106_v5 = vsub.f32 1.0, %v2042_v29  ;;  %v2039_v33 = vmul.f32 %v6023_v49, %v1719_v47  ;;  %v1403_v14 = vadd.f32 1.4214138, %v1339_v39  ;;  %v2360_v45 = vadd.f32 1.0, %v2296_v1  ;;  %v6032_v51 = vld [vmem:[#allocation183_spill] sm:$0xff] }
 0x2d2   : > { %v1721_v36 = vmul.f32 %v6013_v30, %v1657_v8  ;;  %v1724_v0 = vmul.f32 %v4720_v3, %v1660_v62  ;;  %v1598_v27 = vmul.f32 %v4746_v31, %v1534_v12  ;;  %v1405_v61 = vadd.f32 1.4214138, %v1341_v60 }
 0x2d3   : > { %v2234_v55 = vsub.f32 0.0, %v2106_v5  ;;  %v2103_v48 = vsub.f32 1.0, %v2039_v33  ;;  %v1467_v63 = vmul.f32 %v4707_v19, %v1403_v14  ;;  %v2424_v16 = vmul.f32 %v2360_v45, %v6024_v21  ;;  %v5297_v57 = vpop.eup %3451  ;;  %v6030_v21 = vld [vmem:[#allocation167_spill] sm:$0xff] }
 0x2d4   : > { %v2041_v34 = vmul.f32 %v6025_v38, %v1721_v36  ;;  %v2044_v43 = vmul.f32 %v4740_v58, %v1724_v0  ;;  %v1662_v26 = vadd.f32 0.2548296, %v1598_v27  ;;  %v1469_v59 = vmul.f32 %v4717_v15, %v1405_v61 }
 0x2d5   : > { %v2298_v30 = vsel %vm2170_vm1, %v2234_v55, %v2106_v5  ;;  %v2231_v3 = vsub.f32 0.0, %v2103_v48  ;;  %v1531_v24 = vadd.f32 -0.28449672, %v1467_v63  ;;  %vm2174_vm5 = vcmp.lt.f32.partialorder %v6026_v50, 0.0  ;;  %2634 = vmatprep.mubr.f32.mxu0 %v2424_v16  ;;  %v6029_v5 = vld [vmem:[#allocation170_spill] sm:$0xff] }
 0x2d6   : > { %v2362_v20 = vadd.f32 1.0, %v2298_v30  ;;  %v2105_v35 = vsub.f32 1.0, %v2041_v34  ;;  %v2108_v37 = vsub.f32 1.0, %v2044_v43  ;;  %v1726_v53 = vmul.f32 %v4746_v31, %v1662_v26 }
 0x2d7   : > { %v2295_v58 = vsel %vm2167_vm2, %v2231_v3, %v2103_v48  ;;  %v1595_v56 = vmul.f32 %v4707_v19, %v1531_v24  ;;  %v1533_v17 = vadd.f32 -0.28449672, %v1469_v59  ;;  %v1216_v46 = vmul.f32 1.0614054, %v4782_v28 }
 0x2d8   : > { %v2426_v29 = vmul.f32 %v2362_v20, %v6027_v25  ;;  %v2359_v47 = vadd.f32 1.0, %v2295_v58  ;;  %v2233_v39 = vsub.f32 0.0, %v2105_v35  ;;  %v2236_v8 = vsub.f32 0.0, %v2108_v37  ;;  %v5309_v62 = vpop.eup %3453  ;;  %v6033_v25 = vld [vmem:[#allocation189_spill] sm:$0xff] }
 0x2d9   : > { %v2046_v12 = vmul.f32 %v4752_v41, %v1726_v53  ;;  %v1659_v60 = vadd.f32 0.2548296, %v1595_v56  ;;  %v1597_v31 = vmul.f32 %v4717_v15, %v1533_v17  ;;  %v1280_v1 = vadd.f32 -1.4531521, %v1216_v46 }
 0x2da   : > { %vm2171_vm6 = vcmp.lt.f32.partialorder %v6028_v52, 0.0  ;;  %2779 = vmatprep.mubr.f32.mxu1 %v2426_v29  ;;  %v2423_v49 = vmul.f32 %v2359_v47, %v6029_v5  ;;  %v2297_v33 = vsel %vm2169_vm3, %v2233_v39, %v2105_v35  ;;  %v2300_v14 = vsel %vm2172_vm4, %v2236_v8, %v2108_v37 }
 0x2db   : > { %v1218_v45 = vmul.f32 1.0614054, %v4804_v13  ;;  %v2361_v36 = vadd.f32 1.0, %v2297_v33  ;;  %v2364_v0 = vadd.f32 1.0, %v2300_v14  ;;  %v2110_v41 = vsub.f32 1.0, %v2046_v12 }
 0x2dc   : > { %v1723_v27 = vmul.f32 %v4707_v19, %v1659_v60  ;;  %2635 = vmatmul.mubr.f32.gmra.mxu0 %v2423_v49  ;;  %v1661_v55 = vadd.f32 0.2548296, %v1597_v31  ;;  %v1344_v48 = vmul.f32 %v4782_v28, %v1280_v1  ;;  %v1215_v61 = vmul.f32 1.0614054, %v4757_v23 }
 0x2dd   : > { %v1282_v63 = vadd.f32 -1.4531521, %v1218_v45  ;;  %vm2173_vm7 = vcmp.lt.f32.partialorder %v6030_v21, 0.0  ;;  %v2425_v16 = vmul.f32 %v2361_v36, %v6031_v11  ;;  %v2428_v38 = vmul.f32 %v2364_v0, %v6032_v51  ;;  %v6034_v0 = vld [vmem:[#allocation179_spill] sm:$0xff]  ;;  %v6036_v21 = vld [vmem:[#allocation182_spill] sm:$0xff] }
 0x2de   : > { %v2238_v34 = vsub.f32 0.0, %v2110_v41  ;;  %v2043_v43 = vmul.f32 %v4711_v18, %v1723_v27  ;;  %v1725_v26 = vmul.f32 %v4717_v15, %v1661_v55  ;;  %v1408_v30 = vadd.f32 1.4214138, %v1344_v48  ;;  %v6035_v48 = vld [vmem:[#allocation191_spill] sm:$0xff] }
 0x2df   : > { %v1346_v19 = vmul.f32 %v4804_v13, %v1282_v63  ;;  %v1279_v3 = vadd.f32 -1.4531521, %v1215_v61  ;;  %2780 = vmatmul.mubr.f32.gmra.mxu1 %v2425_v16  ;;  %2639 = vmatprep.mubr.f32.mxu0 %v2428_v38  ;;  %v1217_v20 = vmul.f32 1.0614054, %v4771_v40  ;;  %v1220_v35 = vmul.f32 1.0614054, %v5033_v22 }
 0x2e0   : > { %v2302_v24 = vsel %vm2174_vm5, %v2238_v34, %v2110_v41  ;;  %v2107_v59 = vsub.f32 1.0, %v2043_v43  ;;  %v2045_v53 = vmul.f32 %v4735_v4, %v1725_v26  ;;  %v1472_v18 = vmul.f32 %v4782_v28, %v1408_v30 }
 0x2e1   : > { %v2366_v37 = vadd.f32 1.0, %v2302_v24  ;;  %v1410_v15 = vadd.f32 1.4214138, %v1346_v19  ;;  %v1343_v56 = vmul.f32 %v4757_v23, %v1279_v3  ;;  %v1281_v17 = vadd.f32 -1.4531521, %v1217_v20 }
 0x2e2   : > { %v2235_v58 = vsub.f32 0.0, %v2107_v59  ;;  %v1284_v46 = vadd.f32 -1.4531521, %v1220_v35  ;;  %v2109_v50 = vsub.f32 1.0, %v2045_v53  ;;  %v1536_v47 = vadd.f32 -0.28449672, %v1472_v18 }
 0x2e3   : > { %v2430_v29 = vmul.f32 %v2366_v37, %v6033_v25  ;;  %v1474_v39 = vmul.f32 %v4804_v13, %v1410_v15  ;;  %v1407_v12 = vadd.f32 1.4214138, %v1343_v56  ;;  %v1345_v4 = vmul.f32 %v4771_v40, %v1281_v17  ;;  %v2987_v15 = vpop.f32.mrf.mxu0 }
 0x2e4   : > { %v2299_v8 = vsel %vm2171_vm6, %v2235_v58, %v2107_v59  ;;  %v1348_v60 = vmul.f32 %v5033_v22, %v1284_v46  ;;  %v2237_v1 = vsub.f32 0.0, %v2109_v50  ;;  %v1600_v5 = vmul.f32 %v4782_v28, %v1536_v47  ;;  %v6037_v58 = vld [vmem:[#allocation181_spill] sm:$0xff]  ;;  %v3067_v47 = vpop.f32.mrf.mxu1 }
 0x2e5   : > { %2784 = vmatprep.mubr.f32.mxu1 %v2430_v29  ;;  %v2363_v31 = vadd.f32 1.0, %v2299_v8  ;;  %v1538_v49 = vadd.f32 -0.28449672, %v1474_v39  ;;  %v1471_v33 = vmul.f32 %v4757_v23, %v1407_v12  ;;  %v1409_v14 = vadd.f32 1.4214138, %v1345_v4  ;;  %v6038_v39 = vld [vmem:[#allocation184_spill] sm:$0xff] }
 0x2e6   : > { %v1412_v45 = vadd.f32 1.4214138, %v1348_v60  ;;  %v1222_v36 = vmul.f32 1.0614054, %v5297_v57  ;;  %v2301_v41 = vsel %vm2173_vm7, %v2237_v1, %v2109_v50  ;;  %v1664_v27 = vadd.f32 0.2548296, %v1600_v5  ;;  %v2988_v5 = vpop.f32.mrf.mxu0 }
 0x2e7   : > { %v2427_v52 = vmul.f32 %v2363_v31, %v6034_v0  ;;  %v1602_v55 = vmul.f32 %v4804_v13, %v1538_v49  ;;  %vm2176_vm8 = vcmp.lt.f32.partialorder %v6035_v48, 0.0  ;;  %v2365_v63 = vadd.f32 1.0, %v2301_v41  ;;  %v3068_v41 = vpop.f32.mrf.mxu1  ;;  %v6039_v48 = vld [vmem:[#allocation199_spill] sm:$0xff] }
 0x2e8   : > { %v1535_v61 = vadd.f32 -0.28449672, %v1471_v33  ;;  %v1473_v11 = vmul.f32 %v4771_v40, %v1409_v14  ;;  %v1476_v16 = vmul.f32 %v5033_v22, %v1412_v45  ;;  %v1728_v51 = vmul.f32 %v4782_v28, %v1664_v27 }
 0x2e9   : > { %2640 = vmatmul.mubr.f32.gmra.mxu0 %v2427_v52  ;;  %v1666_v38 = vadd.f32 0.2548296, %v1602_v55  ;;  %v1286_v34 = vadd.f32 -1.4531521, %v1222_v36  ;;  %v1219_v43 = vmul.f32 1.0614054, %v4825_v54  ;;  %v2429_v26 = vmul.f32 %v2365_v63, %v6036_v21 }
 0x2ea   : > { %vm2178_vm9 = vcmp.lt.f32.partialorder %v4688_v42, 0.0  ;;  %v1599_v30 = vmul.f32 %v4757_v23, %v1535_v61  ;;  %v1537_v19 = vadd.f32 -0.28449672, %v1473_v11  ;;  %v1540_v3 = vadd.f32 -0.28449672, %v1476_v16 }
 0x2eb   : > { %v2048_v24 = vmul.f32 %v4787_v9, %v1728_v51  ;;  %v1730_v59 = vmul.f32 %v4804_v13, %v1666_v38  ;;  %v1350_v20 = vmul.f32 %v5297_v57, %v1286_v34  ;;  %v1283_v35 = vadd.f32 -1.4531521, %v1219_v43  ;;  %2785 = vmatmul.mubr.f32.gmra.mxu1 %v2429_v26  ;;  %v2990_v51 = vpop.f32.mrf.mxu0  ;;  %v5388_v42 = vld [vmem:[%s5503_s4] ss:$0 sm:$0xff]  ;;  %v6040_v43 = vld [vmem:[#allocation200_spill] sm:$0xff] }
 0x2ec   : > { %v1663_v28 = vadd.f32 0.2548296, %v1599_v30  ;;  %v1601_v37 = vmul.f32 %v4771_v40, %v1537_v19  ;;  %v1604_v53 = vmul.f32 %v5033_v22, %v1540_v3  ;;  %v1221_v18 = vmul.f32 1.0614054, %v4878_v2  ;;  %v3070_v3 = vpop.f32.mrf.mxu1 }
 0x2ed   : > { %vm2175_vm10 = vcmp.lt.f32.partialorder %v6037_v58, 0.0  ;;  %v2112_v56 = vsub.f32 1.0, %v2048_v24  ;;  %v2050_v17 = vmul.f32 %v4829_v6, %v1730_v59  ;;  %v1414_v9 = vadd.f32 1.4214138, %v1350_v20 }
 0x2ee   : > { %v1347_v13 = vmul.f32 %v4825_v54, %v1283_v35  ;;  %v1727_v46 = vmul.f32 %v4757_v23, %v1663_v28  ;;  %v1665_v25 = vadd.f32 0.2548296, %v1601_v37  ;;  %v1668_v29 = vadd.f32 0.2548296, %v1604_v53 }
 0x2ef   : > { %v1285_v50 = vadd.f32 -1.4531521, %v1221_v18  ;;  %vm2177_vm11 = vcmp.lt.f32.partialorder %v6038_v39, 0.0  ;;  %v2240_v8 = vsub.f32 0.0, %v2112_v56  ;;  %v2114_v12 = vsub.f32 1.0, %v2050_v17  ;;  %v6041_v17 = vld [vmem:[#allocation197_spill] sm:$0xff] }
 0x2f0   : > { %v1478_v4 = vmul.f32 %v5297_v57, %v1414_v9  ;;  %v1411_v60 = vadd.f32 1.4214138, %v1347_v13  ;;  %vm2180_vm12 = vcmp.lt.f32.partialorder %v4761_v44, 0.0  ;;  %v2047_v6 = vmul.f32 %v4763_v32, %v1727_v46  ;;  %v6042_v39 = vld [vmem:[#allocation198_spill] sm:$0xff] }
 0x2f1   : > { %v1729_v31 = vmul.f32 %v4771_v40, %v1665_v25  ;;  %v1732_v1 = vmul.f32 %v5033_v22, %v1668_v29  ;;  %v1349_v23 = vmul.f32 %v4878_v2, %v1285_v50  ;;  %v2304_v49 = vsel %vm2176_vm8, %v2240_v8, %v2112_v56  ;;  %v2991_v56 = vpop.f32.mrf.mxu0  ;;  %v3071_v50 = vpop.f32.mrf.mxu1 }
 0x2f2   : > { %v2242_v33 = vsub.f32 0.0, %v2114_v12  ;;  %v1542_v14 = vadd.f32 -0.28449672, %v1478_v4  ;;  %v1475_v45 = vmul.f32 %v4825_v54, %v1411_v60  ;;  %v2368_v36 = vadd.f32 1.0, %v2304_v49  ;;  %v6043_v4 = vld [vmem:[#allocation205_spill] sm:$0xff] }
 0x2f3   : > { %v2111_v0 = vsub.f32 1.0, %v2047_v6  ;;  %v2049_v52 = vmul.f32 %v4776_v7, %v1729_v31  ;;  %v2052_v32 = vmul.f32 %v5043_v10, %v1732_v1  ;;  %v1413_v55 = vadd.f32 1.4214138, %v1349_v23  ;;  %v6044_v6 = vld [vmem:[#allocation18_spill] sm:$0xff]  ;;  %v6045_v23 = vld [vmem:[#allocation204_spill] sm:$0xff] }
 0x2f4   : > { %v2306_v40 = vsel %vm2178_vm9, %v2242_v33, %v2114_v12  ;;  %v1606_v22 = vmul.f32 %v5297_v57, %v1542_v14  ;;  %v1539_v27 = vadd.f32 -0.28449672, %v1475_v45  ;;  %v2432_v63 = vmul.f32 %v2368_v36, %v6039_v48  ;;  %v6046_v45 = vld [vmem:[#allocation203_spill] sm:$0xff]  ;;  %v6049_v48 = vld [vmem:[#allocation193_spill] sm:$0xff] }
 0x2f5   : > { %v2370_v61 = vadd.f32 1.0, %v2306_v40  ;;  %v2239_v11 = vsub.f32 0.0, %v2111_v0  ;;  %v2113_v16 = vsub.f32 1.0, %v2049_v52  ;;  %v2116_v38 = vsub.f32 1.0, %v2052_v32  ;;  %v6047_v32 = vld [vmem:[#allocation21_spill] sm:$0xff]  ;;  %v6048_v40 = vld [vmem:[#allocation196_spill] sm:$0xff] }
 0x2f6   : > { %v1670_v34 = vadd.f32 0.2548296, %v1606_v22  ;;  %v1603_v7 = vmul.f32 %v4825_v54, %v1539_v27  ;;  %v1477_v10 = vmul.f32 %v4878_v2, %v1413_v55  ;;  %2644 = vmatprep.mubr.f32.mxu0 %v2432_v63  ;;  %v2989_v19 = vadd.f32 %v2988_v5, %v2987_v15 }
 0x2f7   : > { %v2434_v21 = vmul.f32 %v2370_v61, %v6040_v43  ;;  %v2303_v26 = vsel %vm2175_vm10, %v2239_v11, %v2111_v0  ;;  %v2241_v30 = vsub.f32 0.0, %v2113_v16  ;;  %v2244_v59 = vsub.f32 0.0, %v2116_v38 }
 0x2f8   : > { %v2367_v24 = vadd.f32 1.0, %v2303_v26  ;;  %v1734_v20 = vmul.f32 %v5297_v57, %v1670_v34  ;;  %v1667_v35 = vadd.f32 0.2548296, %v1603_v7  ;;  %v1541_v37 = vadd.f32 -0.28449672, %v1477_v10 }
 0x2f9   : > { %2789 = vmatprep.mubr.f32.mxu1 %v2434_v21  ;;  %v2305_v28 = vsel %vm2177_vm11, %v2241_v30, %v2113_v16  ;;  %v2577_v53 = vadd.f32 %v2989_v19, %v5388_v42  ;;  %v3069_v18 = vadd.f32 %v3068_v41, %v3067_v47  ;;  %v2308_v15 = vsel %vm2180_vm12, %v2244_v59, %v2116_v38  ;;  %v6051_v38 = vld [vmem:[#allocation201_spill] sm:$0xff] }
 0x2fa   : > { %v2431_v58 = vmul.f32 %v2367_v24, %v6041_v17  ;;  %v2369_v9 = vadd.f32 1.0, %v2305_v28  ;;  %v2054_v13 = vmul.f32 %v5309_v62, %v1734_v20  ;;  %v2372_v57 = vadd.f32 1.0, %v2308_v15 }
 0x2fb   : > { %v1731_v46 = vmul.f32 %v4825_v54, %v1667_v35  ;;  %v1605_v25 = vmul.f32 %v4878_v2, %v1541_v37  ;;  %v2722_v29 = vadd.f32 %v3069_v18, %v2577_v53  ;;  %v2992_v12 = vadd.f32 %v2991_v56, %v2990_v51 }
 0x2fc   : > { %2645 = vmatmul.mubr.f32.gmra.mxu0 %v2431_v58  ;;  %v2433_v47 = vmul.f32 %v2369_v9, %v6042_v39  ;;  %v2118_v8 = vsub.f32 1.0, %v2054_v13  ;;  %v2436_v60 = vmul.f32 %v2372_v57, %v6043_v4  ;;  %v3072_v1 = vadd.f32 %v3071_v50, %v3070_v3  ;;  %v2993_v10 = vpop.f32.mrf.mxu0 }
 0x2fd   : > { %v2051_v31 = vmul.f32 %v6044_v6, %v1731_v46  ;;  %v1669_v44 = vadd.f32 0.2548296, %v1605_v25  ;;  %2800 = vst [vmem:[%s5408_s27] sm:$0xff] %v2722_v29  ;;  %v2582_v62 = vadd.f32 %v2992_v12, %v5388_v42  ;;  %vm2182_vm13 = vcmp.lt.f32.partialorder %v6045_v23, 0.0 }
 0x2fe   : > { %2790 = vmatmul.mubr.f32.gmra.mxu1 %v2433_v47  ;;  %v2246_v54 = vsub.f32 0.0, %v2118_v8  ;;  %2649 = vmatprep.mubr.f32.mxu0 %v2436_v60  ;;  %v774_v36 = vmul.f32 0.5, %v6046_v45  ;;  %vm2179_vm14 = vcmp.lt.f32.partialorder %v6048_v40, 0.0  ;;  %v771_v63 = vmul.f32 0.5, %v6049_v48  ;;  %v2994_v21 = vpop.f32.mrf.mxu0 }
 0x2ff   : > { %v2115_v5 = vsub.f32 1.0, %v2051_v31  ;;  %v1733_v49 = vmul.f32 %v4878_v2, %v1669_v44  ;;  %v2727_v14 = vadd.f32 %v3072_v1, %v2582_v62  ;;  %v6050_v2 = vld [vmem:[#allocation202_spill] sm:$0xff]  ;;  %v773_v34 = vmul.f32 0.5, %v6051_v38 }
 0x300   : > { %v2310_v33 = vsel %vm2182_vm13, %v2246_v54, %v2118_v8  ;;  %vm2181_vm15 = vcmp.lt.f32.partialorder %v6050_v2, 0.0  ;;  %v2995_v26 = vadd.f32 %v2994_v21, %v2993_v10  ;;  %v3073_v30 = vpop.f32.mrf.mxu1 }
 0x301   : > { %v2374_v0 = vadd.f32 1.0, %v2310_v33  ;;  %v2243_v52 = vsub.f32 0.0, %v2115_v5  ;;  %v2053_v41 = vmul.f32 %v6047_v32, %v1733_v49  ;;  %2801 = vst [vmem:[%s5408_s27 + $0x8] sm:$0xff] %v2727_v14 }
 0x302   : > { %v2587_v19 = vadd.f32 %v2995_v26, %v5388_v42  ;;  %v3074_v3 = vpop.f32.mrf.mxu1 }
 0x303   : > { %v2438_v22 = vmul.f32 %v2374_v0, %v774_v36  ;;  %v2307_v27 = vsel %vm2179_vm14, %v2243_v52, %v2115_v5  ;;  %v2117_v55 = vsub.f32 1.0, %v2053_v41  ;;  %v3075_v24 = vadd.f32 %v3074_v3, %v3073_v30 }
 0x304   : > { %v2371_v61 = vadd.f32 1.0, %v2307_v27 }
 0x305   : > { %2794 = vmatprep.mubr.f32.mxu1 %v2438_v22  ;;  %v2245_v11 = vsub.f32 0.0, %v2117_v55  ;;  %v2732_v59 = vadd.f32 %v3075_v24, %v2587_v19 }
 0x306   : > { %v2435_v16 = vmul.f32 %v2371_v61, %v771_v63  ;;  %v2996_v20 = vpop.f32.mrf.mxu0 }
 0x307   : > { %v2309_v51 = vsel %vm2181_vm15, %v2245_v11, %v2117_v55  ;;  %2802 = vst [vmem:[%s5408_s27 + $0x10] sm:$0xff] %v2732_v59 }
 0x308   : > { %2650 = vmatmul.mubr.f32.gmra.mxu0 %v2435_v16  ;;  %v2373_v7 = vadd.f32 1.0, %v2309_v51  ;;  %v2997_v35 = vpop.f32.mrf.mxu0 }
 0x309   : > { %v3076_v28 = vpop.f32.mrf.mxu1  ;;  %v2998_v37 = vadd.f32 %v2997_v35, %v2996_v20 }
 0x30a   : > { %v2437_v43 = vmul.f32 %v2373_v7, %v773_v34 }
 0x30b   : > { %v2592_v53 = vadd.f32 %v2998_v37, %v5388_v42  ;;  %v3077_v18 = vpop.f32.mrf.mxu1 }
 0x30c   : > { %2795 = vmatmul.mubr.f32.gmra.mxu1 %v2437_v43  ;;  %v3078_v56 = vadd.f32 %v3077_v18, %v3076_v28 }
 0x30e   : > { %v2737_v17 = vadd.f32 %v3078_v56, %v2592_v53 }
 0x310   : > { %2803 = vst [vmem:[%s5408_s27 + $0x18] sm:$0xff] %v2737_v17 }
 0x31d   : > { %v2999_v58 = vpop.f32.mrf.mxu0 }
 0x31f   : > { %v3000_v15 = vpop.f32.mrf.mxu0 }
 0x320   : > { %v3079_v9 = vpop.f32.mrf.mxu1  ;;  %v3001_v13 = vadd.f32 %v3000_v15, %v2999_v58 }
 0x322   : > { %v3080_v57 = vpop.f32.mrf.mxu1  ;;  %v2597_v46 = vadd.f32 %v3001_v13, %v5388_v42 }
 0x323   : > { %v3081_v25 = vadd.f32 %v3080_v57, %v3079_v9 }
 0x325   : > { %v2742_v29 = vadd.f32 %v3081_v25, %v2597_v46  ;;  %v3002_v50 = vpop.f32.mrf.mxu0 }
 0x327   : > { %2804 = vst [vmem:[%s5408_s27 + $0x20] sm:$0xff] %v2742_v29  ;;  %v3003_v39 = vpop.f32.mrf.mxu0 }
 0x328   : > { %v3004_v47 = vadd.f32 %v3003_v39, %v3002_v50 }
 0x32a   : > { %v3082_v8 = vpop.f32.mrf.mxu1  ;;  %v2602_v12 = vadd.f32 %v3004_v47, %v5388_v42 }
 0x32c   : > { %v3083_v4 = vpop.f32.mrf.mxu1 }
 0x32d   : > { %v3084_v60 = vadd.f32 %v3083_v4, %v3082_v8 }
 0x32f   : > { %v2747_v6 = vadd.f32 %v3084_v60, %v2602_v12 }
 0x331   : > { %2805 = vst [vmem:[%s5408_s27 + $0x28] sm:$0xff] %v2747_v6 }
 0x33c   : > { %v3005_v31 = vpop.f32.mrf.mxu0 }
 0x33e   : > { %v3006_v44 = vpop.f32.mrf.mxu0 }
 0x33f   : > { %v3085_v54 = vpop.f32.mrf.mxu1  ;;  %v3007_v62 = vadd.f32 %v3006_v44, %v3005_v31 }
 0x341   : > { %v2607_v1 = vadd.f32 %v3007_v62, %v5388_v42  ;;  %v3086_v23 = vpop.f32.mrf.mxu1 }
 0x342   : > { %v3087_v5 = vadd.f32 %v3086_v23, %v3085_v54 }
 0x344   : > { %v2752_v49 = vadd.f32 %v3087_v5, %v2607_v1 }
 0x346   : > { %2806 = vst [vmem:[%s5408_s27 + $0x30] sm:$0xff] %v2752_v49  ;;  %v3008_v33 = vpop.f32.mrf.mxu0 }
 0x348   : > { %v3009_v45 = vpop.f32.mrf.mxu0 }
 0x349   : > { %v3088_v14 = vpop.f32.mrf.mxu1  ;;  %v3010_v36 = vadd.f32 %v3009_v45, %v3008_v33 }
 0x34b   : > { %v3089_v0 = vpop.f32.mrf.mxu1  ;;  %v2612_v52 = vadd.f32 %v3010_v36, %v5388_v42 }
 0x34c   : > { %v3090_v32 = vadd.f32 %v3089_v0, %v3088_v14 }
 0x34e   : > { %v2757_v41 = vadd.f32 %v3090_v32, %v2612_v52 }
 0x350   : > { %2807 = vst [vmem:[%s5408_s27 + $0x38] sm:$0xff] %v2757_v41 }
 0x35c   : > { %v3011_v40 = vpop.f32.mrf.mxu0 }
 0x35e   : > { %v3012_v22 = vpop.f32.mrf.mxu0 }
 0x35f   : > { %v3013_v27 = vadd.f32 %v3012_v22, %v3011_v40 }
 0x360   : > { %v3091_v55 = vpop.f32.mrf.mxu1 }
 0x361   : > { %v2617_v48 = vadd.f32 %v3013_v27, %v5388_v42 }
 0x362   : > { %v3092_v63 = vpop.f32.mrf.mxu1 }
 0x363   : > { %v3093_v61 = vadd.f32 %v3092_v63, %v3091_v55 }
 0x365   : > { %v2762_v11 = vadd.f32 %v3093_v61, %v2617_v48 }
 0x366   : > { %v3014_v2 = vpop.f32.mrf.mxu0 }
 0x367   : > { %2808 = vst [vmem:[%s5408_s27 + $0x40] sm:$0xff] %v2762_v11 }
 0x368   : > { %v3015_v16 = vpop.f32.mrf.mxu0  ;;  %v3094_v51 = vpop.f32.mrf.mxu1 }
 0x369   : > { %v3016_v38 = vadd.f32 %v3015_v16, %v3014_v2 }
 0x36a   : > { %v3095_v7 = vpop.f32.mrf.mxu1 }
 0x36b   : > { %v2622_v34 = vadd.f32 %v3016_v38, %v5388_v42  ;;  %v3096_v10 = vadd.f32 %v3095_v7, %v3094_v51 }
 0x36d   : > { %v2767_v43 = vadd.f32 %v3096_v10, %v2622_v34 }
 0x36f   : > { %2809 = vst [vmem:[%s5408_s27 + $0x48] sm:$0xff] %v2767_v43 }
 0x37d   : > { %v3017_v21 = vpop.f32.mrf.mxu0 }
 0x37f   : > { %v3097_v26 = vpop.f32.mrf.mxu1  ;;  %v3018_v30 = vpop.f32.mrf.mxu0 }
 0x380   : > { %v3019_v19 = vadd.f32 %v3018_v30, %v3017_v21 }
 0x381   : > { %v3098_v3 = vpop.f32.mrf.mxu1 }
 0x382   : > { %v2627_v24 = vadd.f32 %v3019_v19, %v5388_v42  ;;  %v3099_v59 = vadd.f32 %v3098_v3, %v3097_v26 }
 0x384   : > { %v2772_v20 = vadd.f32 %v3099_v59, %v2627_v24 }
 0x385   : > { %v3020_v35 = vpop.f32.mrf.mxu0 }
 0x386   : > { %2810 = vst [vmem:[%s5408_s27 + $0x50] sm:$0xff] %v2772_v20 }
 0x387   : > { %v3021_v28 = vpop.f32.mrf.mxu0 }
 0x388   : > { %v3022_v37 = vadd.f32 %v3021_v28, %v3020_v35 }
 0x389   : > { %v3100_v53 = vpop.f32.mrf.mxu1 }
 0x38a   : > { %v2632_v18 = vadd.f32 %v3022_v37, %v5388_v42 }
 0x38b   : > { %v3101_v56 = vpop.f32.mrf.mxu1 }
 0x38c   : > { %v3102_v17 = vadd.f32 %v3101_v56, %v3100_v53 }
 0x38e   : > { %v2777_v58 = vadd.f32 %v3102_v17, %v2632_v18 }
 0x390   : > { %2811 = vst [vmem:[%s5408_s27 + $0x58] sm:$0xff] %v2777_v58 }
 0x39c   : > { %v3023_v9 = vpop.f32.mrf.mxu0 }
 0x39e   : > { %v3024_v15 = vpop.f32.mrf.mxu0 }
 0x39f   : > { %v3103_v13 = vpop.f32.mrf.mxu1  ;;  %v3025_v57 = vadd.f32 %v3024_v15, %v3023_v9 }
 0x3a1   : > { %v2637_v46 = vadd.f32 %v3025_v57, %v5388_v42  ;;  %v3104_v25 = vpop.f32.mrf.mxu1 }
 0x3a2   : > { %v3105_v29 = vadd.f32 %v3104_v25, %v3103_v13 }
 0x3a4   : > { %v2782_v50 = vadd.f32 %v3105_v29, %v2637_v46 }
 0x3a6   : > { %2812 = vst [vmem:[%s5408_s27 + $0x60] sm:$0xff] %v2782_v50 }
 0x3a9   : > { %v3026_v39 = vpop.f32.mrf.mxu0 }
 0x3ab   : > { %v3027_v47 = vpop.f32.mrf.mxu0  ;;  %v3106_v8 = vpop.f32.mrf.mxu1 }
 0x3ac   : > { %v3028_v12 = vadd.f32 %v3027_v47, %v3026_v39 }
 0x3ad   : > { %v3107_v60 = vpop.f32.mrf.mxu1 }
 0x3ae   : > { %v2642_v4 = vadd.f32 %v3028_v12, %v5388_v42  ;;  %v3108_v6 = vadd.f32 %v3107_v60, %v3106_v8 }
 0x3b0   : > { %v2787_v31 = vadd.f32 %v3108_v6, %v2642_v4 }
 0x3b2   : > { %2813 = vst [vmem:[%s5408_s27 + $0x68] sm:$0xff] %v2787_v31 }
 0x3bc   : > { %v3029_v44 = vpop.f32.mrf.mxu0 }
 0x3be   : > { %v3109_v54 = vpop.f32.mrf.mxu1  ;;  %v3030_v62 = vpop.f32.mrf.mxu0 }
 0x3bf   : > { %v3031_v1 = vadd.f32 %v3030_v62, %v3029_v44 }
 0x3c0   : > { %v3110_v23 = vpop.f32.mrf.mxu1 }
 0x3c1   : > { %v2647_v5 = vadd.f32 %v3031_v1, %v5388_v42  ;;  %v3111_v49 = vadd.f32 %v3110_v23, %v3109_v54 }
 0x3c3   : > { %v2792_v33 = vadd.f32 %v3111_v49, %v2647_v5 }
 0x3c5   : > { %2814 = vst [vmem:[%s5408_s27 + $0x70] sm:$0xff] %v2792_v33 }
 0x3c8   : > { %v3032_v14 = vpop.f32.mrf.mxu0 }
 0x3ca   : > { %v3033_v45 = vpop.f32.mrf.mxu0 }
 0x3cb   : > { %v3034_v36 = vadd.f32 %v3033_v45, %v3032_v14 }
 0x3cc   : > { %v3112_v0 = vpop.f32.mrf.mxu1 }
 0x3cd   : > { %v2652_v52 = vadd.f32 %v3034_v36, %v5388_v42 }
 0x3ce   : > { %v3113_v32 = vpop.f32.mrf.mxu1 }
 0x3cf   : > { %v3114_v41 = vadd.f32 %v3113_v32, %v3112_v0 }
 0x3d1   : > { %v2797_v40 = vadd.f32 %v3114_v41, %v2652_v52 }
 0x3d3   : > { %2815 = vst [vmem:[%s5408_s27 + $0x78] sm:$0xff] %v2797_v40 }
 0x3d4   : > { %3574 = shalt.err (!%p3571_p9)
}
 0x3d5   : > { %s3575_s23 = scalar_lea.hbm %s5453_s14, 2048  ;;  %s3579_s24 = scalar_lea.hbm %s5504_s5, 4096 }
 0x3d6   : > { %p3576_p1 = scmp.ne.s32.totalorder %s5453_s14, %s3575_s23  ;;  %p3580_p11 = scmp.lt.s32.totalorder %s5453_s14, %s5504_s5 }
 0x3d7   : > { %p3581_p13 = scmp.lt.s32.totalorder %s3579_s24, %s3575_s23 }
 0x3d8   : > { %p3577_p8 = pnand %p3576_p1, %p6052_p6 }
 0x3d9   : > { %p3582_p2 = por %p3581_p13, %p3580_p11 }
 0x3da   : > { %p3578_p10 = pneg %p3577_p8 }
 0x3dc   : > { %p3583_p4 = pnand %p3582_p2, %p3578_p10 }
 0x3de   : > { %3586 = shalt.err (!%p3583_p4)
}
 0x3df   : > { %s3645_s15 = smov 128   ;;  %s3646_s30 = smov 8  }
 0x3e0   : > { %3129 = dma.vmem_to_hbm [thread:$0]  (%p6052_p6), %s5455_s17, 2048, %s5453_s14, %s2817_s11, %s3645_s15, %s3645_s15, %s3646_s30  }
 0x3e1 PF: > { %s2845_s13 = sand.u32 1, %s3621_s18   ;;  %p6053_p12 = scmp.ne.s32.totalorder %s5653_s25, 0 }
 0x3e2   : > { %p6054_p0 = scmp.ge.s32.totalorder %s3633_s21, 2  ;;  %s2846_s16 = scalar_lea.sflag [#allocation4], %s2845_s13 }
 0x3e4   : > { %p3146_p5 = pnand %p6054_p0, %p6053_p12 }
 0x3e6   : > { %p3147_p3 = pneg %p3146_p5 }
 0x3e8   : > { %3616 = dma.done.wait (%p3147_p3), %s2846_s16, 2048  }
 0x3e9   : > { %3618 = vsyncadd (%p3147_p3), %s2846_s16, 4294965248  ;;  %p20_p7 = scmp.ge.s32.totalorder %s3760_s6, 4   ;;  %s6055_s18 = smov %s3625_s19 }
 0x3ea   : > { %s6056_s19 = smov %s3629_s20  ;;  %s6057_s20 = smov %s3770_s10 }
 0x3eb   : > { %s6058_s21 = smov %s3760_s6  ;;  %22 = sbr.rel (!%p20_p7) target bundleno = 7 (0x7), region = 97 }
 0x3f0   :  { %2851 = vsyncpa [#allocation3], 1 }
 0x3f1   :  { %2853 = vsyncpa [#allocation3 + $0x1], 1 }
 0x3f2   :  { %2854 = vsyncpa [#allocation6], 1 }
 0x3f3   :  { %2855 = vsyncpa [#allocation9], 1 }
 0x3f4   :  { %2856 = vsyncpa [#allocation4], 1 }
 0x3f5   :  { %2858 = vsyncpa [#allocation4 + $0x1], 1 }

</bundles_post_ra>
